<compile_context>
chip_gen: v7x
topology: tpu7x:2x2x1
jax: 0.10.0
libtpu: 0.0.40
codegen_flags: <defaults>
</compile_context>

<pallas_src>
import functools

import jax
import jax.numpy as jnp
from jax import lax
from jax.experimental import pallas as pl
from jax.experimental.pallas import tpu as pltpu

IM_C, IM_H, IM_W = 3, 42, 144
EM_C, EM_H, EM_W = 256, 2, 9            # encoder feature map (C, H, W) for a 3x42x144 input
H_DIM = EM_C * EM_H * EM_W              # 4608
Z_DIM = 32
NUM_LAYERS = 3
KSIZE = 4


def _round_up(x, m):
    return (x + m - 1) // m * m


def _pick_group(n, cap):
    """Largest divisor of n that is <= cap (images processed per grid step)."""
    for g in range(min(cap, n), 0, -1):
        if n % g == 0:
            return g
    return 1


def _make_chunks(m_pad, width):
    """Split m_pad output rows into 8-aligned chunks whose f32 acc stays in registers."""
    lanes = max(_round_up(width, 128), 128)
    max_rows = max(8, ((24 * 8 * 128) // lanes) // 8 * 8)   # ~24 vregs of accumulator
    chunks, m0 = [], 0
    while m0 < m_pad:
        sz = min(max_rows, m_pad - m0)
        chunks.append((m0, sz))
        m0 += sz
    return tuple(chunks)


# ----------------------------------------------------------------------------
# Shifted-tap GEMM kernel (shared by stride-2 conv and stride-2 conv-transpose)
#
# The wrapper flattens the (zero-padded, phase-decomposed) NHWC input of each image into
# row-major bf16 slabs of shape (rows, Cin).  Each tap is a contiguous row window at a
# static offset, so the convolution is a sum of small GEMMs accumulated in registers,
# chunked over output rows so the accumulator never spills to VMEM.
# ----------------------------------------------------------------------------

def _tap_conv_kernel(z_ref, w_ref, b_ref, o_ref, *, taps, chunks, group, relu):
    # z_ref: (group, R, Cin) bf16 | w_ref: (n_taps, Cin, W) bf16 | b_ref: (1, W) f32
    # o_ref: (group, m_pad, W)   | taps: static ((row_offset, tap_idx), ...)
    for g in range(group):
        for m0, msz in chunks:
            acc = None
            for off, wt in taps:
                lhs = z_ref[g, pl.ds(m0 + off, msz), :]
                part = jnp.dot(lhs, w_ref[wt], preferred_element_type=jnp.float32)
                acc = (part + b_ref[...]) if acc is None else (acc + part)
            if relu:
                acc = jnp.maximum(acc, 0.0)
            o_ref[g, pl.ds(m0, msz), :] = acc.astype(o_ref.dtype)


def _tap_conv_call(z, w_taps, b, *, taps, m_pad, group, relu, out_dtype):
    n, r, cin = z.shape
    n_taps, _, wdim = w_taps.shape
    assert n % group == 0
    return pl.pallas_call(
        functools.partial(_tap_conv_kernel, taps=taps,
                          chunks=_make_chunks(m_pad, wdim), group=group, relu=relu),
        out_shape=jax.ShapeDtypeStruct((n, m_pad, wdim), out_dtype),
        grid=(n // group,),
        in_specs=[
            pl.BlockSpec((group, r, cin), lambda i: (i, 0, 0)),
            pl.BlockSpec((n_taps, cin, wdim), lambda i: (0, 0, 0)),
            pl.BlockSpec((1, wdim), lambda i: (0, 0)),
        ],
        out_specs=pl.BlockSpec((group, m_pad, wdim), lambda i: (i, 0, 0)),
        compiler_params=pltpu.CompilerParams(dimension_semantics=("parallel",)),
    )(z, w_taps, b)


def conv2d_s2(x, w_taps, b, *, relu, out_dtype=jnp.bfloat16, group=1):
    """Conv2d(kernel=4, stride=2, padding=1) + bias (+ReLU) on NHWC input.

    x: (N, H, W, Cin); w_taps: (16, Cin, Cout) bf16 (tap = kh*4+kw); b: (1, Cout) f32.
    The stride-2 conv is phase-decomposed over the 4 input parities; each tap is a
    stride-1 shifted GEMM on the row-flattened phase slabs.
    """
    n, h, w, cin = x.shape
    cout = w_taps.shape[2]
    hout = (h - 2) // 2 + 1
    wout = (w - 2) // 2 + 1
    hc, wc = hout + 2, wout + 1          # per-phase slab height/width (incl. shift halo)
    rslab = hc * wc
    m_out = hout * wc                    # rows include 1 garbage column, cropped below
    m_pad = _round_up(m_out, 8)

    xb = x.astype(jnp.bfloat16)
    xp = jnp.pad(xb, ((0, 0), (1, 2 * hc - h - 1), (1, 2 * wc - w - 1), (0, 0)))
    z = (xp.reshape(n, hc, 2, wc, 2, cin)
           .transpose(0, 2, 4, 1, 3, 5)          # (N, p, q, i, j, C)
           .reshape(n, 4 * rslab, cin))

    taps = tuple(
        (((kh % 2) * 2 + (kw % 2)) * rslab + (kh // 2) * wc + (kw // 2), kh * KSIZE + kw)
        for kh in range(KSIZE) for kw in range(KSIZE))

    out = _tap_conv_call(z, w_taps, b, taps=taps, m_pad=m_pad, group=group,
                         relu=relu, out_dtype=out_dtype)
    return out[:, :m_out, :].reshape(n, hout, wc, cout)[:, :, :wout, :]


def conv_transpose2d_s2(x, w_taps, b, *, output_padding_h, relu, out_dtype=jnp.bfloat16):
    """ConvTranspose2d(kernel=4, stride=2, padding=1, output_padding=(oph, 0)), NHWC.

    x: (N, Hin, Win, Cin); w_taps: (9, Cin, 4*Cout) bf16 offset-grouped with the 4 output
    phases stacked along the lane dim; b: (1, Cout) f32.  No dilation zeros are created;
    the output is lane-dense (width 4*Cout) and de-interleaved with one transpose.
    """
    n, hin, win, cin = x.shape
    cout = w_taps.shape[2] // 4
    oph = output_padding_h
    hout, wout = 2 * hin + oph, 2 * win
    wxp = win + 2
    mh = hin + 1
    m_out = mh * wxp
    m_pad = _round_up(m_out, 8)

    xb = x.astype(jnp.bfloat16)
    # 1 halo row/col on top/left, 3 rows / 1 col of slack at the bottom/right so tap reads
    # of the (8-aligned) last chunk never index out of bounds (garbage rows cropped later).
    xp = jnp.pad(xb, ((0, 0), (1, 3), (1, 1), (0, 0)))
    z = xp.reshape(n, (hin + 4) * wxp, cin)

    taps = tuple((dh * wxp + dw, dh * 3 + dw) for dh in range(3) for dw in range(3))
    b4 = jnp.tile(b, (1, 4))                     # same bias for every output phase

    out = _tap_conv_call(z, w_taps, b4, taps=taps, m_pad=m_pad, group=1,
                         relu=relu, out_dtype=out_dtype)
    y = (out[:, :m_out, :].reshape(n, mh, wxp, 2, 2, cout)    # (N, i, j, r, s, C)
            .transpose(0, 1, 3, 2, 4, 5)                       # (N, i, r, j, s, C)
            .reshape(n, 2 * mh, 2 * wxp, cout))
    return y[:, :hout, :wout, :]


# ----------------------------------------------------------------------------
# Dense (Linear / im2col) kernel: y = x @ w + b, bf16 MXU operands, f32 accumulate.
# ----------------------------------------------------------------------------

def _dense_kernel(x_ref, w_ref, b_ref, o_ref, *, relu):
    acc = jnp.dot(x_ref[...].astype(jnp.bfloat16), w_ref[...],
                  preferred_element_type=jnp.float32) + b_ref[...]
    if relu:
        acc = jnp.maximum(acc, 0.0)
    o_ref[...] = acc.astype(o_ref.dtype)


def dense(x, w, b, *, relu=False, out_dtype=jnp.float32, m_block=None, n_block=None):
    """x: (M, K); w: (K, N) bf16 (pre-packed); b: (1, N) f32 -> (M, N) out_dtype."""
    m, k = x.shape
    n_out = w.shape[1]
    if m_block is None:
        m_block = _round_up(max(m, 1), 8)        # pad tiny M to 8 rows, not 128
    mp = _round_up(max(m, 1), m_block)
    xp = jnp.pad(x, ((0, mp - m), (0, 0)))
    if n_block is None or n_out % n_block != 0:
        n_block = n_out
    out = pl.pallas_call(
        functools.partial(_dense_kernel, relu=relu),
        out_shape=jax.ShapeDtypeStruct((mp, n_out), out_dtype),
        grid=(mp // m_block, n_out // n_block),
        in_specs=[
            pl.BlockSpec((m_block, k), lambda i, j: (i, 0)),
            pl.BlockSpec((k, n_block), lambda i, j: (0, j)),
            pl.BlockSpec((1, n_block), lambda i, j: (0, j)),
        ],
        out_specs=pl.BlockSpec((m_block, n_block), lambda i, j: (i, j)),
        compiler_params=pltpu.CompilerParams(dimension_semantics=("parallel", "parallel")),
    )(xp, w, b)
    return out[:m]


def conv2d_s2_im2col(x, w_mat, b, *, relu, out_dtype=jnp.bfloat16):
    """First conv (Cin=3) as an im2col GEMM: K = 4*4*Cin, one dot per row block."""
    n, h, w, cin = x.shape
    cout = w_mat.shape[1]
    hout = (h - 2) // 2 + 1
    wout = (w - 2) // 2 + 1
    xp = jnp.pad(x.astype(jnp.bfloat16), ((0, 0), (1, 1), (1, 1), (0, 0)))
    cols = [xp[:, kh:kh + 2 * hout - 1:2, kw:kw + 2 * wout - 1:2, :]
            for kh in range(KSIZE) for kw in range(KSIZE)]
    patches = jnp.concatenate(cols, axis=-1).reshape(n * hout * wout, KSIZE * KSIZE * cin)
    m_block = min(_round_up(hout * wout, 8), 2048)
    y = dense(patches, w_mat, b, relu=relu, out_dtype=out_dtype, m_block=m_block)
    return y.reshape(n, hout, wout, cout)


# ----------------------------------------------------------------------------
# 3-layer LSTM: one kernel invocation, T and L loops unrolled in-kernel.
# Gate activation = ONE 128-lane tanh; sigmoid lanes derived as 0.5*tanh(0.5x)+0.5.
# TODO(synk): PyTorch nn.LSTM has separate b_ih + b_hh; a single combined bias is used.
# ----------------------------------------------------------------------------

def _lstm_kernel(x_ref, wih_ref, whh_ref, b_ref, h0_ref, c0_ref, o_ref, *,
                 seq_len, num_layers, hid):
    h = [h0_ref[l] for l in range(num_layers)]
    c = [c0_ref[l] for l in range(num_layers)]
    lane = lax.broadcasted_iota(jnp.int32, (1, 4 * hid), 1)
    is_g = jnp.logical_and(lane >= 2 * hid, lane < 3 * hid)     # tanh lanes (g gate)
    for t in range(seq_len):
        inp = x_ref[t]
        for l in range(num_layers):
            gates = (jnp.dot(inp.astype(jnp.bfloat16), wih_ref[l],
                             preferred_element_type=jnp.float32)
                     + jnp.dot(h[l].astype(jnp.bfloat16), whh_ref[l],
                               preferred_element_type=jnp.float32)
                     + b_ref[l])
            pre = jnp.where(is_g, gates, 0.5 * gates)
            th = jnp.tanh(pre)                                  # single EUP pass
            act = jnp.where(is_g, th, 0.5 * th + 0.5)           # sigmoid on non-g lanes
            i_g = act[:, 0:hid]
            f_g = act[:, hid:2 * hid]
            g_g = act[:, 2 * hid:3 * hid]
            o_g = act[:, 3 * hid:4 * hid]
            c[l] = f_g * c[l] + i_g * g_g
            h[l] = o_g * jnp.tanh(c[l])
            inp = h[l]
    o_ref[...] = h[num_layers - 1]


def lstm_last(x_tm, wih, whh, b, h0, c0):
    """x_tm: (T, B, H) time-major f32. Returns the top layer's hidden state at t = T-1."""
    t, bsz, hid = x_tm.shape
    vmem = pl.BlockSpec(memory_space=pltpu.MemorySpace.VMEM)
    return pl.pallas_call(
        functools.partial(_lstm_kernel, seq_len=t, num_layers=NUM_LAYERS, hid=hid),
        out_shape=jax.ShapeDtypeStruct((bsz, hid), jnp.float32),
        in_specs=[vmem] * 6,
        out_specs=vmem,
    )(x_tm, wih, whh, b, h0, c0)


# ----------------------------------------------------------------------------
# Parameters (synthetic, PyTorch layouts) and one-time packing to kernel layouts.
# ----------------------------------------------------------------------------

def init_params(key):
    scale = 0.05
    names_shapes = [
        ("c1_w", (32, IM_C, 4, 4)), ("c1_b", (32,)),
        ("c2_w", (64, 32, 4, 4)), ("c2_b", (64,)),
        ("c3_w", (128, 64, 4, 4)), ("c3_b", (128,)),
        ("c4_w", (256, 128, 4, 4)), ("c4_b", (256,)),
        ("fc1_w", (Z_DIM, H_DIM)), ("fc1_b", (Z_DIM,)),
        ("fc3_w", (H_DIM, Z_DIM)), ("fc3_b", (H_DIM,)),
        ("d1_w", (256, 128, 4, 4)), ("d1_b", (128,)),
        ("d2_w", (128, 64, 4, 4)), ("d2_b", (64,)),
        ("d3_w", (64, 32, 4, 4)), ("d3_b", (32,)),
        ("d4_w", (32, IM_C, 4, 4)), ("d4_b", (IM_C,)),
        ("lstm_wih", (NUM_LAYERS, Z_DIM, 4 * Z_DIM)),
        ("lstm_whh", (NUM_LAYERS, Z_DIM, 4 * Z_DIM)),
        ("lstm_b", (NUM_LAYERS, 1, 4 * Z_DIM)),
        ("h0", (NUM_LAYERS, 1, Z_DIM)),
        ("c0", (NUM_LAYERS, 1, Z_DIM)),
    ]
    params = {}
    keys = jax.random.split(key, len(names_shapes))
    for (name, shape), k in zip(names_shapes, keys):
        params[name] = (scale * jax.random.normal(k, shape)).astype(jnp.float32)
    return params


def pack_conv_weights(w):
    # PyTorch Conv2d weight (Cout, Cin, 4, 4) -> (16, Cin, Cout) bf16, tap idx = kh*4 + kw
    cout, cin = w.shape[0], w.shape[1]
    return jnp.transpose(w, (2, 3, 1, 0)).reshape(16, cin, cout).astype(jnp.bfloat16)


def pack_conv_weights_im2col(w):
    # PyTorch Conv2d weight (Cout, Cin, 4, 4) -> (16*Cin, Cout) bf16, rows = (kh, kw, cin)
    cout, cin = w.shape[0], w.shape[1]
    return jnp.transpose(w, (2, 3, 1, 0)).reshape(16 * cin, cout).astype(jnp.bfloat16)


_DH_TO_RKH = {0: ((0, 3),), 1: ((0, 1), (1, 2)), 2: ((1, 0),)}   # offset -> (phase, k)


def pack_deconv_weights(w):
    """PyTorch ConvTranspose2d weight (Cin, Cout, 4, 4) -> (9, Cin, 4*Cout) bf16.

    Offset-grouped: entry dh*3+dw holds, for each output phase p = r*2+s, the tap weight
    w[:, :, kh, kw] whose (r, kh) matches row-offset dh and (s, kw) matches col-offset dw
    (zero where a phase has no tap at that offset).
    """
    cin, cout = w.shape[0], w.shape[1]
    wt = jnp.zeros((9, cin, 4 * cout), jnp.float32)
    for dh, rkhs in _DH_TO_RKH.items():
        for dw, skws in _DH_TO_RKH.items():
            o = dh * 3 + dw
            for r, kh in rkhs:
                for s, kw in skws:
                    p = r * 2 + s
                    wt = wt.at[o, :, p * cout:(p + 1) * cout].set(w[:, :, kh, kw])
    return wt.astype(jnp.bfloat16)


def prepare_params(p):
    """One-time (outside jit) re-packing of PyTorch-layout weights for the kernels."""
    prep = {}
    prep["c1_w"] = pack_conv_weights_im2col(p["c1_w"])
    prep["c1_b"] = p["c1_b"].reshape(1, -1).astype(jnp.float32)
    for name in ("c2", "c3", "c4"):
        prep[name + "_w"] = pack_conv_weights(p[name + "_w"])
        prep[name + "_b"] = p[name + "_b"].reshape(1, -1).astype(jnp.float32)
    for name in ("d1", "d2", "d3", "d4"):
        prep[name + "_w"] = pack_deconv_weights(p[name + "_w"])
        prep[name + "_b"] = p[name + "_b"].reshape(1, -1).astype(jnp.float32)
    # PyTorch flattens the encoder map in (C, H, W) order; permute the fc weights once so
    # the kernels can operate on NHWC-flattened activations directly.
    prep["fc1_w"] = (p["fc1_w"].reshape(Z_DIM, EM_C, EM_H, EM_W)
                     .transpose(2, 3, 1, 0).reshape(H_DIM, Z_DIM).astype(jnp.bfloat16))
    prep["fc1_b"] = p["fc1_b"].reshape(1, -1).astype(jnp.float32)
    prep["fc3_w"] = (p["fc3_w"].reshape(EM_C, EM_H, EM_W, Z_DIM)
                     .transpose(1, 2, 0, 3).reshape(H_DIM, Z_DIM).T.astype(jnp.bfloat16))
    prep["fc3_b"] = (p["fc3_b"].reshape(EM_C, EM_H, EM_W)
                     .transpose(1, 2, 0).reshape(1, H_DIM).astype(jnp.float32))
    prep["lstm_wih"] = p["lstm_wih"].astype(jnp.bfloat16)
    prep["lstm_whh"] = p["lstm_whh"].astype(jnp.bfloat16)
    for name in ("lstm_b", "h0", "c0"):
        prep[name] = p[name].astype(jnp.float32)
    return prep


# ----------------------------------------------------------------------------
# Full forward pass
# ----------------------------------------------------------------------------

def convlstm_forward(prep, x):
    """x: (B, T, 3, 42, 144) f32 -> (B, 3, 42, 144) f32."""
    # TODO(synk): crop_resize_center is external image preprocessing; inputs here are
    # assumed to already be (3, 42, 144), so it reduces to identity.
    b, t = x.shape[0], x.shape[1]
    xf = x.reshape(b * t, IM_C, IM_H, IM_W).transpose(0, 2, 3, 1)    # NCHW -> NHWC

    h = conv2d_s2_im2col(xf, prep["c1_w"], prep["c1_b"], relu=True)  # (B*T, 21, 72, 32)
    h = conv2d_s2(h, prep["c2_w"], prep["c2_b"], relu=True)          # (B*T, 10, 36, 64)
    g34 = _pick_group(b * t, 3)
    h = conv2d_s2(h, prep["c3_w"], prep["c3_b"], relu=True, group=g34)   # (B*T, 5, 18, 128)
    h = conv2d_s2(h, prep["c4_w"], prep["c4_b"], relu=True, group=g34)   # (B*T, 2, 9, 256)

    flat = h.reshape(b * t, H_DIM)                                   # bf16, NHWC order
    z = dense(flat, prep["fc1_w"], prep["fc1_b"], relu=False,
              out_dtype=jnp.float32)                                 # (B*T, Z)

    x_tm = z.reshape(b, t, Z_DIM).transpose(1, 0, 2)                 # (T, B, Z)
    h0 = jnp.broadcast_to(prep["h0"], (NUM_LAYERS, b, Z_DIM))
    c0 = jnp.broadcast_to(prep["c0"], (NUM_LAYERS, b, Z_DIM))
    last = lstm_last(x_tm, prep["lstm_wih"], prep["lstm_whh"],
                     prep["lstm_b"], h0, c0)                         # lstmout[:, -1, :]

    d = dense(last, prep["fc3_w"], prep["fc3_b"], relu=False,
              out_dtype=jnp.bfloat16, n_block=2304)                  # (B, 4608)
    d = d.reshape(b, EM_H, EM_W, EM_C)
    d = conv_transpose2d_s2(d, prep["d1_w"], prep["d1_b"], output_padding_h=1, relu=True)
    d = conv_transpose2d_s2(d, prep["d2_w"], prep["d2_b"], output_padding_h=0, relu=True)
    d = conv_transpose2d_s2(d, prep["d3_w"], prep["d3_b"], output_padding_h=1, relu=True)
    d = conv_transpose2d_s2(d, prep["d4_w"], prep["d4_b"], output_padding_h=0, relu=False,
                            out_dtype=jnp.float32)
    return d.transpose(0, 3, 1, 2)                                   # NHWC -> NCHW


# ----------------------------------------------------------------------------
# Self-check of the conv kernels against XLA references (loose bf16 tolerance)
# ----------------------------------------------------------------------------

def _ref_conv2d_s2(x, w, b):
    out = lax.conv_general_dilated(
        x, jnp.transpose(w, (2, 3, 1, 0)), window_strides=(2, 2),
        padding=((1, 1), (1, 1)), dimension_numbers=("NHWC", "HWIO", "NHWC"))
    return out + b.reshape(1, 1, 1, -1)


def _ref_conv_transpose2d_s2(x, w, b, oph):
    w_flip = jnp.flip(w, axis=(2, 3))
    out = lax.conv_general_dilated(
        x, jnp.transpose(w_flip, (2, 3, 0, 1)), window_strides=(1, 1),
        padding=((2, 2 + oph), (2, 2)), lhs_dilation=(2, 2),
        dimension_numbers=("NHWC", "HWIO", "NHWC"))
    return out + b.reshape(1, 1, 1, -1)


def _assert_close(got, want, name):
    got = got.astype(jnp.float32)
    assert got.shape == want.shape, (name, got.shape, want.shape)
    err = float(jnp.max(jnp.abs(got - want)))
    ref = float(jnp.max(jnp.abs(want)))
    tol = 3e-2 * ref + 2e-3
    assert err <= tol, f"{name}: max_abs_err={err:.4e} tol={tol:.4e}"


def _self_check(key):
    k1, k2, k3, k4, k5, k6, k7, k8 = jax.random.split(key, 8)

    xc = jax.random.normal(k1, (2, 21, 36, 8), jnp.float32)          # odd H, even W
    wc = 0.05 * jax.random.normal(k2, (16, 8, 4, 4), jnp.float32)
    bc = 0.05 * jax.random.normal(k3, (16,), jnp.float32)
    got = conv2d_s2(xc, pack_conv_weights(wc), bc.reshape(1, -1), relu=False,
                    out_dtype=jnp.float32, group=2)
    _assert_close(got, _ref_conv2d_s2(xc, wc, bc), "conv2d_s2")

    x1 = jax.random.normal(k7, (2, 21, 36, 3), jnp.float32)          # Cin=3 im2col path
    w1 = 0.05 * jax.random.normal(k8, (16, 3, 4, 4), jnp.float32)
    b1 = 0.05 * jax.random.normal(k3, (16,), jnp.float32)
    got = conv2d_s2_im2col(x1, pack_conv_weights_im2col(w1), b1.reshape(1, -1),
                           relu=False, out_dtype=jnp.float32)
    _assert_close(got, _ref_conv2d_s2(x1, w1, b1), "conv2d_s2_im2col")

    xd = jax.random.normal(k4, (2, 5, 18, 16), jnp.float32)
    wd = 0.05 * jax.random.normal(k5, (16, 8, 4, 4), jnp.float32)
    bd = 0.05 * jax.random.normal(k6, (8,), jnp.float32)
    got = conv_transpose2d_s2(xd, pack_deconv_weights(wd), bd.reshape(1, -1),
                              output_padding_h=1, relu=False, out_dtype=jnp.float32)
    _assert_close(got, _ref_conv_transpose2d_s2(xd, wd, bd, 1), "conv_transpose2d_s2")


if __name__ == "__main__":
    B, T = 2, 3
    root = jax.random.PRNGKey(0)
    k_params, k_x, k_chk = jax.random.split(root, 3)

    _self_check(k_chk)                         # validates the Pallas conv kernels

    params = init_params(k_params)
    prep = prepare_params(params)              # one-time weight packing, outside jit
    x = jax.random.normal(k_x, (B, T, IM_C, IM_H, IM_W), dtype=jnp.float32)

    fwd = jax.jit(convlstm_forward)
    out = jax.block_until_ready(fwd(prep, x))

    assert out.shape == (B, IM_C, IM_H, IM_W), out.shape
    assert bool(jnp.all(jnp.isfinite(out)))
    print("KERNEL_OK")
</pallas_src>

<mosaic_0001>
module attributes {stable_mosaic.version = 11 : i64} {
  func.func @_tap_conv_kernel(%arg0: i32, %arg1: memref<2x912x8xbf16, #tpu.memory_space<vmem>>, %arg2: memref<16x8x16xbf16, #tpu.memory_space<vmem>>, %arg3: memref<1x16xf32, #tpu.memory_space<vmem>>, %arg4: memref<2x192x16xf32, #tpu.memory_space<vmem>>) attributes {dimension_semantics = [#tpu.dimension_semantics<parallel>], iteration_bounds = array<i64: 1>, scalar_prefetch = 0 : i64, scratch_operands = 0 : i64, tpu.core_type = #tpu.core_type<tc>, window_params = [{transform_indices = @transform_0, window_bounds = array<i64: 2, 912, 8>}, {pipeline_mode = #tpu.pipeline_mode<synchronous>, transform_indices = @transform_1, window_bounds = array<i64: 16, 8, 16>}, {pipeline_mode = #tpu.pipeline_mode<synchronous>, transform_indices = @transform_2, window_bounds = array<i64: 1, 16>}, {transform_indices = @transform_3, window_bounds = array<i64: 2, 192, 16>}]} {
    %c0 = arith.constant 0 : index
    %c0_0 = arith.constant 0 : index
    %c0_1 = arith.constant 0 : index
    %0 = vector.load %arg1[%c0, %c0_0, %c0_1] : memref<2x912x8xbf16, #tpu.memory_space<vmem>>, vector<1x192x8xbf16>
    %1 = vector.shape_cast %0 : vector<1x192x8xbf16> to vector<192x8xbf16>
    %c0_2 = arith.constant 0 : index
    %c0_3 = arith.constant 0 : index
    %c0_4 = arith.constant 0 : index
    %2 = vector.load %arg2[%c0_2, %c0_3, %c0_4] : memref<16x8x16xbf16, #tpu.memory_space<vmem>>, vector<1x8x16xbf16>
    %3 = vector.shape_cast %2 : vector<1x8x16xbf16> to vector<8x16xbf16>
    %cst = arith.constant dense<0.000000e+00> : vector<192x16xf32>
    %4 = tpu.matmul %1, %3, %cst {dimension_numbers = #tpu.dot_dimension_numbers<[1], [0], [0], [1], [0, 0, 1, 1], [], []>} : vector<192x8xbf16>, vector<8x16xbf16>, vector<192x16xf32> -> vector<192x16xf32>
    %c0_5 = arith.constant 0 : index
    %c0_6 = arith.constant 0 : index
    %5 = vector.load %arg3[%c0_5, %c0_6] : memref<1x16xf32, #tpu.memory_space<vmem>>, vector<1x16xf32>
    %6 = vector.broadcast %5 : vector<1x16xf32> to vector<192x16xf32>
    %7 = arith.addf %4, %6 : vector<192x16xf32>
    %c0_7 = arith.constant 0 : index
    %c228 = arith.constant 228 : index
    %c0_8 = arith.constant 0 : index
    %8 = vector.load %arg1[%c0_7, %c228, %c0_8] : memref<2x912x8xbf16, #tpu.memory_space<vmem>>, vector<1x192x8xbf16>
    %9 = vector.shape_cast %8 : vector<1x192x8xbf16> to vector<192x8xbf16>
    %c1 = arith.constant 1 : index
    %c0_9 = arith.constant 0 : index
    %c0_10 = arith.constant 0 : index
    %10 = vector.load %arg2[%c1, %c0_9, %c0_10] : memref<16x8x16xbf16, #tpu.memory_space<vmem>>, vector<1x8x16xbf16>
    %11 = vector.shape_cast %10 : vector<1x8x16xbf16> to vector<8x16xbf16>
    %cst_11 = arith.constant dense<0.000000e+00> : vector<192x16xf32>
    %12 = tpu.matmul %9, %11, %cst_11 {dimension_numbers = #tpu.dot_dimension_numbers<[1], [0], [0], [1], [0, 0, 1, 1], [], []>} : vector<192x8xbf16>, vector<8x16xbf16>, vector<192x16xf32> -> vector<192x16xf32>
    %13 = arith.addf %7, %12 : vector<192x16xf32>
    %c0_12 = arith.constant 0 : index
    %c1_13 = arith.constant 1 : index
    %c0_14 = arith.constant 0 : index
    %14 = vector.load %arg1[%c0_12, %c1_13, %c0_14] : memref<2x912x8xbf16, #tpu.memory_space<vmem>>, vector<1x192x8xbf16>
    %15 = vector.shape_cast %14 : vector<1x192x8xbf16> to vector<192x8xbf16>
    %c2 = arith.constant 2 : index
    %c0_15 = arith.constant 0 : index
    %c0_16 = arith.constant 0 : index
    %16 = vector.load %arg2[%c2, %c0_15, %c0_16] : memref<16x8x16xbf16, #tpu.memory_space<vmem>>, vector<1x8x16xbf16>
    %17 = vector.shape_cast %16 : vector<1x8x16xbf16> to vector<8x16xbf16>
    %cst_17 = arith.constant dense<0.000000e+00> : vector<192x16xf32>
    %18 = tpu.matmul %15, %17, %cst_17 {dimension_numbers = #tpu.dot_dimension_numbers<[1], [0], [0], [1], [0, 0, 1, 1], [], []>} : vector<192x8xbf16>, vector<8x16xbf16>, vector<192x16xf32> -> vector<192x16xf32>
    %19 = arith.addf %13, %18 : vector<192x16xf32>
    %c0_18 = arith.constant 0 : index
    %c229 = arith.constant 229 : index
    %c0_19 = arith.constant 0 : index
    %20 = vector.load %arg1[%c0_18, %c229, %c0_19] : memref<2x912x8xbf16, #tpu.memory_space<vmem>>, vector<1x192x8xbf16>
    %21 = vector.shape_cast %20 : vector<1x192x8xbf16> to vector<192x8xbf16>
    %c3 = arith.constant 3 : index
    %c0_20 = arith.constant 0 : index
    %c0_21 = arith.constant 0 : index
    %22 = vector.load %arg2[%c3, %c0_20, %c0_21] : memref<16x8x16xbf16, #tpu.memory_space<vmem>>, vector<1x8x16xbf16>
    %23 = vector.shape_cast %22 : vector<1x8x16xbf16> to vector<8x16xbf16>
    %cst_22 = arith.constant dense<0.000000e+00> : vector<192x16xf32>
    %24 = tpu.matmul %21, %23, %cst_22 {dimension_numbers = #tpu.dot_dimension_numbers<[1], [0], [0], [1], [0, 0, 1, 1], [], []>} : vector<192x8xbf16>, vector<8x16xbf16>, vector<192x16xf32> -> vector<192x16xf32>
    %25 = arith.addf %19, %24 : vector<192x16xf32>
    %c0_23 = arith.constant 0 : index
    %c456 = arith.constant 456 : index
    %c0_24 = arith.constant 0 : index
    %26 = vector.load %arg1[%c0_23, %c456, %c0_24] : memref<2x912x8xbf16, #tpu.memory_space<vmem>>, vector<1x192x8xbf16>
    %27 = vector.shape_cast %26 : vector<1x192x8xbf16> to vector<192x8xbf16>
    %c4 = arith.constant 4 : index
    %c0_25 = arith.constant 0 : index
    %c0_26 = arith.constant 0 : index
    %28 = vector.load %arg2[%c4, %c0_25, %c0_26] : memref<16x8x16xbf16, #tpu.memory_space<vmem>>, vector<1x8x16xbf16>
    %29 = vector.shape_cast %28 : vector<1x8x16xbf16> to vector<8x16xbf16>
    %cst_27 = arith.constant dense<0.000000e+00> : vector<192x16xf32>
    %30 = tpu.matmul %27, %29, %cst_27 {dimension_numbers = #tpu.dot_dimension_numbers<[1], [0], [0], [1], [0, 0, 1, 1], [], []>} : vector<192x8xbf16>, vector<8x16xbf16>, vector<192x16xf32> -> vector<192x16xf32>
    %31 = arith.addf %25, %30 : vector<192x16xf32>
    %c0_28 = arith.constant 0 : index
    %c684 = arith.constant 684 : index
    %c0_29 = arith.constant 0 : index
    %32 = vector.load %arg1[%c0_28, %c684, %c0_29] : memref<2x912x8xbf16, #tpu.memory_space<vmem>>, vector<1x192x8xbf16>
    %33 = vector.shape_cast %32 : vector<1x192x8xbf16> to vector<192x8xbf16>
    %c5 = arith.constant 5 : index
    %c0_30 = arith.constant 0 : index
    %c0_31 = arith.constant 0 : index
    %34 = vector.load %arg2[%c5, %c0_30, %c0_31] : memref<16x8x16xbf16, #tpu.memory_space<vmem>>, vector<1x8x16xbf16>
    %35 = vector.shape_cast %34 : vector<1x8x16xbf16> to vector<8x16xbf16>
    %cst_32 = arith.constant dense<0.000000e+00> : vector<192x16xf32>
    %36 = tpu.matmul %33, %35, %cst_32 {dimension_numbers = #tpu.dot_dimension_numbers<[1], [0], [0], [1], [0, 0, 1, 1], [], []>} : vector<192x8xbf16>, vector<8x16xbf16>, vector<192x16xf32> -> vector<192x16xf32>
    %37 = arith.addf %31, %36 : vector<192x16xf32>
    %c0_33 = arith.constant 0 : index
    %c457 = arith.constant 457 : index
    %c0_34 = arith.constant 0 : index
    %38 = vector.load %arg1[%c0_33, %c457, %c0_34] : memref<2x912x8xbf16, #tpu.memory_space<vmem>>, vector<1x192x8xbf16>
    %39 = vector.shape_cast %38 : vector<1x192x8xbf16> to vector<192x8xbf16>
    %c6 = arith.constant 6 : index
    %c0_35 = arith.constant 0 : index
    %c0_36 = arith.constant 0 : index
    %40 = vector.load %arg2[%c6, %c0_35, %c0_36] : memref<16x8x16xbf16, #tpu.memory_space<vmem>>, vector<1x8x16xbf16>
    %41 = vector.shape_cast %40 : vector<1x8x16xbf16> to vector<8x16xbf16>
    %cst_37 = arith.constant dense<0.000000e+00> : vector<192x16xf32>
    %42 = tpu.matmul %39, %41, %cst_37 {dimension_numbers = #tpu.dot_dimension_numbers<[1], [0], [0], [1], [0, 0, 1, 1], [], []>} : vector<192x8xbf16>, vector<8x16xbf16>, vector<192x16xf32> -> vector<192x16xf32>
    %43 = arith.addf %37, %42 : vector<192x16xf32>
    %c0_38 = arith.constant 0 : index
    %c685 = arith.constant 685 : index
    %c0_39 = arith.constant 0 : index
    %44 = vector.load %arg1[%c0_38, %c685, %c0_39] : memref<2x912x8xbf16, #tpu.memory_space<vmem>>, vector<1x192x8xbf16>
    %45 = vector.shape_cast %44 : vector<1x192x8xbf16> to vector<192x8xbf16>
    %c7 = arith.constant 7 : index
    %c0_40 = arith.constant 0 : index
    %c0_41 = arith.constant 0 : index
    %46 = vector.load %arg2[%c7, %c0_40, %c0_41] : memref<16x8x16xbf16, #tpu.memory_space<vmem>>, vector<1x8x16xbf16>
    %47 = vector.shape_cast %46 : vector<1x8x16xbf16> to vector<8x16xbf16>
    %cst_42 = arith.constant dense<0.000000e+00> : vector<192x16xf32>
    %48 = tpu.matmul %45, %47, %cst_42 {dimension_numbers = #tpu.dot_dimension_numbers<[1], [0], [0], [1], [0, 0, 1, 1], [], []>} : vector<192x8xbf16>, vector<8x16xbf16>, vector<192x16xf32> -> vector<192x16xf32>
    %49 = arith.addf %43, %48 : vector<192x16xf32>
    %c0_43 = arith.constant 0 : index
    %c19 = arith.constant 19 : index
    %c0_44 = arith.constant 0 : index
    %50 = vector.load %arg1[%c0_43, %c19, %c0_44] : memref<2x912x8xbf16, #tpu.memory_space<vmem>>, vector<1x192x8xbf16>
    %51 = vector.shape_cast %50 : vector<1x192x8xbf16> to vector<192x8xbf16>
    %c8 = arith.constant 8 : index
    %c0_45 = arith.constant 0 : index
    %c0_46 = arith.constant 0 : index
    %52 = vector.load %arg2[%c8, %c0_45, %c0_46] : memref<16x8x16xbf16, #tpu.memory_space<vmem>>, vector<1x8x16xbf16>
    %53 = vector.shape_cast %52 : vector<1x8x16xbf16> to vector<8x16xbf16>
    %cst_47 = arith.constant dense<0.000000e+00> : vector<192x16xf32>
    %54 = tpu.matmul %51, %53, %cst_47 {dimension_numbers = #tpu.dot_dimension_numbers<[1], [0], [0], [1], [0, 0, 1, 1], [], []>} : vector<192x8xbf16>, vector<8x16xbf16>, vector<192x16xf32> -> vector<192x16xf32>
    %55 = arith.addf %49, %54 : vector<192x16xf32>
    %c0_48 = arith.constant 0 : index
    %c247 = arith.constant 247 : index
    %c0_49 = arith.constant 0 : index
    %56 = vector.load %arg1[%c0_48, %c247, %c0_49] : memref<2x912x8xbf16, #tpu.memory_space<vmem>>, vector<1x192x8xbf16>
    %57 = vector.shape_cast %56 : vector<1x192x8xbf16> to vector<192x8xbf16>
    %c9 = arith.constant 9 : index
    %c0_50 = arith.constant 0 : index
    %c0_51 = arith.constant 0 : index
    %58 = vector.load %arg2[%c9, %c0_50, %c0_51] : memref<16x8x16xbf16, #tpu.memory_space<vmem>>, vector<1x8x16xbf16>
    %59 = vector.shape_cast %58 : vector<1x8x16xbf16> to vector<8x16xbf16>
    %cst_52 = arith.constant dense<0.000000e+00> : vector<192x16xf32>
    %60 = tpu.matmul %57, %59, %cst_52 {dimension_numbers = #tpu.dot_dimension_numbers<[1], [0], [0], [1], [0, 0, 1, 1], [], []>} : vector<192x8xbf16>, vector<8x16xbf16>, vector<192x16xf32> -> vector<192x16xf32>
    %61 = arith.addf %55, %60 : vector<192x16xf32>
    %c0_53 = arith.constant 0 : index
    %c20 = arith.constant 20 : index
    %c0_54 = arith.constant 0 : index
    %62 = vector.load %arg1[%c0_53, %c20, %c0_54] : memref<2x912x8xbf16, #tpu.memory_space<vmem>>, vector<1x192x8xbf16>
    %63 = vector.shape_cast %62 : vector<1x192x8xbf16> to vector<192x8xbf16>
    %c10 = arith.constant 10 : index
    %c0_55 = arith.constant 0 : index
    %c0_56 = arith.constant 0 : index
    %64 = vector.load %arg2[%c10, %c0_55, %c0_56] : memref<16x8x16xbf16, #tpu.memory_space<vmem>>, vector<1x8x16xbf16>
    %65 = vector.shape_cast %64 : vector<1x8x16xbf16> to vector<8x16xbf16>
    %cst_57 = arith.constant dense<0.000000e+00> : vector<192x16xf32>
    %66 = tpu.matmul %63, %65, %cst_57 {dimension_numbers = #tpu.dot_dimension_numbers<[1], [0], [0], [1], [0, 0, 1, 1], [], []>} : vector<192x8xbf16>, vector<8x16xbf16>, vector<192x16xf32> -> vector<192x16xf32>
    %67 = arith.addf %61, %66 : vector<192x16xf32>
    %c0_58 = arith.constant 0 : index
    %c248 = arith.constant 248 : index
    %c0_59 = arith.constant 0 : index
    %68 = vector.load %arg1[%c0_58, %c248, %c0_59] : memref<2x912x8xbf16, #tpu.memory_space<vmem>>, vector<1x192x8xbf16>
    %69 = vector.shape_cast %68 : vector<1x192x8xbf16> to vector<192x8xbf16>
    %c11 = arith.constant 11 : index
    %c0_60 = arith.constant 0 : index
    %c0_61 = arith.constant 0 : index
    %70 = vector.load %arg2[%c11, %c0_60, %c0_61] : memref<16x8x16xbf16, #tpu.memory_space<vmem>>, vector<1x8x16xbf16>
    %71 = vector.shape_cast %70 : vector<1x8x16xbf16> to vector<8x16xbf16>
    %cst_62 = arith.constant dense<0.000000e+00> : vector<192x16xf32>
    %72 = tpu.matmul %69, %71, %cst_62 {dimension_numbers = #tpu.dot_dimension_numbers<[1], [0], [0], [1], [0, 0, 1, 1], [], []>} : vector<192x8xbf16>, vector<8x16xbf16>, vector<192x16xf32> -> vector<192x16xf32>
    %73 = arith.addf %67, %72 : vector<192x16xf32>
    %c0_63 = arith.constant 0 : index
    %c475 = arith.constant 475 : index
    %c0_64 = arith.constant 0 : index
    %74 = vector.load %arg1[%c0_63, %c475, %c0_64] : memref<2x912x8xbf16, #tpu.memory_space<vmem>>, vector<1x192x8xbf16>
    %75 = vector.shape_cast %74 : vector<1x192x8xbf16> to vector<192x8xbf16>
    %c12 = arith.constant 12 : index
    %c0_65 = arith.constant 0 : index
    %c0_66 = arith.constant 0 : index
    %76 = vector.load %arg2[%c12, %c0_65, %c0_66] : memref<16x8x16xbf16, #tpu.memory_space<vmem>>, vector<1x8x16xbf16>
    %77 = vector.shape_cast %76 : vector<1x8x16xbf16> to vector<8x16xbf16>
    %cst_67 = arith.constant dense<0.000000e+00> : vector<192x16xf32>
    %78 = tpu.matmul %75, %77, %cst_67 {dimension_numbers = #tpu.dot_dimension_numbers<[1], [0], [0], [1], [0, 0, 1, 1], [], []>} : vector<192x8xbf16>, vector<8x16xbf16>, vector<192x16xf32> -> vector<192x16xf32>
    %79 = arith.addf %73, %78 : vector<192x16xf32>
    %c0_68 = arith.constant 0 : index
    %c703 = arith.constant 703 : index
    %c0_69 = arith.constant 0 : index
    %80 = vector.load %arg1[%c0_68, %c703, %c0_69] : memref<2x912x8xbf16, #tpu.memory_space<vmem>>, vector<1x192x8xbf16>
    %81 = vector.shape_cast %80 : vector<1x192x8xbf16> to vector<192x8xbf16>
    %c13 = arith.constant 13 : index
    %c0_70 = arith.constant 0 : index
    %c0_71 = arith.constant 0 : index
    %82 = vector.load %arg2[%c13, %c0_70, %c0_71] : memref<16x8x16xbf16, #tpu.memory_space<vmem>>, vector<1x8x16xbf16>
    %83 = vector.shape_cast %82 : vector<1x8x16xbf16> to vector<8x16xbf16>
    %cst_72 = arith.constant dense<0.000000e+00> : vector<192x16xf32>
    %84 = tpu.matmul %81, %83, %cst_72 {dimension_numbers = #tpu.dot_dimension_numbers<[1], [0], [0], [1], [0, 0, 1, 1], [], []>} : vector<192x8xbf16>, vector<8x16xbf16>, vector<192x16xf32> -> vector<192x16xf32>
    %85 = arith.addf %79, %84 : vector<192x16xf32>
    %c0_73 = arith.constant 0 : index
    %c476 = arith.constant 476 : index
    %c0_74 = arith.constant 0 : index
    %86 = vector.load %arg1[%c0_73, %c476, %c0_74] : memref<2x912x8xbf16, #tpu.memory_space<vmem>>, vector<1x192x8xbf16>
    %87 = vector.shape_cast %86 : vector<1x192x8xbf16> to vector<192x8xbf16>
    %c14 = arith.constant 14 : index
    %c0_75 = arith.constant 0 : index
    %c0_76 = arith.constant 0 : index
    %88 = vector.load %arg2[%c14, %c0_75, %c0_76] : memref<16x8x16xbf16, #tpu.memory_space<vmem>>, vector<1x8x16xbf16>
    %89 = vector.shape_cast %88 : vector<1x8x16xbf16> to vector<8x16xbf16>
    %cst_77 = arith.constant dense<0.000000e+00> : vector<192x16xf32>
    %90 = tpu.matmul %87, %89, %cst_77 {dimension_numbers = #tpu.dot_dimension_numbers<[1], [0], [0], [1], [0, 0, 1, 1], [], []>} : vector<192x8xbf16>, vector<8x16xbf16>, vector<192x16xf32> -> vector<192x16xf32>
    %91 = arith.addf %85, %90 : vector<192x16xf32>
    %c0_78 = arith.constant 0 : index
    %c704 = arith.constant 704 : index
    %c0_79 = arith.constant 0 : index
    %92 = vector.load %arg1[%c0_78, %c704, %c0_79] : memref<2x912x8xbf16, #tpu.memory_space<vmem>>, vector<1x192x8xbf16>
    %93 = vector.shape_cast %92 : vector<1x192x8xbf16> to vector<192x8xbf16>
    %c15 = arith.constant 15 : index
    %c0_80 = arith.constant 0 : index
    %c0_81 = arith.constant 0 : index
    %94 = vector.load %arg2[%c15, %c0_80, %c0_81] : memref<16x8x16xbf16, #tpu.memory_space<vmem>>, vector<1x8x16xbf16>
    %95 = vector.shape_cast %94 : vector<1x8x16xbf16> to vector<8x16xbf16>
    %cst_82 = arith.constant dense<0.000000e+00> : vector<192x16xf32>
    %96 = tpu.matmul %93, %95, %cst_82 {dimension_numbers = #tpu.dot_dimension_numbers<[1], [0], [0], [1], [0, 0, 1, 1], [], []>} : vector<192x8xbf16>, vector<8x16xbf16>, vector<192x16xf32> -> vector<192x16xf32>
    %97 = arith.addf %91, %96 : vector<192x16xf32>
    %c0_83 = arith.constant 0 : index
    %c0_84 = arith.constant 0 : index
    %c0_85 = arith.constant 0 : index
    %98 = vector.load %arg4[%c0_83, %c0_84, %c0_85] : memref<2x192x16xf32, #tpu.memory_space<vmem>>, vector<1x192x16xf32>
    %99 = vector.shape_cast %98 : vector<1x192x16xf32> to vector<192x16xf32>
    %100 = vector.shape_cast %97 : vector<192x16xf32> to vector<1x192x16xf32>
    tpu.vector_store %arg4[%c0_83, %c0_84, %c0_85], %100 {strides = array<i32>} : memref<2x192x16xf32, #tpu.memory_space<vmem>>, vector<1x192x16xf32>,
    %c1_86 = arith.constant 1 : index
    %c0_87 = arith.constant 0 : index
    %c0_88 = arith.constant 0 : index
    %101 = vector.load %arg1[%c1_86, %c0_87, %c0_88] : memref<2x912x8xbf16, #tpu.memory_space<vmem>>, vector<1x192x8xbf16>
    %102 = vector.shape_cast %101 : vector<1x192x8xbf16> to vector<192x8xbf16>
    %c0_89 = arith.constant 0 : index
    %c0_90 = arith.constant 0 : index
    %c0_91 = arith.constant 0 : index
    %103 = vector.load %arg2[%c0_89, %c0_90, %c0_91] : memref<16x8x16xbf16, #tpu.memory_space<vmem>>, vector<1x8x16xbf16>
    %104 = vector.shape_cast %103 : vector<1x8x16xbf16> to vector<8x16xbf16>
    %cst_92 = arith.constant dense<0.000000e+00> : vector<192x16xf32>
    %105 = tpu.matmul %102, %104, %cst_92 {dimension_numbers = #tpu.dot_dimension_numbers<[1], [0], [0], [1], [0, 0, 1, 1], [], []>} : vector<192x8xbf16>, vector<8x16xbf16>, vector<192x16xf32> -> vector<192x16xf32>
    %c0_93 = arith.constant 0 : index
    %c0_94 = arith.constant 0 : index
    %106 = vector.load %arg3[%c0_93, %c0_94] : memref<1x16xf32, #tpu.memory_space<vmem>>, vector<1x16xf32>
    %107 = vector.broadcast %106 : vector<1x16xf32> to vector<192x16xf32>
    %108 = arith.addf %105, %107 : vector<192x16xf32>
    %c1_95 = arith.constant 1 : index
    %c228_96 = arith.constant 228 : index
    %c0_97 = arith.constant 0 : index
    %109 = vector.load %arg1[%c1_95, %c228_96, %c0_97] : memref<2x912x8xbf16, #tpu.memory_space<vmem>>, vector<1x192x8xbf16>
    %110 = vector.shape_cast %109 : vector<1x192x8xbf16> to vector<192x8xbf16>
    %c1_98 = arith.constant 1 : index
    %c0_99 = arith.constant 0 : index
    %c0_100 = arith.constant 0 : index
    %111 = vector.load %arg2[%c1_98, %c0_99, %c0_100] : memref<16x8x16xbf16, #tpu.memory_space<vmem>>, vector<1x8x16xbf16>
    %112 = vector.shape_cast %111 : vector<1x8x16xbf16> to vector<8x16xbf16>
    %cst_101 = arith.constant dense<0.000000e+00> : vector<192x16xf32>
    %113 = tpu.matmul %110, %112, %cst_101 {dimension_numbers = #tpu.dot_dimension_numbers<[1], [0], [0], [1], [0, 0, 1, 1], [], []>} : vector<192x8xbf16>, vector<8x16xbf16>, vector<192x16xf32> -> vector<192x16xf32>
    %114 = arith.addf %108, %113 : vector<192x16xf32>
    %c1_102 = arith.constant 1 : index
    %c1_103 = arith.constant 1 : index
    %c0_104 = arith.constant 0 : index
    %115 = vector.load %arg1[%c1_102, %c1_103, %c0_104] : memref<2x912x8xbf16, #tpu.memory_space<vmem>>, vector<1x192x8xbf16>
    %116 = vector.shape_cast %115 : vector<1x192x8xbf16> to vector<192x8xbf16>
    %c2_105 = arith.constant 2 : index
    %c0_106 = arith.constant 0 : index
    %c0_107 = arith.constant 0 : index
    %117 = vector.load %arg2[%c2_105, %c0_106, %c0_107] : memref<16x8x16xbf16, #tpu.memory_space<vmem>>, vector<1x8x16xbf16>
    %118 = vector.shape_cast %117 : vector<1x8x16xbf16> to vector<8x16xbf16>
    %cst_108 = arith.constant dense<0.000000e+00> : vector<192x16xf32>
    %119 = tpu.matmul %116, %118, %cst_108 {dimension_numbers = #tpu.dot_dimension_numbers<[1], [0], [0], [1], [0, 0, 1, 1], [], []>} : vector<192x8xbf16>, vector<8x16xbf16>, vector<192x16xf32> -> vector<192x16xf32>
    %120 = arith.addf %114, %119 : vector<192x16xf32>
    %c1_109 = arith.constant 1 : index
    %c229_110 = arith.constant 229 : index
    %c0_111 = arith.constant 0 : index
    %121 = vector.load %arg1[%c1_109, %c229_110, %c0_111] : memref<2x912x8xbf16, #tpu.memory_space<vmem>>, vector<1x192x8xbf16>
    %122 = vector.shape_cast %121 : vector<1x192x8xbf16> to vector<192x8xbf16>
    %c3_112 = arith.constant 3 : index
    %c0_113 = arith.constant 0 : index
    %c0_114 = arith.constant 0 : index
    %123 = vector.load %arg2[%c3_112, %c0_113, %c0_114] : memref<16x8x16xbf16, #tpu.memory_space<vmem>>, vector<1x8x16xbf16>
    %124 = vector.shape_cast %123 : vector<1x8x16xbf16> to vector<8x16xbf16>
    %cst_115 = arith.constant dense<0.000000e+00> : vector<192x16xf32>
    %125 = tpu.matmul %122, %124, %cst_115 {dimension_numbers = #tpu.dot_dimension_numbers<[1], [0], [0], [1], [0, 0, 1, 1], [], []>} : vector<192x8xbf16>, vector<8x16xbf16>, vector<192x16xf32> -> vector<192x16xf32>
    %126 = arith.addf %120, %125 : vector<192x16xf32>
    %c1_116 = arith.constant 1 : index
    %c456_117 = arith.constant 456 : index
    %c0_118 = arith.constant 0 : index
    %127 = vector.load %arg1[%c1_116, %c456_117, %c0_118] : memref<2x912x8xbf16, #tpu.memory_space<vmem>>, vector<1x192x8xbf16>
    %128 = vector.shape_cast %127 : vector<1x192x8xbf16> to vector<192x8xbf16>
    %c4_119 = arith.constant 4 : index
    %c0_120 = arith.constant 0 : index
    %c0_121 = arith.constant 0 : index
    %129 = vector.load %arg2[%c4_119, %c0_120, %c0_121] : memref<16x8x16xbf16, #tpu.memory_space<vmem>>, vector<1x8x16xbf16>
    %130 = vector.shape_cast %129 : vector<1x8x16xbf16> to vector<8x16xbf16>
    %cst_122 = arith.constant dense<0.000000e+00> : vector<192x16xf32>
    %131 = tpu.matmul %128, %130, %cst_122 {dimension_numbers = #tpu.dot_dimension_numbers<[1], [0], [0], [1], [0, 0, 1, 1], [], []>} : vector<192x8xbf16>, vector<8x16xbf16>, vector<192x16xf32> -> vector<192x16xf32>
    %132 = arith.addf %126, %131 : vector<192x16xf32>
    %c1_123 = arith.constant 1 : index
    %c684_124 = arith.constant 684 : index
    %c0_125 = arith.constant 0 : index
    %133 = vector.load %arg1[%c1_123, %c684_124, %c0_125] : memref<2x912x8xbf16, #tpu.memory_space<vmem>>, vector<1x192x8xbf16>
    %134 = vector.shape_cast %133 : vector<1x192x8xbf16> to vector<192x8xbf16>
    %c5_126 = arith.constant 5 : index
    %c0_127 = arith.constant 0 : index
    %c0_128 = arith.constant 0 : index
    %135 = vector.load %arg2[%c5_126, %c0_127, %c0_128] : memref<16x8x16xbf16, #tpu.memory_space<vmem>>, vector<1x8x16xbf16>
    %136 = vector.shape_cast %135 : vector<1x8x16xbf16> to vector<8x16xbf16>
    %cst_129 = arith.constant dense<0.000000e+00> : vector<192x16xf32>
    %137 = tpu.matmul %134, %136, %cst_129 {dimension_numbers = #tpu.dot_dimension_numbers<[1], [0], [0], [1], [0, 0, 1, 1], [], []>} : vector<192x8xbf16>, vector<8x16xbf16>, vector<192x16xf32> -> vector<192x16xf32>
    %138 = arith.addf %132, %137 : vector<192x16xf32>
    %c1_130 = arith.constant 1 : index
    %c457_131 = arith.constant 457 : index
    %c0_132 = arith.constant 0 : index
    %139 = vector.load %arg1[%c1_130, %c457_131, %c0_132] : memref<2x912x8xbf16, #tpu.memory_space<vmem>>, vector<1x192x8xbf16>
    %140 = vector.shape_cast %139 : vector<1x192x8xbf16> to vector<192x8xbf16>
    %c6_133 = arith.constant 6 : index
    %c0_134 = arith.constant 0 : index
    %c0_135 = arith.constant 0 : index
    %141 = vector.load %arg2[%c6_133, %c0_134, %c0_135] : memref<16x8x16xbf16, #tpu.memory_space<vmem>>, vector<1x8x16xbf16>
    %142 = vector.shape_cast %141 : vector<1x8x16xbf16> to vector<8x16xbf16>
    %cst_136 = arith.constant dense<0.000000e+00> : vector<192x16xf32>
    %143 = tpu.matmul %140, %142, %cst_136 {dimension_numbers = #tpu.dot_dimension_numbers<[1], [0], [0], [1], [0, 0, 1, 1], [], []>} : vector<192x8xbf16>, vector<8x16xbf16>, vector<192x16xf32> -> vector<192x16xf32>
    %144 = arith.addf %138, %143 : vector<192x16xf32>
    %c1_137 = arith.constant 1 : index
    %c685_138 = arith.constant 685 : index
    %c0_139 = arith.constant 0 : index
    %145 = vector.load %arg1[%c1_137, %c685_138, %c0_139] : memref<2x912x8xbf16, #tpu.memory_space<vmem>>, vector<1x192x8xbf16>
    %146 = vector.shape_cast %145 : vector<1x192x8xbf16> to vector<192x8xbf16>
    %c7_140 = arith.constant 7 : index
    %c0_141 = arith.constant 0 : index
    %c0_142 = arith.constant 0 : index
    %147 = vector.load %arg2[%c7_140, %c0_141, %c0_142] : memref<16x8x16xbf16, #tpu.memory_space<vmem>>, vector<1x8x16xbf16>
    %148 = vector.shape_cast %147 : vector<1x8x16xbf16> to vector<8x16xbf16>
    %cst_143 = arith.constant dense<0.000000e+00> : vector<192x16xf32>
    %149 = tpu.matmul %146, %148, %cst_143 {dimension_numbers = #tpu.dot_dimension_numbers<[1], [0], [0], [1], [0, 0, 1, 1], [], []>} : vector<192x8xbf16>, vector<8x16xbf16>, vector<192x16xf32> -> vector<192x16xf32>
    %150 = arith.addf %144, %149 : vector<192x16xf32>
    %c1_144 = arith.constant 1 : index
    %c19_145 = arith.constant 19 : index
    %c0_146 = arith.constant 0 : index
    %151 = vector.load %arg1[%c1_144, %c19_145, %c0_146] : memref<2x912x8xbf16, #tpu.memory_space<vmem>>, vector<1x192x8xbf16>
    %152 = vector.shape_cast %151 : vector<1x192x8xbf16> to vector<192x8xbf16>
    %c8_147 = arith.constant 8 : index
    %c0_148 = arith.constant 0 : index
    %c0_149 = arith.constant 0 : index
    %153 = vector.load %arg2[%c8_147, %c0_148, %c0_149] : memref<16x8x16xbf16, #tpu.memory_space<vmem>>, vector<1x8x16xbf16>
    %154 = vector.shape_cast %153 : vector<1x8x16xbf16> to vector<8x16xbf16>
    %cst_150 = arith.constant dense<0.000000e+00> : vector<192x16xf32>
    %155 = tpu.matmul %152, %154, %cst_150 {dimension_numbers = #tpu.dot_dimension_numbers<[1], [0], [0], [1], [0, 0, 1, 1], [], []>} : vector<192x8xbf16>, vector<8x16xbf16>, vector<192x16xf32> -> vector<192x16xf32>
    %156 = arith.addf %150, %155 : vector<192x16xf32>
    %c1_151 = arith.constant 1 : index
    %c247_152 = arith.constant 247 : index
    %c0_153 = arith.constant 0 : index
    %157 = vector.load %arg1[%c1_151, %c247_152, %c0_153] : memref<2x912x8xbf16, #tpu.memory_space<vmem>>, vector<1x192x8xbf16>
    %158 = vector.shape_cast %157 : vector<1x192x8xbf16> to vector<192x8xbf16>
    %c9_154 = arith.constant 9 : index
    %c0_155 = arith.constant 0 : index
    %c0_156 = arith.constant 0 : index
    %159 = vector.load %arg2[%c9_154, %c0_155, %c0_156] : memref<16x8x16xbf16, #tpu.memory_space<vmem>>, vector<1x8x16xbf16>
    %160 = vector.shape_cast %159 : vector<1x8x16xbf16> to vector<8x16xbf16>
    %cst_157 = arith.constant dense<0.000000e+00> : vector<192x16xf32>
    %161 = tpu.matmul %158, %160, %cst_157 {dimension_numbers = #tpu.dot_dimension_numbers<[1], [0], [0], [1], [0, 0, 1, 1], [], []>} : vector<192x8xbf16>, vector<8x16xbf16>, vector<192x16xf32> -> vector<192x16xf32>
    %162 = arith.addf %156, %161 : vector<192x16xf32>
    %c1_158 = arith.constant 1 : index
    %c20_159 = arith.constant 20 : index
    %c0_160 = arith.constant 0 : index
    %163 = vector.load %arg1[%c1_158, %c20_159, %c0_160] : memref<2x912x8xbf16, #tpu.memory_space<vmem>>, vector<1x192x8xbf16>
    %164 = vector.shape_cast %163 : vector<1x192x8xbf16> to vector<192x8xbf16>
    %c10_161 = arith.constant 10 : index
    %c0_162 = arith.constant 0 : index
    %c0_163 = arith.constant 0 : index
    %165 = vector.load %arg2[%c10_161, %c0_162, %c0_163] : memref<16x8x16xbf16, #tpu.memory_space<vmem>>, vector<1x8x16xbf16>
    %166 = vector.shape_cast %165 : vector<1x8x16xbf16> to vector<8x16xbf16>
    %cst_164 = arith.constant dense<0.000000e+00> : vector<192x16xf32>
    %167 = tpu.matmul %164, %166, %cst_164 {dimension_numbers = #tpu.dot_dimension_numbers<[1], [0], [0], [1], [0, 0, 1, 1], [], []>} : vector<192x8xbf16>, vector<8x16xbf16>, vector<192x16xf32> -> vector<192x16xf32>
    %168 = arith.addf %162, %167 : vector<192x16xf32>
    %c1_165 = arith.constant 1 : index
    %c248_166 = arith.constant 248 : index
    %c0_167 = arith.constant 0 : index
    %169 = vector.load %arg1[%c1_165, %c248_166, %c0_167] : memref<2x912x8xbf16, #tpu.memory_space<vmem>>, vector<1x192x8xbf16>
    %170 = vector.shape_cast %169 : vector<1x192x8xbf16> to vector<192x8xbf16>
    %c11_168 = arith.constant 11 : index
    %c0_169 = arith.constant 0 : index
    %c0_170 = arith.constant 0 : index
    %171 = vector.load %arg2[%c11_168, %c0_169, %c0_170] : memref<16x8x16xbf16, #tpu.memory_space<vmem>>, vector<1x8x16xbf16>
    %172 = vector.shape_cast %171 : vector<1x8x16xbf16> to vector<8x16xbf16>
    %cst_171 = arith.constant dense<0.000000e+00> : vector<192x16xf32>
    %173 = tpu.matmul %170, %172, %cst_171 {dimension_numbers = #tpu.dot_dimension_numbers<[1], [0], [0], [1], [0, 0, 1, 1], [], []>} : vector<192x8xbf16>, vector<8x16xbf16>, vector<192x16xf32> -> vector<192x16xf32>
    %174 = arith.addf %168, %173 : vector<192x16xf32>
    %c1_172 = arith.constant 1 : index
    %c475_173 = arith.constant 475 : index
    %c0_174 = arith.constant 0 : index
    %175 = vector.load %arg1[%c1_172, %c475_173, %c0_174] : memref<2x912x8xbf16, #tpu.memory_space<vmem>>, vector<1x192x8xbf16>
    %176 = vector.shape_cast %175 : vector<1x192x8xbf16> to vector<192x8xbf16>
    %c12_175 = arith.constant 12 : index
    %c0_176 = arith.constant 0 : index
    %c0_177 = arith.constant 0 : index
    %177 = vector.load %arg2[%c12_175, %c0_176, %c0_177] : memref<16x8x16xbf16, #tpu.memory_space<vmem>>, vector<1x8x16xbf16>
    %178 = vector.shape_cast %177 : vector<1x8x16xbf16> to vector<8x16xbf16>
    %cst_178 = arith.constant dense<0.000000e+00> : vector<192x16xf32>
    %179 = tpu.matmul %176, %178, %cst_178 {dimension_numbers = #tpu.dot_dimension_numbers<[1], [0], [0], [1], [0, 0, 1, 1], [], []>} : vector<192x8xbf16>, vector<8x16xbf16>, vector<192x16xf32> -> vector<192x16xf32>
    %180 = arith.addf %174, %179 : vector<192x16xf32>
    %c1_179 = arith.constant 1 : index
    %c703_180 = arith.constant 703 : index
    %c0_181 = arith.constant 0 : index
    %181 = vector.load %arg1[%c1_179, %c703_180, %c0_181] : memref<2x912x8xbf16, #tpu.memory_space<vmem>>, vector<1x192x8xbf16>
    %182 = vector.shape_cast %181 : vector<1x192x8xbf16> to vector<192x8xbf16>
    %c13_182 = arith.constant 13 : index
    %c0_183 = arith.constant 0 : index
    %c0_184 = arith.constant 0 : index
    %183 = vector.load %arg2[%c13_182, %c0_183, %c0_184] : memref<16x8x16xbf16, #tpu.memory_space<vmem>>, vector<1x8x16xbf16>
    %184 = vector.shape_cast %183 : vector<1x8x16xbf16> to vector<8x16xbf16>
    %cst_185 = arith.constant dense<0.000000e+00> : vector<192x16xf32>
    %185 = tpu.matmul %182, %184, %cst_185 {dimension_numbers = #tpu.dot_dimension_numbers<[1], [0], [0], [1], [0, 0, 1, 1], [], []>} : vector<192x8xbf16>, vector<8x16xbf16>, vector<192x16xf32> -> vector<192x16xf32>
    %186 = arith.addf %180, %185 : vector<192x16xf32>
    %c1_186 = arith.constant 1 : index
    %c476_187 = arith.constant 476 : index
    %c0_188 = arith.constant 0 : index
    %187 = vector.load %arg1[%c1_186, %c476_187, %c0_188] : memref<2x912x8xbf16, #tpu.memory_space<vmem>>, vector<1x192x8xbf16>
    %188 = vector.shape_cast %187 : vector<1x192x8xbf16> to vector<192x8xbf16>
    %c14_189 = arith.constant 14 : index
    %c0_190 = arith.constant 0 : index
    %c0_191 = arith.constant 0 : index
    %189 = vector.load %arg2[%c14_189, %c0_190, %c0_191] : memref<16x8x16xbf16, #tpu.memory_space<vmem>>, vector<1x8x16xbf16>
    %190 = vector.shape_cast %189 : vector<1x8x16xbf16> to vector<8x16xbf16>
    %cst_192 = arith.constant dense<0.000000e+00> : vector<192x16xf32>
    %191 = tpu.matmul %188, %190, %cst_192 {dimension_numbers = #tpu.dot_dimension_numbers<[1], [0], [0], [1], [0, 0, 1, 1], [], []>} : vector<192x8xbf16>, vector<8x16xbf16>, vector<192x16xf32> -> vector<192x16xf32>
    %192 = arith.addf %186, %191 : vector<192x16xf32>
    %c1_193 = arith.constant 1 : index
    %c704_194 = arith.constant 704 : index
    %c0_195 = arith.constant 0 : index
    %193 = vector.load %arg1[%c1_193, %c704_194, %c0_195] : memref<2x912x8xbf16, #tpu.memory_space<vmem>>, vector<1x192x8xbf16>
    %194 = vector.shape_cast %193 : vector<1x192x8xbf16> to vector<192x8xbf16>
    %c15_196 = arith.constant 15 : index
    %c0_197 = arith.constant 0 : index
    %c0_198 = arith.constant 0 : index
    %195 = vector.load %arg2[%c15_196, %c0_197, %c0_198] : memref<16x8x16xbf16, #tpu.memory_space<vmem>>, vector<1x8x16xbf16>
    %196 = vector.shape_cast %195 : vector<1x8x16xbf16> to vector<8x16xbf16>
    %cst_199 = arith.constant dense<0.000000e+00> : vector<192x16xf32>
    %197 = tpu.matmul %194, %196, %cst_199 {dimension_numbers = #tpu.dot_dimension_numbers<[1], [0], [0], [1], [0, 0, 1, 1], [], []>} : vector<192x8xbf16>, vector<8x16xbf16>, vector<192x16xf32> -> vector<192x16xf32>
    %198 = arith.addf %192, %197 : vector<192x16xf32>
    %c1_200 = arith.constant 1 : index
    %c0_201 = arith.constant 0 : index
    %c0_202 = arith.constant 0 : index
    %199 = vector.load %arg4[%c1_200, %c0_201, %c0_202] : memref<2x192x16xf32, #tpu.memory_space<vmem>>, vector<1x192x16xf32>
    %200 = vector.shape_cast %199 : vector<1x192x16xf32> to vector<192x16xf32>
    %201 = vector.shape_cast %198 : vector<192x16xf32> to vector<1x192x16xf32>
    tpu.vector_store %arg4[%c1_200, %c0_201, %c0_202], %201 {strides = array<i32>} : memref<2x192x16xf32, #tpu.memory_space<vmem>>, vector<1x192x16xf32>,
    return
  }
  func.func @transform_0(%arg0: i32) -> (i32, i32, i32) {
    %c0_i32 = arith.constant 0 : i32
    %c0_i32_0 = arith.constant 0 : i32
    %c0_i32_1 = arith.constant 0 : i32
    return %arg0, %c0_i32, %c0_i32_0 : i32, i32, i32
  }
  func.func @transform_1(%arg0: i32) -> (i32, i32, i32) {
    %c0_i32 = arith.constant 0 : i32
    %c0_i32_0 = arith.constant 0 : i32
    %c0_i32_1 = arith.constant 0 : i32
    %c0_i32_2 = arith.constant 0 : i32
    return %c0_i32, %c0_i32_0, %c0_i32_1 : i32, i32, i32
  }
  func.func @transform_2(%arg0: i32) -> (i32, i32) {
    %c0_i32 = arith.constant 0 : i32
    %c0_i32_0 = arith.constant 0 : i32
    %c0_i32_1 = arith.constant 0 : i32
    return %c0_i32, %c0_i32_0 : i32, i32
  }
  func.func @transform_3(%arg0: i32) -> (i32, i32, i32) {
    %c0_i32 = arith.constant 0 : i32
    %c0_i32_0 = arith.constant 0 : i32
    %c0_i32_1 = arith.constant 0 : i32
    return %arg0, %c0_i32, %c0_i32_0 : i32, i32, i32
  }
}

</mosaic_0001>

<bundles_post_ra>
// kernel: tpu_custom_call.1
= control target key start
LH: loop header
LB: loop body
LE: loop exit
PB: predicated region body
PF: predicated region fallthrough
CT: control target
= control target key end

     0   :  { %vm144_vm0 = vcmask 1043456   ;;  %vm107_vm1 = vcmask 64512   ;;  %vm367_vm2 = vcmask 1045504   ;;  %vm675_vm3 = vsmask.f32 7424  ;;  %s16563_s1 = inlined_call_operand.vmem [shape: bf16[16,8,16], index: 1, kind: input, shape index: {}]   ;;  %s16564_s0 = inlined_call_operand.vmem [shape: bf16[2,912,8], index: 0, kind: input, shape index: {}]   ;;  %s16565_s2 = inlined_call_operand.vmem [shape: f32[1,16], index: 2, kind: input, shape index: {}]   ;;  %s16566_s3 = inlined_call_operand.vmem [shape: f32[2,192,16], index: 3, kind: output, shape index: {}]  }
   0x1   :  { %v39_v0 = vld [vmem:[%s16563_s1] sm:$0xf]  ;;  %v13103_v5 = vld [vmem:[%s16564_s0 + $0x1c8] sm:$0xff]   ;;  %v10075_v7 = vld [vmem:[%s16563_s1 + $0x4] sm:$0xf]  ;;  %vm5016_vm7 = vcmask 130048  }
   0x2   :  { %v5066_v1 = vld [vmem:[%s16563_s1] sm:$0xf]  ;;  %13070 = vmatprep.subr.msk.bf16.mxu0 %vm144_vm0, %v39_v0  ;;  %v146_v2 = vsel %vm144_vm0, %v39_v0, 0  ;;  %11888 = vmatprep.mubr.msk.bf16.mxu1 %vm107_vm1, %v13103_v5  ;;  %v13104_v6 = vld [vmem:[%s16564_s0 + $0x8] sm:$0xff]   ;;  %v13105_v8 = vld [vmem:[%s16564_s0 + $0x1d0] sm:$0xff]   ;;  %v430_v9 = vsel %vm144_vm0, %v10075_v7, 0 }
   0x3   :  { %13086 = vmatprep.subr.msk.bf16.mxu1 %vm144_vm0, %v5066_v1  ;;  %v5171_v3 = vsel %vm144_vm0, %v5066_v1, 0  ;;  %v13102_v4 = vld [vmem:[%s16564_s0] sm:$0xff]   ;;  %11471 = vmatpush3.bf16.msra.mxu0 %v146_v2  ;;  %v13106_v12 = vld [vmem:[%s16564_s0 + $0x10] sm:$0xff]   ;;  %v13107_v13 = vld [vmem:[%s16564_s0 + $0x1d8] sm:$0xff]   ;;  %vm974_vm4 = vsmask.f32 5376 }
   0x4   :  { %11887 = vmatpush3.bf16.msra.mxu1 %v5171_v3  ;;  %11472 = vmatprep.mubr.msk.bf16.mxu0 %vm107_vm1, %v13102_v4  ;;  %v10488_v10 = vld [vmem:[%s16563_s1 + $0x4] sm:$0xf]  ;;  %v13108_v14 = vld [vmem:[%s16564_s0 + $0x18] sm:$0xff]   ;;  %v13111_v17 = vld [vmem:[%s16564_s0 + $0x1e8] sm:$0xff]   ;;  %vm2654_vm5 = vsmask.f32 6400 }
   0x5   :  { %13071 = vmatprep.subr.msk.bf16.mxu0 %vm144_vm0, %v10075_v7  ;;  %13087 = vmatprep.subr.msk.bf16.mxu1 %vm144_vm0, %v10488_v10  ;;  %v5453_v11 = vsel %vm144_vm0, %v10488_v10, 0  ;;  %v13109_v15 = vld [vmem:[%s16564_s0 + $0x1e0] sm:$0xff]   ;;  %v13112_v18 = vld [vmem:[%s16564_s0 + $0x28] sm:$0xff]   ;;  %v13113_v19 = vld [vmem:[%s16564_s0 + $0x1f0] sm:$0xff]   ;;  %vm3053_vm6 = vsmask.f32 4352 }
   0x6   :  { %11473 = vmatmul.mubr.msk.bf16.vlgmr.msra.gmra.mrb[0].mxu0 %vm107_vm1, %v13104_v6  ;;  %v13110_v16 = vld [vmem:[%s16564_s0 + $0x20] sm:$0xff]   ;;  %v13114_v20 = vld [vmem:[%s16564_s0 + $0x30] sm:$0xff]   ;;  %v13115_v21 = vld [vmem:[%s16564_s0 + $0x1f8] sm:$0xff]  }
   0x7   :  { %11889 = vmatmul.mubr.msk.bf16.vlgmr.msra.gmra.mrb[0].mxu1 %vm107_vm1, %v13105_v8  ;;  %11497 = vmatpush3.bf16.msra.mxu0 %v430_v9  ;;  %v13116_v22 = vld [vmem:[%s16564_s0 + $0x38] sm:$0xff]   ;;  %v13117_v23 = vld [vmem:[%s16564_s0 + $0x200] sm:$0xff]   ;;  %v13119_v25 = vld [vmem:[%s16564_s0 + $0x208] sm:$0xff]  }
   0x8   :  { %11913 = vmatpush3.bf16.msra.mxu1 %v5453_v11  ;;  %11476 = vmatprep.mubr.msk.bf16.mxu0 %vm107_vm1, %v13106_v12  ;;  %v13118_v24 = vld [vmem:[%s16564_s0 + $0x40] sm:$0xff]   ;;  %v10101_v26 = vld [vmem:[%s16563_s1 + $0x8] sm:$0xf]  ;;  %v13121_v28 = vld [vmem:[%s16564_s0 + $0x210] sm:$0xff]  }
   0x9   :  { %11892 = vmatprep.mubr.msk.bf16.mxu1 %vm107_vm1, %v13107_v13  ;;  %v13120_v27 = vld [vmem:[%s16564_s0 + $0x48] sm:$0xff]   ;;  %13072 = vmatprep.subr.msk.bf16.mxu0 %vm144_vm0, %v10101_v26  ;;  %v13122_v29 = vld [vmem:[%s16564_s0 + $0x50] sm:$0xff]   ;;  %v13123_v31 = vld [vmem:[%s16564_s0 + $0x218] sm:$0xff]   ;;  %v813_v55 = vsel %vm144_vm0, %v10101_v26, 0 }
   0xa   :  { %v10539_v30 = vld [vmem:[%s16563_s1 + $0x8] sm:$0xf]  ;;  %v13548_v32 = vld [vmem:[%s16564_s0 + $0x70] sm:$0xfc]   ;;  %v13554_v33 = vld [vmem:[%s16564_s0 + $0x78] sm:$0xff]  }
   0xb   :  { %13088 = vmatprep.subr.msk.bf16.mxu1 %vm144_vm0, %v10539_v30  ;;  %v13559_v34 = vld [vmem:[%s16564_s0 + $0x240] sm:$0xff]   ;;  %v13564_v35 = vld [vmem:[%s16564_s0 + $0x238] sm:$0xfc]   ;;  %v368_v37 = vrot.slane %v13548_v32, 2  ;;  %v369_v38 = vrot.slane %v13554_v33, 2  ;;  %v13589_v44 = vld [vmem:[%s16564_s0 + $0x248] sm:$0xff]  }
   0xc   :  { %v13124_v36 = vld [vmem:[%s16564_s0 + $0x58] sm:$0xff]   ;;  %v5391_v39 = vrot.slane %v13564_v35, 2  ;;  %v5392_v40 = vrot.slane %v13559_v34, 2  ;;  %v13125_v41 = vld [vmem:[%s16564_s0 + $0x220] sm:$0xff]   ;;  %v13595_v46 = vld [vmem:[%s16564_s0 + $0x88] sm:$0xff]   ;;  %v5394_v49 = vrot.slane %v13589_v44, 2 }
   0xd   :  { %v13583_v42 = vld [vmem:[%s16564_s0 + $0x80] sm:$0xff]   ;;  %v370_v43 = vsel %vm367_vm2, %v368_v37, %v369_v38  ;;  %v13601_v47 = vld [vmem:[%s16564_s0 + $0x250] sm:$0xff]   ;;  %v373_v50 = vrot.slane %v13595_v46, 2  ;;  %v13621_v56 = vld [vmem:[%s16564_s0 + $0x258] sm:$0xff]   ;;  %v5834_v58 = vsel %vm144_vm0, %v10539_v30, 0 }
   0xe   :  { %11477 = vmatmul.mubr.msk.bf16.gmra.mrb[4].mxu0 %vm107_vm1, %v13108_v14  ;;  %v5393_v45 = vsel %vm367_vm2, %v5391_v39, %v5392_v40  ;;  %v371_v48 = vrot.slane %v13583_v42, 2  ;;  %v5396_v51 = vrot.slane %v13601_v47, 2  ;;  %v13614_v53 = vld [vmem:[%s16564_s0 + $0x90] sm:$0xff]   ;;  %v5395_v54 = vsel %vm367_vm2, %v5392_v40, %v5394_v49  ;;  %v13626_v57 = vld [vmem:[%s16564_s0 + $0x98] sm:$0xff]   ;;  %v13633_v60 = vld [vmem:[%s16564_s0 + $0x260] sm:$0xff]  }
   0xf   :  { %11893 = vmatmul.mubr.msk.bf16.gmra.mrb[4].mxu1 %vm107_vm1, %v13109_v15  ;;  %11480 = vmatprep.mubr.msk.bf16.mxu0 %vm107_vm1, %v13110_v16  ;;  %v375_v62 = vrot.slane %v13614_v53, 2  ;;  %v5398_v63 = vrot.slane %v13621_v56, 2  ;;  %v377_v0 = vrot.slane %v13626_v57, 2  ;;  %v5400_v1 = vrot.slane %v13633_v60, 2  ;;  %v13648_v3 = vld [vmem:[%s16564_s0 + $0xa0] sm:$0xff]   ;;  %v13653_v4 = vld [vmem:[%s16564_s0 + $0x268] sm:$0xff]  }
  0x10   :  { %11896 = vmatprep.mubr.msk.bf16.mxu1 %vm107_vm1, %v13111_v17  ;;  %v372_v52 = vsel %vm367_vm2, %v369_v38, %v371_v48  ;;  %v374_v59 = vsel %vm367_vm2, %v371_v48, %v373_v50  ;;  %v5397_v61 = vsel %vm367_vm2, %v5394_v49, %v5396_v51  ;;  %v13658_v5 = vld [vmem:[%s16563_s1 + $0xc] sm:$0xf]  ;;  %v13673_v10 = vld [vmem:[%s16564_s0 + $0x270] sm:$0xff]   ;;  %v379_v12 = vrot.slane %v13648_v3, 2  ;;  %v13698_v17 = vld [vmem:[%s16564_s0 + $0x278] sm:$0xff]  }
  0x11   :  { %v376_v2 = vsel %vm367_vm2, %v373_v50, %v375_v62  ;;  %v5399_v6 = vsel %vm367_vm2, %v5396_v51, %v5398_v63  ;;  %v378_v7 = vsel %vm367_vm2, %v375_v62, %v377_v0  ;;  %v13665_v8 = vld [vmem:[%s16564_s0 + $0xa8] sm:$0xff]   ;;  %v5401_v9 = vsel %vm367_vm2, %v5398_v63, %v5400_v1  ;;  %v13693_v16 = vld [vmem:[%s16564_s0 + $0xb0] sm:$0xff]   ;;  %v13151_v62 = vld [vmem:[%s16564_s0 + $0x298] ss:$0 sps:$4 sm:$0x33]  }
  0x12   :  { %v13678_v11 = vld [vmem:[%s16563_s1 + $0xc] sm:$0xf]  ;;  %v5402_v13 = vrot.slane %v13653_v4, 2  ;;  %v381_v14 = vrot.slane %v13665_v8, 2  ;;  %v5404_v15 = vrot.slane %v13673_v10, 2  ;;  %v13752_v39 = vld [vmem:[%s16564_s0 + $0x290] sm:$0xff]  }
  0x13   :  { %v13724_v26 = vld [vmem:[%s16564_s0 + $0x288] sm:$0xff]   ;;  %16647 = vst [vmem:[#allocation2_spill] sm:$0xff] %v13752_v39  ;;  %v13156_v49 = vld [vmem:[%s16564_s0 + $0x10] sm:$0xff]  }
  0x14   :  { %v13153_v30 = vld [vmem:[%s16564_s0 + $0x8] sm:$0xff]   ;;  %v5410_v51 = vrot.slane %v13724_v26, 2 }
  0x15   :  { %v13747_v38 = vld [vmem:[%s16564_s0 + $0xc8] sm:$0xff]   ;;  %v684_v48 = vshll.u32 %v13153_v30, 16 }
  0x16   :  { %11481 = vmatmul.mubr.msk.bf16.gmra.mrb[8].mxu0 %vm107_vm1, %v13112_v18  ;;  %v380_v18 = vsel %vm367_vm2, %v377_v0, %v379_v12  ;;  %v13157_v0 = vld [vmem:[%s16564_s0 + $0x1d8] sm:$0xff]  }
  0x17   :  { %11897 = vmatmul.mubr.msk.bf16.gmra.mrb[8].mxu1 %vm107_vm1, %v13113_v19  ;;  %11484 = vmatprep.mubr.msk.bf16.mxu0 %vm107_vm1, %v13114_v20  ;;  %v13704_v19 = vld [vmem:[%s16564_s0 + $0xb8] sm:$0xff]   ;;  %v5403_v20 = vsel %vm367_vm2, %v5400_v1, %v5402_v13  ;;  %v688_v1 = vshrl.u32 %v13153_v30, 16 }
  0x18   :  { %11900 = vmatprep.mubr.msk.bf16.mxu1 %vm107_vm1, %v13115_v21  ;;  %v382_v21 = vsel %vm367_vm2, %v379_v12, %v381_v14  ;;  %v692_v12 = vshll.u32 %v13156_v49, 16 }
  0x1e   :  { %11485 = vmatmul.mubr.msk.bf16.gmra.mrb[12].mxu0 %vm107_vm1, %v13116_v22  ;;  %v5405_v22 = vsel %vm367_vm2, %v5402_v13, %v5404_v15 }
  0x1f   :  { %11901 = vmatmul.mubr.msk.bf16.gmra.mrb[12].mxu1 %vm107_vm1, %v13117_v23  ;;  %11488 = vmatprep.mubr.msk.bf16.mxu0 %vm107_vm1, %v13118_v24  ;;  %v13712_v23 = vld [vmem:[%s16564_s0 + $0x280] sm:$0xff]   ;;  %v383_v24 = vrot.slane %v13693_v16, 2 }
  0x20   :  { %11904 = vmatprep.mubr.msk.bf16.mxu1 %vm107_vm1, %v13119_v25  ;;  %v13719_v25 = vld [vmem:[%s16564_s0 + $0xc0] sm:$0xff]   ;;  %v5408_v37 = vrot.slane %v13712_v23, 2 }
  0x21   :  { %v387_v50 = vrot.slane %v13719_v25, 2 }
  0x26   :  { %11489 = vmatmul.mubr.msk.bf16.gmra.mrb[16].mxu0 %vm107_vm1, %v13120_v27  ;;  %v13152_v27 = vld [vmem:[%s16564_s0] sm:$0xff]  }
  0x27   :  { %11905 = vmatmul.mubr.msk.bf16.gmra.mrb[16].mxu1 %vm107_vm1, %v13121_v28  ;;  %11492 = vmatprep.mubr.msk.bf16.mxu0 %vm107_vm1, %v13122_v29  ;;  %v5406_v28 = vrot.slane %v13698_v17, 2  ;;  %v385_v29 = vrot.slane %v13704_v19, 2  ;;  %v679_v40 = vshll.u32 %v13152_v27, 16  ;;  %v677_v63 = vshrl.u32 %v13152_v27, 16 }
  0x28   :  { %11908 = vmatprep.mubr.msk.bf16.mxu1 %vm107_vm1, %v13123_v31  ;;  %v13154_v31 = vld [vmem:[%s16564_s0 + $0x1c8] sm:$0xff]  }
  0x2e   :  { %11493 = vmatmul.mubr.msk.bf16.gmra.mrb[20].mxu0 %vm107_vm1, %v13124_v36  ;;  %v13155_v36 = vld [vmem:[%s16564_s0 + $0x1d0] sm:$0xff]  }
  0x2f   :  { %11909 = vmatmul.mubr.msk.bf16.gmra.mrb[20].mxu1 %vm107_vm1, %v13125_v41  ;;  %11498 = vmatprep.mubr.msk.bf16.mxu0 %vm107_vm1, %v370_v43  ;;  %v384_v41 = vsel %vm367_vm2, %v381_v14, %v383_v24  ;;  %v5407_v43 = vsel %vm367_vm2, %v5404_v15, %v5406_v28  ;;  %v5709_v15 = vshrl.u32 %v13155_v36, 16 }
  0x30   :  { %11914 = vmatprep.mubr.msk.bf16.mxu1 %vm107_vm1, %v5393_v45  ;;  %v386_v45 = vsel %vm367_vm2, %v383_v24, %v385_v29  ;;  %v5411_v24 = vsel %vm367_vm2, %v5408_v37, %v5410_v51 }
  0x36   :  { %11499 = vmatmul.mubr.msk.bf16.vlgmr.msra.gmra.mrb[0].mxu0 %vm107_vm1, %v372_v52  ;;  %v5700_v52 = vshll.u32 %v13154_v31, 16 }
  0x37   :  { %11915 = vmatmul.mubr.msk.bf16.vlgmr.msra.gmra.mrb[0].mxu1 %vm107_vm1, %v5395_v54  ;;  %11523 = vmatpush3.bf16.msra.mxu0 %v813_v55  ;;  %v5705_v54 = vshll.u32 %v13155_v36, 16  ;;  %v5409_v55 = vsel %vm367_vm2, %v5406_v28, %v5408_v37  ;;  %v13789_v28 = vld [vmem:[%s16564_s0 + $0x20] sm:$0xff]   ;;  %v5414_v36 = vrot.slane %v13151_v62, 2 }
  0x38   :  { %11939 = vmatpush3.bf16.msra.mxu1 %v5834_v58  ;;  %11502 = vmatprep.mubr.msk.bf16.mxu0 %vm107_vm1, %v374_v59  ;;  %v389_v58 = vrot.slane %v13747_v38, 2  ;;  %v5412_v59 = vrot.slane %v13752_v39, 2  ;;  %v5702_v13 = vrot.slane %v5700_v52, 1  ;;  %v708_v39 = vshll.u32 %v13789_v28, 16 }
  0x39   :  { %11918 = vmatprep.mubr.msk.bf16.mxu1 %vm107_vm1, %v5397_v61  ;;  %13073 = vmatprep.subr.msk.bf16.mxu0 %vm144_vm0, %v13658_v5  ;;  %v13150_v61 = vld [vmem:[%s16564_s0 + $0xd0] ss:$0 sps:$4 sm:$0x33]   ;;  %v5707_v14 = vrot.slane %v5705_v54, 1 }
  0x3a   :  { %13089 = vmatprep.subr.msk.bf16.mxu1 %vm144_vm0, %v13678_v11  ;;  %v390_v30 = vsel %vm367_vm2, %v387_v50, %v389_v58  ;;  %v5415_v62 = vsel %vm367_vm2, %v5412_v59, %v5414_v36  ;;  %v987_v36 = vshll.u32 %v13554_v33, 16 }
  0x3b   :  { %v5711_v52 = vor.u32 %v5709_v15, %v5707_v14 }
  0x3e   :  { %11503 = vmatmul.mubr.msk.bf16.gmra.mrb[4].mxu0 %vm107_vm1, %v376_v2  ;;  %v13158_v2 = vld [vmem:[%s16564_s0 + $0x18] sm:$0xff]  }
  0x3f   :  { %11919 = vmatmul.mubr.msk.bf16.gmra.mrb[4].mxu1 %vm107_vm1, %v5399_v6  ;;  %11506 = vmatprep.mubr.msk.bf16.mxu0 %vm107_vm1, %v378_v7  ;;  %v681_v6 = vrot.slane %v679_v40, 1  ;;  %v686_v7 = vrot.slane %v684_v48, 1  ;;  %v700_v27 = vshll.u32 %v13158_v2, 16  ;;  %v694_v40 = vrot.slane %v692_v12, 1 }
  0x40   :  { %11922 = vmatprep.mubr.msk.bf16.mxu1 %vm107_vm1, %v5401_v9  ;;  %v5698_v9 = vshrl.u32 %v13154_v31, 16  ;;  %v391_v31 = vrot.slane %v13150_v61, 2 }
  0x42   :  { %v392_v61 = vsel %vm367_vm2, %v389_v58, %v391_v31 }
  0x46   :  { %11507 = vmatmul.mubr.msk.bf16.gmra.mrb[8].mxu0 %vm107_vm1, %v380_v18  ;;  %v13159_v18 = vld [vmem:[%s16564_s0 + $0x1e0] sm:$0xff]  }
  0x47   :  { %11923 = vmatmul.mubr.msk.bf16.gmra.mrb[8].mxu1 %vm107_vm1, %v5403_v20  ;;  %11510 = vmatprep.mubr.msk.bf16.mxu0 %vm107_vm1, %v382_v21  ;;  %v5713_v20 = vshll.u32 %v13157_v0, 16  ;;  %v696_v21 = vshrl.u32 %v13156_v49, 16  ;;  %v5721_v48 = vshll.u32 %v13159_v18, 16  ;;  %v690_v49 = vor.u32 %v688_v1, %v686_v7 }
  0x48   :  { %11926 = vmatprep.mubr.msk.bf16.mxu1 %vm107_vm1, %v5405_v22  ;;  %v388_v22 = vsel %vm367_vm2, %v385_v29, %v387_v50  ;;  %v5703_v29 = vor.u32 %v5702_v13, %v5698_v9  ;;  %v13798_v50 = vld [vmem:[%s16564_s0 + $0x1e8] sm:$0xff]   ;;  %v5725_v12 = vshrl.u32 %v13159_v18, 16  ;;  %v712_v18 = vshrl.u32 %v13789_v28, 16 }
  0x49   :  { %v5715_v37 = vrot.slane %v5713_v20, 1  ;;  %v698_v54 = vor.u32 %v696_v21, %v694_v40  ;;  %v5723_v9 = vrot.slane %v5721_v48, 1  ;;  %v695_v15 = vsel %vm675_vm3, %v690_v49, %v694_v40 }
  0x4a   :  { %v5708_v13 = vsel %vm675_vm3, %v5703_v29, %v5707_v14  ;;  %v979_v21 = vshll.u32 %v13548_v32, 16  ;;  %v989_v49 = vrot.slane %v987_v36, 3  ;;  %v13880_v36 = vld [vmem:[%s16563_s1 + $0x10] sm:$0xf] }
  0x4b   :  { %v13814_v58 = vsel %vm675_vm3, %v5711_v52, %v5715_v37  ;;  %v993_v52 = vshrl.u32 %v13583_v42, 16 }
  0x4e   :  { %11511 = vmatmul.mubr.msk.bf16.gmra.mrb[12].mxu0 %vm107_vm1, %v384_v41  ;;  %v5413_v41 = vsel %vm367_vm2, %v5410_v51, %v5412_v59  ;;  %v976_v51 = vshrl.u32 %v13548_v32, 16  ;;  %v13818_v59 = vsel %vm144_vm0, %v13678_v11, 0  ;;  %v13834_v11 = vor.u32 %v5725_v12, %v5723_v9 }
  0x4f   :  { %11927 = vmatmul.mubr.msk.bf16.gmra.mrb[12].mxu1 %vm107_vm1, %v5407_v43  ;;  %11514 = vmatprep.mubr.msk.bf16.mxu0 %vm107_vm1, %v386_v45  ;;  %v682_v43 = vor.u32 %v681_v6, %v677_v63  ;;  %v5717_v45 = vshrl.u32 %v13157_v0, 16  ;;  %v13807_v63 = vsel %vm144_vm0, %v13658_v5, 0  ;;  %v704_v0 = vshrl.u32 %v13158_v2, 16 }
  0x50   :  { %11930 = vmatprep.mubr.msk.bf16.mxu1 %vm107_vm1, %v5409_v55  ;;  %v702_v55 = vrot.slane %v700_v27, 1  ;;  %v13823_v2 = vrot.slane %v708_v39, 1  ;;  %v978_v14 = vrot.slane %v976_v51, 2  ;;  %v13839_v39 = vld [vmem:[%s16564_s0 + $0x28] sm:$0xff]   ;;  %v5733_v27 = vshrl.u32 %v13798_v50, 16 }
  0x51   :  { %v687_v1 = vsel %vm675_vm3, %v682_v43, %v686_v7  ;;  %v5719_v6 = vor.u32 %v5717_v45, %v5715_v37  ;;  %v5729_v7 = vshll.u32 %v13798_v50, 16  ;;  %v5995_v32 = vshrl.u32 %v13564_v35, 16 }
  0x52   :  { %v13821_v5 = vsel %vm675_vm3, %v698_v54, %v702_v55  ;;  %v13827_v20 = vor.u32 %v704_v0, %v702_v55  ;;  %v6003_v43 = vshrl.u32 %v13559_v34, 16  ;;  %v6006_v45 = vshll.u32 %v13559_v34, 16 }
  0x53   :  { %v13845_v40 = vrot.slane %v5729_v7, 1  ;;  %v5997_v29 = vrot.slane %v5995_v32, 2  ;;  %v996_v34 = vshll.u32 %v13583_v42, 16  ;;  %v995_v51 = vrot.slane %v993_v52, 2 }
  0x54   :  { %v6005_v37 = vrot.slane %v6003_v43, 2  ;;  %v6008_v54 = vrot.slane %v6006_v45, 3  ;;  %v716_v0 = vshll.u32 %v13839_v39, 16  ;;  %v6021_v32 = vshrl.u32 %v13601_v47, 16  ;;  %v13164_v45 = vld [vmem:[%s16564_s0 + $0x30] sm:$0xff]  }
  0x55   :  { %v1011_v43 = vshrl.u32 %v13614_v53, 16 }
  0x56   :  { %11515 = vmatmul.mubr.msk.bf16.gmra.mrb[16].mxu0 %vm107_vm1, %v388_v22  ;;  %v984_v22 = vshrl.u32 %v13554_v33, 16  ;;  %v13855_v33 = vld [vmem:[%s16564_s0 + $0x1f0] sm:$0xff]   ;;  %v6023_v52 = vrot.slane %v6021_v32, 2  ;;  %v13170_v32 = vld [vmem:[%s16564_s0 + $0x48] sm:$0xff]  }
  0x57   :  { %11931 = vmatmul.mubr.msk.bf16.gmra.mrb[16].mxu1 %vm107_vm1, %v5411_v24  ;;  %11518 = vmatprep.mubr.msk.bf16.mxu0 %vm107_vm1, %v390_v30  ;;  %v13832_v24 = vsel %vm675_vm3, %v5719_v6, %v5723_v9  ;;  %v981_v30 = vrot.slane %v979_v21, 3  ;;  %v6009_v6 = vor.u32 %v6008_v54, %v6005_v37  ;;  %v998_v9 = vrot.slane %v996_v34, 3 }
  0x58   :  { %11934 = vmatprep.mubr.msk.bf16.mxu1 %vm107_vm1, %v5413_v41  ;;  %v986_v31 = vrot.slane %v984_v22, 2  ;;  %v5998_v41 = vshll.u32 %v13564_v35, 16  ;;  %v5737_v12 = vshll.u32 %v13855_v33, 16  ;;  %v1002_v22 = vshrl.u32 %v13595_v46, 16 }
  0x59   :  { %v982_v48 = vor.u32 %v981_v30, %v978_v14  ;;  %v999_v21 = vor.u32 %v998_v9, %v995_v51  ;;  %v1005_v30 = vshll.u32 %v13595_v46, 16  ;;  %v1013_v37 = vrot.slane %v1011_v43, 2 }
  0x5a   :  { %v6000_v35 = vrot.slane %v5998_v41, 3  ;;  %v990_v55 = vor.u32 %v989_v49, %v986_v31  ;;  %v6024_v41 = vshll.u32 %v13601_v47, 16  ;;  %v13165_v47 = vld [vmem:[%s16564_s0 + $0x1f8] sm:$0xff]   ;;  %v5739_v28 = vrot.slane %v5737_v12, 1 }
  0x5b   :  { %v1007_v49 = vrot.slane %v1005_v30, 3  ;;  %v724_v51 = vshll.u32 %v13164_v45, 16  ;;  %v5749_v12 = vshrl.u32 %v13165_v47, 16 }
  0x5c   :  { %v13890_v46 = vsel %vm974_vm4, %v990_v55, %v999_v21 }
  0x5e   :  { %11519 = vmatmul.mubr.msk.bf16.gmra.mrb[20].mxu0 %vm107_vm1, %v392_v61  ;;  %v6012_v61 = vshrl.u32 %v13589_v44, 16 }
  0x5f   :  { %11935 = vmatmul.mubr.msk.bf16.gmra.mrb[20].mxu1 %vm107_vm1, %v5415_v62  ;;  %11524 = vmatprep.mubr.msk.bf16.mxu0 %vm107_vm1, %v687_v1  ;;  %v6015_v62 = vshll.u32 %v13589_v44, 16  ;;  %v6001_v1 = vor.u32 %v6000_v35, %v5997_v29  ;;  %v13873_v44 = vld [vmem:[%s16563_s1 + $0x10] sm:$0xf]  ;;  %v1014_v29 = vshll.u32 %v13614_v53, 16  ;;  %v6026_v35 = vrot.slane %v6024_v41, 3 }
  0x60   :  { %11940 = vmatprep.mubr.msk.bf16.mxu1 %vm107_vm1, %v5708_v13  ;;  %v13865_v13 = vsel %vm974_vm4, %v982_v48, %v990_v55  ;;  %v6014_v7 = vrot.slane %v6012_v61, 2  ;;  %v1004_v48 = vrot.slane %v1002_v22, 2  ;;  %v714_v53 = vor.u32 %v712_v18, %v13823_v2  ;;  %v13167_v18 = vld [vmem:[%s16564_s0 + $0x200] sm:$0xff]  }
  0x61   :  { %v6017_v14 = vrot.slane %v6015_v62, 3  ;;  %v13868_v42 = vsel %vm974_vm4, %v6001_v1, %v6009_v6  ;;  %v1016_v34 = vrot.slane %v1014_v29, 3  ;;  %v13924_v55 = vor.u32 %v6026_v35, %v6023_v52 }
  0x62   :  { %v1008_v54 = vor.u32 %v1007_v49, %v1004_v48  ;;  %v5745_v61 = vshll.u32 %v13165_v47, 16  ;;  %v5757_v47 = vshrl.u32 %v13167_v18, 16 }
  0x63   :  { %v6018_v31 = vor.u32 %v6017_v14, %v6014_v7  ;;  %v13932_v50 = vor.u32 %v1016_v34, %v1013_v37  ;;  %v5753_v7 = vshll.u32 %v13167_v18, 16 }
  0x64   :  { %v5747_v14 = vrot.slane %v5745_v61, 1  ;;  %v13174_v61 = vld [vmem:[%s16564_s0 + $0x58] sm:$0xff]  }
  0x65   :  { %v13940_v62 = vsel %vm974_vm4, %v6018_v31, %v13924_v55  ;;  %v5755_v43 = vrot.slane %v5753_v7, 1 }
  0x66   :  { %11525 = vmatmul.mubr.msk.bf16.vlgmr.msra.gmra.mrb[0].mxu0 %vm107_vm1, %v695_v15  ;;  %v13900_v15 = vsel %vm974_vm4, %v6009_v6, %v6018_v31  ;;  %v13945_v6 = vsel %vm974_vm4, %v1008_v54, %v13932_v50  ;;  %v5751_v41 = vor.u32 %v5749_v12, %v5747_v14 }
  0x67   :  { %11941 = vmatmul.mubr.msk.bf16.vlgmr.msra.gmra.mrb[0].mxu1 %vm107_vm1, %v13814_v58  ;;  %11549 = vmatpush3.bf16.msra.mxu0 %v13807_v63  ;;  %v718_v63 = vrot.slane %v716_v0, 1  ;;  %v13166_v58 = vld [vmem:[%s16564_s0 + $0x38] sm:$0xff]   ;;  %v728_v0 = vshrl.u32 %v13164_v45, 16  ;;  %v13171_v45 = vld [vmem:[%s16564_s0 + $0x210] sm:$0xff]   ;;  %v5759_v18 = vor.u32 %v5757_v47, %v5755_v43 }
  0x68   :  { %11965 = vmatpush3.bf16.msra.mxu1 %v13818_v59  ;;  %11528 = vmatprep.mubr.msk.bf16.mxu0 %vm107_vm1, %v13821_v5  ;;  %v711_v59 = vsel %vm675_vm3, %v13827_v20, %v13823_v2  ;;  %v5735_v5 = vor.u32 %v5733_v27, %v13845_v40  ;;  %v13930_v2 = vsel %vm974_vm4, %v999_v21, %v1008_v54  ;;  %v5741_v27 = vshrl.u32 %v13855_v33, 16  ;;  %v13169_v21 = vld [vmem:[%s16564_s0 + $0x208] sm:$0xff]  }
  0x69   :  { %11944 = vmatprep.mubr.msk.bf16.mxu1 %vm107_vm1, %v13832_v24  ;;  %13074 = vmatprep.subr.msk.bf16.mxu0 %vm144_vm0, %v13873_v44  ;;  %v720_v24 = vshrl.u32 %v13839_v39, 16  ;;  %v5732_v20 = vsel %vm675_vm3, %v13834_v11, %v13845_v40  ;;  %v719_v39 = vsel %vm675_vm3, %v714_v53, %v718_v63  ;;  %v732_v1 = vshll.u32 %v13166_v58, 16  ;;  %v13168_v40 = vld [vmem:[%s16564_s0 + $0x40] sm:$0xff]  }
  0x6a   :  { %13090 = vmatprep.subr.msk.bf16.mxu1 %vm144_vm0, %v13880_v36  ;;  %v5740_v9 = vsel %vm675_vm3, %v5735_v5, %v5739_v28  ;;  %v726_v11 = vrot.slane %v724_v51, 1  ;;  %v5743_v22 = vor.u32 %v5741_v27, %v5739_v28  ;;  %v736_v48 = vshrl.u32 %v13166_v58, 16  ;;  %v13172_v58 = vld [vmem:[%s16564_s0 + $0x50] sm:$0xff]   ;;  %v13173_v51 = vld [vmem:[%s16564_s0 + $0x218] sm:$0xff]  }
  0x6b   :  { %v722_v33 = vor.u32 %v720_v24, %v718_v63  ;;  %v734_v31 = vrot.slane %v732_v1, 1  ;;  %v740_v49 = vshll.u32 %v13168_v40, 16  ;;  %v5761_v52 = vshll.u32 %v13169_v21, 16  ;;  %v13175_v1 = vld [vmem:[%s16564_s0 + $0x220] sm:$0xff]  }
  0x6c   :  { %v730_v30 = vor.u32 %v728_v0, %v726_v11  ;;  %v5748_v35 = vsel %vm675_vm3, %v5743_v22, %v5747_v14  ;;  %v744_v53 = vshrl.u32 %v13168_v40, 16  ;;  %v748_v63 = vshll.u32 %v13170_v32, 16 }
  0x6d   :  { %v727_v29 = vsel %vm675_vm3, %v722_v33, %v726_v11  ;;  %v5756_v54 = vsel %vm675_vm3, %v5751_v41, %v5755_v43  ;;  %v5765_v34 = vshrl.u32 %v13169_v21, 16  ;;  %v742_v5 = vrot.slane %v740_v49, 1 }
  0x6e   :  { %11529 = vmatmul.mubr.msk.bf16.gmra.mrb[4].mxu0 %vm107_vm1, %v711_v59  ;;  %v735_v37 = vsel %vm675_vm3, %v730_v30, %v734_v31  ;;  %v5769_v59 = vshll.u32 %v13171_v45, 16  ;;  %v738_v28 = vor.u32 %v736_v48, %v734_v31  ;;  %v5763_v24 = vrot.slane %v5761_v52, 1  ;;  %v13176_v48 = vld [vmem:[%s16564_s0 + $0x60] ss:$0 sps:$4 sm:$0x11]  }
  0x6f   :  { %11945 = vmatmul.mubr.msk.bf16.gmra.mrb[4].mxu1 %vm107_vm1, %v5732_v20  ;;  %11532 = vmatprep.mubr.msk.bf16.mxu0 %vm107_vm1, %v719_v39  ;;  %v746_v20 = vor.u32 %v744_v53, %v742_v5  ;;  %v750_v27 = vrot.slane %v748_v63, 1  ;;  %v752_v11 = vshrl.u32 %v13170_v32, 16  ;;  %v5777_v40 = vshll.u32 %v13173_v51, 16  ;;  %v13177_v52 = vld [vmem:[%s16564_s0 + $0x228] ss:$0 sps:$4 sm:$0x11]  }
  0x70   :  { %11948 = vmatprep.mubr.msk.bf16.mxu1 %vm107_vm1, %v5740_v9  ;;  %v5767_v39 = vor.u32 %v5765_v34, %v5763_v24  ;;  %v5771_v0 = vrot.slane %v5769_v59, 1  ;;  %v756_v9 = vshll.u32 %v13172_v58, 16  ;;  %v743_v12 = vsel %vm675_vm3, %v738_v28, %v742_v5 }
  0x71   :  { %v5764_v7 = vsel %vm675_vm3, %v5759_v18, %v5763_v24  ;;  %v751_v33 = vsel %vm675_vm3, %v746_v20, %v750_v27  ;;  %v5773_v14 = vshrl.u32 %v13171_v45, 16  ;;  %v760_v21 = vshrl.u32 %v13172_v58, 16 }
  0x72   :  { %v764_v22 = vshll.u32 %v13174_v61, 16  ;;  %v5772_v30 = vsel %vm675_vm3, %v5767_v39, %v5771_v0  ;;  %v5781_v31 = vshrl.u32 %v13173_v51, 16  ;;  %v5785_v41 = vshll.u32 %v13175_v1, 16 }
  0x73   :  { %v758_v43 = vrot.slane %v756_v9, 1  ;;  %v754_v32 = vor.u32 %v752_v11, %v750_v27  ;;  %v5779_v49 = vrot.slane %v5777_v40, 1  ;;  %v5775_v45 = vor.u32 %v5773_v14, %v5771_v0 }
  0x74   :  { %v766_v47 = vrot.slane %v764_v22, 1  ;;  %v768_v53 = vshrl.u32 %v13174_v61, 16  ;;  %v772_v63 = vshll.u32 %v13176_v48, 16  ;;  %v5789_v5 = vshrl.u32 %v13175_v1, 16 }
  0x75   :  { %v5780_v34 = vsel %vm675_vm3, %v5775_v45, %v5779_v49  ;;  %v5793_v58 = vshll.u32 %v13177_v52, 16  ;;  %v6030_v39 = vshrl.u32 %v13621_v56, 16  ;;  %v6033_v0 = vshll.u32 %v13621_v56, 16 }
  0x76   :  { %11533 = vmatmul.mubr.msk.bf16.gmra.mrb[8].mxu0 %vm107_vm1, %v727_v29  ;;  %v762_v29 = vor.u32 %v760_v21, %v758_v43  ;;  %v770_v18 = vor.u32 %v768_v53, %v766_v47  ;;  %v774_v24 = vrot.slane %v772_v63, 1  ;;  %v1020_v1 = vshrl.u32 %v13626_v57, 16 }
  0x77   :  { %11949 = vmatmul.mubr.msk.bf16.gmra.mrb[8].mxu1 %vm107_vm1, %v5748_v35  ;;  %11536 = vmatprep.mubr.msk.bf16.mxu0 %vm107_vm1, %v735_v37  ;;  %v5783_v35 = vor.u32 %v5781_v31, %v5779_v49  ;;  %v5787_v37 = vrot.slane %v5785_v41, 1  ;;  %v5795_v20 = vrot.slane %v5793_v58, 1  ;;  %v1023_v9 = vshll.u32 %v13626_v57, 16 }
  0x78   :  { %11952 = vmatprep.mubr.msk.bf16.mxu1 %vm107_vm1, %v5756_v54  ;;  %v759_v54 = vsel %vm675_vm3, %v754_v32, %v758_v43  ;;  %v767_v59 = vsel %vm675_vm3, %v762_v29, %v766_v47  ;;  %v775_v27 = vsel %vm675_vm3, %v770_v18, %v774_v24  ;;  %v6039_v56 = vshrl.u32 %v13633_v60, 16 }
  0x79   :  { %v5788_v28 = vsel %vm675_vm3, %v5783_v35, %v5787_v37  ;;  %v5791_v51 = vor.u32 %v5789_v5, %v5787_v37  ;;  %v6042_v11 = vshll.u32 %v13633_v60, 16  ;;  %v6032_v40 = vrot.slane %v6030_v39, 2 }
  0x7a   :  { %v1025_v14 = vrot.slane %v1023_v9, 3  ;;  %v1029_v21 = vshrl.u32 %v13648_v3, 16  ;;  %v1032_v57 = vshll.u32 %v13648_v3, 16  ;;  %v6048_v60 = vshrl.u32 %v13653_v4, 16 }
  0x7b   :  { %v5796_v61 = vsel %vm675_vm3, %v5791_v51, %v5795_v20  ;;  %v6044_v22 = vrot.slane %v6042_v11, 3  ;;  %v1038_v3 = vshrl.u32 %v13665_v8, 16  ;;  %v1041_v31 = vshll.u32 %v13665_v8, 16 }
  0x7c   :  { %v1031_v48 = vrot.slane %v1029_v21, 2  ;;  %v6057_v32 = vshrl.u32 %v13673_v10, 16  ;;  %v6050_v8 = vrot.slane %v6048_v60, 2  ;;  %v1047_v37 = vshrl.u32 %v13693_v16, 16 }
  0x7d   :  { %v1043_v45 = vrot.slane %v1041_v31, 3  ;;  %v1050_v53 = vshll.u32 %v13693_v16, 16  ;;  %v6075_v5 = vshrl.u32 %v13712_v23, 16  ;;  %v6078_v16 = vshll.u32 %v13712_v23, 16 }
  0x7e   :  { %11537 = vmatmul.mubr.msk.bf16.gmra.mrb[12].mxu0 %vm107_vm1, %v743_v12  ;;  %v1406_v12 = vsel %vm144_vm0, %v13873_v44, 0  ;;  %v6041_v44 = vrot.slane %v6039_v56, 2  ;;  %v6059_v52 = vrot.slane %v6057_v32, 2  ;;  %v1049_v58 = vrot.slane %v1047_v37, 2 }
  0x7f   :  { %11953 = vmatmul.mubr.msk.bf16.gmra.mrb[12].mxu1 %vm107_vm1, %v5764_v7  ;;  %11540 = vmatprep.mubr.msk.bf16.mxu0 %vm107_vm1, %v751_v33  ;;  %v6424_v7 = vsel %vm144_vm0, %v13880_v36, 0  ;;  %v6035_v33 = vrot.slane %v6033_v0, 3  ;;  %v14034_v36 = vld [vmem:[%s16563_s1 + $0x14] sm:$0xf]  ;;  %v6080_v0 = vrot.slane %v6078_v16, 3  ;;  %v1065_v23 = vshrl.u32 %v13719_v25, 16 }
  0x80   :  { %11956 = vmatprep.mubr.msk.bf16.mxu1 %vm107_vm1, %v5772_v30  ;;  %v6051_v30 = vshll.u32 %v13653_v4, 16  ;;  %v6045_v4 = vor.u32 %v6044_v22, %v6041_v44  ;;  %v1068_v9 = vshll.u32 %v13719_v25, 16  ;;  %v1074_v56 = vshrl.u32 %v13747_v38, 16  ;;  %v13182_v16 = vld [vmem:[%s16564_s0 + $0xec] sm:$0xff]  }
  0x81   :  { %v6036_v41 = vor.u32 %v6035_v33, %v6032_v40  ;;  %v1077_v11 = vshll.u32 %v13747_v38, 16  ;;  %v13179_v38 = vld [vmem:[%s16564_s0 + $0x298] ss:$0 sps:$4 sm:$0x77]  }
  0x82   :  { %v6053_v49 = vrot.slane %v6051_v30, 3  ;;  %v1070_v22 = vrot.slane %v1068_v9, 3  ;;  %v13195_v9 = vld [vmem:[%s16564_s0 + $0x2e4] sm:$0xff]  }
  0x83   :  { %v6037_v29 = vsel %vm974_vm4, %v13924_v55, %v6036_v41  ;;  %v6046_v47 = vsel %vm974_vm4, %v6036_v41, %v6045_v4  ;;  %v1079_v31 = vrot.slane %v1077_v11, 3  ;;  %v13199_v11 = vld [vmem:[%s16564_s0 + $0x2f4] sm:$0xff]  }
  0x84   :  { %v6054_v55 = vor.u32 %v6053_v49, %v6050_v8 }
  0x86   :  { %11541 = vmatmul.mubr.msk.bf16.gmra.mrb[16].mxu0 %vm107_vm1, %v759_v54  ;;  %v6069_v54 = vshll.u32 %v13698_v17, 16  ;;  %v6055_v24 = vsel %vm974_vm4, %v6045_v4, %v6054_v55 }
  0x87   :  { %11957 = vmatmul.mubr.msk.bf16.gmra.mrb[16].mxu1 %vm107_vm1, %v5780_v34  ;;  %11544 = vmatprep.mubr.msk.bf16.mxu0 %vm107_vm1, %v767_v59  ;;  %v1056_v34 = vshrl.u32 %v13704_v19, 16 }
  0x88   :  { %11960 = vmatprep.mubr.msk.bf16.mxu1 %vm107_vm1, %v5788_v28  ;;  %v1052_v28 = vrot.slane %v1050_v53, 3  ;;  %v6071_v20 = vrot.slane %v6069_v54, 3 }
  0x8e   :  { %11545 = vmatmul.mubr.msk.bf16.gmra.mrb[20].mxu0 %vm107_vm1, %v775_v27  ;;  %v1058_v27 = vrot.slane %v1056_v34, 2 }
  0x8f   :  { %11961 = vmatmul.mubr.msk.bf16.gmra.mrb[20].mxu1 %vm107_vm1, %v5796_v61  ;;  %11550 = vmatprep.mubr.msk.bf16.mxu0 %vm107_vm1, %v13865_v13  ;;  %v1022_v13 = vrot.slane %v1020_v1, 2  ;;  %v1053_v1 = vor.u32 %v1052_v28, %v1049_v58  ;;  %v13183_v58 = vld [vmem:[%s16564_s0 + $0x2b4] sm:$0xff]  }
  0x90   :  { %11966 = vmatprep.mubr.msk.bf16.mxu1 %vm107_vm1, %v13868_v42  ;;  %v14029_v42 = vld [vmem:[%s16563_s1 + $0x14] sm:$0xf] }
  0x91   :  { %v1026_v43 = vor.u32 %v1025_v14, %v1022_v13  ;;  %v16648_v13 = vld [vmem:[#allocation2_spill] sm:$0xff]  ;;  %v1713_v28 = vsel %vm144_vm0, %v14029_v42, 0 }
  0x92   :  { %v6093_v14 = vshrl.u32 %v16648_v13, 16  ;;  %v6096_v25 = vshll.u32 %v16648_v13, 16  ;;  %v14219_v13 = vld [vmem:[%s16564_s0 + $0x15c] sm:$0xff]  }
  0x96   :  { %11551 = vmatmul.mubr.msk.bf16.vlgmr.msra.gmra.mrb[0].mxu0 %vm107_vm1, %v13890_v46  ;;  %v1034_v46 = vrot.slane %v1032_v57, 3  ;;  %v13178_v57 = vld [vmem:[%s16564_s0 + $0xd0] ss:$0 sps:$4 sm:$0x77]  }
  0x97   :  { %11967 = vmatmul.mubr.msk.bf16.vlgmr.msra.gmra.mrb[0].mxu1 %vm107_vm1, %v13900_v15  ;;  %11575 = vmatpush3.bf16.msra.mxu0 %v1406_v12  ;;  %v6060_v15 = vshll.u32 %v13673_v10, 16  ;;  %v6084_v12 = vshrl.u32 %v13724_v26, 16  ;;  %v1086_v8 = vshll.u32 %v13178_v57, 16 }
  0x98   :  { %11991 = vmatpush3.bf16.msra.mxu1 %v6424_v7  ;;  %11554 = vmatprep.mubr.msk.bf16.mxu0 %vm107_vm1, %v13930_v2  ;;  %v1040_v2 = vrot.slane %v1038_v3, 2  ;;  %v1035_v35 = vor.u32 %v1034_v46, %v1031_v48  ;;  %v6087_v7 = vshll.u32 %v13724_v26, 16  ;;  %v1067_v26 = vrot.slane %v1065_v23, 2  ;;  %v13194_v23 = vld [vmem:[%s16564_s0 + $0x11c] sm:$0xff]  }
  0x99   :  { %11970 = vmatprep.mubr.msk.bf16.mxu1 %vm107_vm1, %v13940_v62  ;;  %13075 = vmatprep.subr.msk.bf16.mxu0 %vm144_vm0, %v14029_v42  ;;  %v1027_v62 = vsel %vm974_vm4, %v13932_v50, %v1026_v43  ;;  %v6062_v10 = vrot.slane %v6060_v15, 3  ;;  %v6066_v50 = vshrl.u32 %v13698_v17, 16  ;;  %v6086_v60 = vrot.slane %v6084_v12, 2  ;;  %v14148_v42 = vld [vmem:[%s16563_s1 + $0x18] sm:$0xf]  ;;  %v13196_v12 = vld [vmem:[%s16564_s0 + $0x124] sm:$0xff]  }
  0x9a   :  { %13091 = vmatprep.subr.msk.bf16.mxu1 %vm144_vm0, %v14034_v36  ;;  %v1044_v63 = vor.u32 %v1043_v45, %v1040_v2  ;;  %v1036_v18 = vsel %vm974_vm4, %v1026_v43, %v1035_v35  ;;  %v6089_v30 = vrot.slane %v6087_v7, 3  ;;  %v1076_v3 = vrot.slane %v1074_v56, 2  ;;  %v13197_v7 = vld [vmem:[%s16564_s0 + $0x2ec] sm:$0xff]  }
  0x9b   :  { %v6063_v59 = vor.u32 %v6062_v10, %v6059_v52  ;;  %v6068_v17 = vrot.slane %v6066_v50, 2  ;;  %v6095_v48 = vrot.slane %v6093_v14, 2  ;;  %v6098_v46 = vrot.slane %v6096_v25, 3  ;;  %v13198_v56 = vld [vmem:[%s16564_s0 + $0x12c] sm:$0xff]   ;;  %v14224_v14 = vld [vmem:[%s16564_s0 + $0x324] sm:$0xff]  }
  0x9c   :  { %v1045_v51 = vsel %vm974_vm4, %v1035_v35, %v1044_v63  ;;  %v1054_v44 = vsel %vm974_vm4, %v1044_v63, %v1053_v1  ;;  %v1071_v32 = vor.u32 %v1070_v22, %v1067_v26  ;;  %v1083_v15 = vshrl.u32 %v13178_v57, 16  ;;  %v14229_v25 = vld [vmem:[%s16564_s0 + $0x154] sm:$0xfc]   ;;  %v13202_v26 = vld [vmem:[%s16564_s0 + $0x13c] sm:$0xff]   ;;  %v13203_v22 = vld [vmem:[%s16564_s0 + $0x304] sm:$0xff]  }
  0x9d   :  { %v6064_v39 = vsel %vm974_vm4, %v6054_v55, %v6063_v59  ;;  %v6072_v40 = vor.u32 %v6071_v20, %v6068_v17  ;;  %v6090_v49 = vor.u32 %v6089_v30, %v6086_v60  ;;  %v1080_v2 = vor.u32 %v1079_v31, %v1076_v3  ;;  %v14142_v17 = vld [vmem:[%s16563_s1 + $0x18] sm:$0xf]  ;;  %v13187_v20 = vld [vmem:[%s16564_s0 + $0x2c4] sm:$0xff]   ;;  %v14258_v3 = vld [vmem:[%s16564_s0 + $0x32c] sm:$0xff]  }
  0x9e   :  { %11555 = vmatmul.mubr.msk.bf16.gmra.mrb[4].mxu0 %vm107_vm1, %v13945_v6  ;;  %v1059_v6 = vshll.u32 %v13704_v19, 16  ;;  %v6077_v19 = vrot.slane %v6075_v5, 2  ;;  %v6102_v45 = vshrl.u32 %v13179_v38, 16  ;;  %v1085_v52 = vrot.slane %v1083_v15, 2  ;;  %v13181_v5 = vld [vmem:[%s16564_s0 + $0x2ac] sm:$0xff]   ;;  %v14253_v30 = vld [vmem:[%s16564_s0 + $0x164] sm:$0xff]  }
  0x9f   :  { %11971 = vmatmul.mubr.msk.bf16.gmra.mrb[4].mxu1 %vm107_vm1, %v6037_v29  ;;  %11558 = vmatprep.mubr.msk.bf16.mxu0 %vm107_vm1, %v1027_v62  ;;  %v6073_v41 = vsel %vm974_vm4, %v6063_v59, %v6072_v40  ;;  %v6105_v29 = vshll.u32 %v13179_v38, 16  ;;  %v6099_v62 = vor.u32 %v6098_v46, %v6095_v48  ;;  %v1088_v10 = vrot.slane %v1086_v8, 3  ;;  %v14263_v31 = vld [vmem:[%s16564_s0 + $0x16c] sm:$0xff]   ;;  %v14270_v48 = vld [vmem:[%s16564_s0 + $0x334] sm:$0xff]  }
  0xa0   :  { %11974 = vmatprep.mubr.msk.bf16.mxu1 %vm107_vm1, %v6046_v47  ;;  %v1061_v61 = vrot.slane %v1059_v6, 3  ;;  %v6081_v21 = vor.u32 %v6080_v0, %v6077_v19  ;;  %v1081_v37 = vsel %vm974_vm4, %v1071_v32, %v1080_v2  ;;  %v6104_v53 = vrot.slane %v6102_v45, 2  ;;  %v13180_v6 = vld [vmem:[%s16564_s0 + $0xe4] sm:$0xff]   ;;  %v13191_v19 = vld [vmem:[%s16564_s0 + $0x2d4] sm:$0xff]  }
  0xa1   :  { %v6107_v55 = vrot.slane %v6105_v29, 3  ;;  %v6100_v63 = vsel %vm974_vm4, %v6090_v49, %v6099_v62  ;;  %v1089_v50 = vor.u32 %v1088_v10, %v1085_v52  ;;  %v13192_v0 = vld [vmem:[%s16564_s0 + $0x114] sm:$0xff]   ;;  %v1651_v57 = vrot.slane %v14229_v25, 2  ;;  %v14296_v29 = vld [vmem:[%s16564_s0 + $0x17c] sm:$0xff]   ;;  %v14305_v10 = vld [vmem:[%s16564_s0 + $0x344] sm:$0xff]  }
  0xa2   :  { %v1062_v33 = vor.u32 %v1061_v61, %v1058_v27  ;;  %v6082_v4 = vsel %vm974_vm4, %v6072_v40, %v6081_v21  ;;  %v6091_v35 = vsel %vm974_vm4, %v6081_v21, %v6090_v49  ;;  %v13188_v27 = vld [vmem:[%s16564_s0 + $0x104] sm:$0xff]   ;;  %v13189_v61 = vld [vmem:[%s16564_s0 + $0x2cc] sm:$0xff]   ;;  %v13200_v40 = vld [vmem:[%s16564_s0 + $0x134] sm:$0xff]   ;;  %v6669_v60 = vrot.slane %v14224_v14, 2 }
  0xa3   :  { %v6108_v54 = vor.u32 %v6107_v55, %v6104_v53  ;;  %v1090_v34 = vsel %vm974_vm4, %v1080_v2, %v1089_v50  ;;  %v14234_v21 = vld [vmem:[%s16564_s0 + $0x31c] sm:$0xfc]   ;;  %v1654_v46 = vrot.slane %v14253_v30, 2  ;;  %v6673_v15 = vrot.slane %v14270_v48, 2  ;;  %v14283_v8 = vld [vmem:[%s16564_s0 + $0x174] sm:$0xff]  }
  0xa4   :  { %v1063_v43 = vsel %vm974_vm4, %v1053_v1, %v1062_v33  ;;  %v1072_v47 = vsel %vm974_vm4, %v1062_v33, %v1071_v32  ;;  %v13193_v1 = vld [vmem:[%s16564_s0 + $0x2dc] sm:$0xff]   ;;  %v6668_v38 = vrot.slane %v14234_v21, 2  ;;  %v1656_v32 = vrot.slane %v14263_v31, 2 }
  0xa5   :  { %v6109_v59 = vsel %vm974_vm4, %v6099_v62, %v6108_v54  ;;  %v13201_v33 = vld [vmem:[%s16564_s0 + $0x2fc] sm:$0xff]   ;;  %v2095_v45 = vsel %vm144_vm0, %v14142_v17, 0  ;;  %v1658_v53 = vrot.slane %v14283_v8, 2  ;;  %v1660_v50 = vrot.slane %v14296_v29, 2 }
  0xa6   :  { %11559 = vmatmul.mubr.msk.bf16.gmra.mrb[8].mxu0 %vm107_vm1, %v1036_v18  ;;  %v13184_v18 = vld [vmem:[%s16564_s0 + $0xf4] sm:$0xff]   ;;  %v14288_v49 = vld [vmem:[%s16564_s0 + $0x33c] sm:$0xff]   ;;  %v1657_v52 = vsel %vm367_vm2, %v1654_v46, %v1656_v32  ;;  %v6677_v54 = vrot.slane %v14305_v10, 2 }
  0xa7   :  { %11975 = vmatmul.mubr.msk.bf16.gmra.mrb[8].mxu1 %vm107_vm1, %v6055_v24  ;;  %11562 = vmatprep.mubr.msk.bf16.mxu0 %vm107_vm1, %v1045_v51  ;;  %v6730_v24 = vsel %vm144_vm0, %v14034_v36, 0  ;;  %v13185_v51 = vld [vmem:[%s16564_s0 + $0x2bc] sm:$0xff]  }
  0xa8   :  { %11978 = vmatprep.mubr.msk.bf16.mxu1 %vm107_vm1, %v6064_v39  ;;  %v13186_v36 = vld [vmem:[%s16564_s0 + $0xfc] sm:$0xff]   ;;  %v13190_v39 = vld [vmem:[%s16564_s0 + $0x10c] sm:$0xff]  }
  0xa9   :  { %v14319_v55 = vld [vmem:[%s16563_s1 + $0x1c] sm:$0xf] }
  0xae   :  { %11563 = vmatmul.mubr.msk.bf16.gmra.mrb[12].mxu0 %vm107_vm1, %v1054_v44  ;;  %v1652_v44 = vrot.slane %v14219_v13, 2 }
  0xaf   :  { %11979 = vmatmul.mubr.msk.bf16.gmra.mrb[12].mxu1 %vm107_vm1, %v6073_v41  ;;  %11566 = vmatprep.mubr.msk.bf16.mxu0 %vm107_vm1, %v1063_v43  ;;  %v6670_v43 = vsel %vm367_vm2, %v6668_v38, %v6669_v60  ;;  %v14419_v38 = vld [vmem:[%s16564_s0 + $0x374] sm:$0xff]  }
  0xb0   :  { %11982 = vmatprep.mubr.msk.bf16.mxu1 %vm107_vm1, %v6082_v4  ;;  %v1653_v41 = vsel %vm367_vm2, %v1651_v57, %v1652_v44  ;;  %v6671_v4 = vrot.slane %v14258_v3, 2  ;;  %v1655_v2 = vsel %vm367_vm2, %v1652_v44, %v1654_v46  ;;  %v14410_v44 = vld [vmem:[%s16564_s0 + $0x1ac] sm:$0xff]  }
  0xb1   :  { %v1672_v46 = vrot.slane %v14410_v44, 2 }
  0xb2   :  { %v6672_v62 = vsel %vm367_vm2, %v6669_v60, %v6671_v4  ;;  %v13232_v60 = vld [vmem:[%s16564_s0 + $0x2ac] sm:$0xff]  }
  0xb6   :  { %11567 = vmatmul.mubr.msk.bf16.gmra.mrb[16].mxu0 %vm107_vm1, %v1072_v47  ;;  %v7111_v47 = vsel %vm144_vm0, %v14148_v42, 0 }
  0xb7   :  { %11983 = vmatmul.mubr.msk.bf16.gmra.mrb[16].mxu1 %vm107_vm1, %v6091_v35  ;;  %11570 = vmatprep.mubr.msk.bf16.mxu0 %vm107_vm1, %v1081_v37  ;;  %v6674_v35 = vsel %vm367_vm2, %v6671_v4, %v6673_v15  ;;  %v14312_v37 = vld [vmem:[%s16563_s1 + $0x1c] sm:$0xf]  ;;  %v13231_v4 = vld [vmem:[%s16564_s0 + $0xec] sm:$0xff]  }
  0xb8   :  { %11986 = vmatprep.mubr.msk.bf16.mxu1 %vm107_vm1, %v6100_v63  ;;  %v6675_v63 = vrot.slane %v14288_v49, 2 }
  0xbe   :  { %11571 = vmatmul.mubr.msk.bf16.gmra.mrb[20].mxu0 %vm107_vm1, %v1090_v34  ;;  %v1659_v34 = vsel %vm367_vm2, %v1656_v32, %v1658_v53 }
  0xbf   :  { %11987 = vmatmul.mubr.msk.bf16.gmra.mrb[20].mxu1 %vm107_vm1, %v6109_v59  ;;  %11576 = vmatprep.mubr.msk.bf16.mxu0 %vm107_vm1, %v13180_v6  ;;  %v14334_v6 = vld [vmem:[%s16564_s0 + $0x184] sm:$0xff]   ;;  %v6676_v59 = vsel %vm367_vm2, %v6673_v15, %v6675_v63  ;;  %v6689_v15 = vrot.slane %v14419_v38, 2 }
  0xc0   :  { %11992 = vmatprep.mubr.msk.bf16.mxu1 %vm107_vm1, %v13181_v5  ;;  %v1661_v5 = vsel %vm367_vm2, %v1658_v53, %v1660_v50  ;;  %v13229_v53 = vld [vmem:[%s16564_s0 + $0x37c] ss:$0 sps:$4 sm:$0x33]  }
  0xc6   :  { %11577 = vmatmul.mubr.msk.bf16.vlgmr.msra.gmra.mrb[0].mxu0 %vm107_vm1, %v13182_v16  ;;  %v14341_v16 = vld [vmem:[%s16564_s0 + $0x34c] sm:$0xff]  }
  0xc7   :  { %11993 = vmatmul.mubr.msk.bf16.vlgmr.msra.gmra.mrb[0].mxu1 %vm107_vm1, %v13183_v58  ;;  %11601 = vmatpush3.bf16.msra.mxu0 %v1713_v28  ;;  %v14346_v58 = vld [vmem:[%s16564_s0 + $0x18c] sm:$0xff]   ;;  %v6678_v28 = vsel %vm367_vm2, %v6675_v63, %v6677_v54 }
  0xc8   :  { %12017 = vmatpush3.bf16.msra.mxu1 %v6730_v24  ;;  %11580 = vmatprep.mubr.msk.bf16.mxu0 %vm107_vm1, %v13184_v18  ;;  %v14352_v18 = vld [vmem:[%s16564_s0 + $0x354] sm:$0xff]   ;;  %v1662_v24 = vrot.slane %v14334_v6, 2 }
  0xc9   :  { %11996 = vmatprep.mubr.msk.bf16.mxu1 %vm107_vm1, %v13185_v51  ;;  %13076 = vmatprep.subr.msk.bf16.mxu0 %vm144_vm0, %v14142_v17  ;;  %v6679_v51 = vrot.slane %v14341_v16, 2  ;;  %v1664_v17 = vrot.slane %v14346_v58, 2 }
  0xca   :  { %13092 = vmatprep.subr.msk.bf16.mxu1 %vm144_vm0, %v14148_v42  ;;  %v6681_v42 = vrot.slane %v14352_v18, 2 }
  0xce   :  { %11581 = vmatmul.mubr.msk.bf16.gmra.mrb[4].mxu0 %vm107_vm1, %v13186_v36  ;;  %v1663_v36 = vsel %vm367_vm2, %v1660_v50, %v1662_v24 }
  0xcf   :  { %11997 = vmatmul.mubr.msk.bf16.gmra.mrb[4].mxu1 %vm107_vm1, %v13187_v20  ;;  %11584 = vmatprep.mubr.msk.bf16.mxu0 %vm107_vm1, %v13188_v27  ;;  %v14366_v20 = vld [vmem:[%s16564_s0 + $0x194] sm:$0xff]   ;;  %v6680_v27 = vsel %vm367_vm2, %v6677_v54, %v6679_v51  ;;  %v1966_v54 = vshll.u32 %v13231_v4, 16 }
  0xd0   :  { %12000 = vmatprep.mubr.msk.bf16.mxu1 %vm107_vm1, %v13189_v61  ;;  %v1665_v61 = vsel %vm367_vm2, %v1662_v24, %v1664_v17 }
  0xd6   :  { %11585 = vmatmul.mubr.msk.bf16.gmra.mrb[8].mxu0 %vm107_vm1, %v13190_v39  ;;  %v14373_v39 = vld [vmem:[%s16564_s0 + $0x35c] sm:$0xff]  }
  0xd7   :  { %12001 = vmatmul.mubr.msk.bf16.gmra.mrb[8].mxu1 %vm107_vm1, %v13191_v19  ;;  %11588 = vmatprep.mubr.msk.bf16.mxu0 %vm107_vm1, %v13192_v0  ;;  %v14378_v19 = vld [vmem:[%s16564_s0 + $0x19c] sm:$0xff]   ;;  %v6682_v0 = vsel %vm367_vm2, %v6679_v51, %v6681_v42  ;;  %v13234_v51 = vld [vmem:[%s16564_s0 + $0xf4] sm:$0xff]  }
  0xd8   :  { %12004 = vmatprep.mubr.msk.bf16.mxu1 %vm107_vm1, %v13193_v1  ;;  %v14384_v1 = vld [vmem:[%s16564_s0 + $0x364] sm:$0xff]  }
  0xde   :  { %11589 = vmatmul.mubr.msk.bf16.gmra.mrb[12].mxu0 %vm107_vm1, %v13194_v23  ;;  %v1666_v23 = vrot.slane %v14366_v20, 2 }
  0xdf   :  { %12005 = vmatmul.mubr.msk.bf16.gmra.mrb[12].mxu1 %vm107_vm1, %v13195_v9  ;;  %11592 = vmatprep.mubr.msk.bf16.mxu0 %vm107_vm1, %v13196_v12  ;;  %v6683_v9 = vrot.slane %v14373_v39, 2  ;;  %v1668_v12 = vrot.slane %v14378_v19, 2 }
  0xe0   :  { %12008 = vmatprep.mubr.msk.bf16.mxu1 %vm107_vm1, %v13197_v7  ;;  %v6685_v7 = vrot.slane %v14384_v1, 2 }
  0xe1   :  { %v1669_v57 = vsel %vm367_vm2, %v1666_v23, %v1668_v12 }
  0xe6   :  { %11593 = vmatmul.mubr.msk.bf16.gmra.mrb[16].mxu0 %vm107_vm1, %v13198_v56  ;;  %v1667_v56 = vsel %vm367_vm2, %v1664_v17, %v1666_v23  ;;  %v6691_v17 = vrot.slane %v13229_v53, 2  ;;  %v13236_v23 = vld [vmem:[%s16564_s0 + $0xfc] sm:$0xff]  }
  0xe7   :  { %12009 = vmatmul.mubr.msk.bf16.gmra.mrb[16].mxu1 %vm107_vm1, %v13199_v11  ;;  %11596 = vmatprep.mubr.msk.bf16.mxu0 %vm107_vm1, %v13200_v40  ;;  %v14398_v11 = vld [vmem:[%s16564_s0 + $0x1a4] sm:$0xff]   ;;  %v14403_v40 = vld [vmem:[%s16564_s0 + $0x36c] sm:$0xff]  }
  0xe8   :  { %12012 = vmatprep.mubr.msk.bf16.mxu1 %vm107_vm1, %v13201_v33  ;;  %v6684_v33 = vsel %vm367_vm2, %v6681_v42, %v6683_v9 }
  0xee   :  { %11597 = vmatmul.mubr.msk.bf16.gmra.mrb[20].mxu0 %vm107_vm1, %v13202_v26  ;;  %v13230_v26 = vld [vmem:[%s16564_s0 + $0xe4] sm:$0xff]  }
  0xef   :  { %12013 = vmatmul.mubr.msk.bf16.gmra.mrb[20].mxu1 %vm107_vm1, %v13203_v22  ;;  %11602 = vmatprep.mubr.msk.bf16.mxu0 %vm107_vm1, %v1653_v41  ;;  %v6686_v22 = vsel %vm367_vm2, %v6683_v9, %v6685_v7  ;;  %v1670_v41 = vrot.slane %v14398_v11, 2  ;;  %v1961_v32 = vshll.u32 %v13230_v26, 16  ;;  %v1959_v63 = vshrl.u32 %v13230_v26, 16  ;;  %v13237_v9 = vld [vmem:[%s16564_s0 + $0x2c4] sm:$0xff]  }
  0xf0   :  { %12018 = vmatprep.mubr.msk.bf16.mxu1 %vm107_vm1, %v6670_v43  ;;  %v6687_v43 = vrot.slane %v14403_v40, 2 }
  0xf1   :  { %v1963_v50 = vrot.slane %v1961_v32, 1 }
  0xf3   :  { %v1964_v42 = vor.u32 %v1963_v50, %v1959_v63  ;;  %v13241_v63 = vld [vmem:[%s16564_s0 + $0x2d4] sm:$0xff]  }
  0xf6   :  { %11603 = vmatmul.mubr.msk.bf16.vlgmr.msra.gmra.mrb[0].mxu0 %vm107_vm1, %v1655_v2  ;;  %v13233_v2 = vld [vmem:[%s16564_s0 + $0x2b4] sm:$0xff]  }
  0xf7   :  { %12019 = vmatmul.mubr.msk.bf16.vlgmr.msra.gmra.mrb[0].mxu1 %vm107_vm1, %v6672_v62  ;;  %11627 = vmatpush3.bf16.msra.mxu0 %v2095_v45  ;;  %v6977_v45 = vshll.u32 %v13232_v60, 16  ;;  %v1671_v62 = vsel %vm367_vm2, %v1668_v12, %v1670_v41  ;;  %v6986_v26 = vshrl.u32 %v13233_v2, 16 }
  0xf8   :  { %12043 = vmatpush3.bf16.msra.mxu1 %v7111_v47  ;;  %11606 = vmatprep.mubr.msk.bf16.mxu0 %vm107_vm1, %v1657_v52  ;;  %v6688_v47 = vsel %vm367_vm2, %v6685_v7, %v6687_v43  ;;  %v13228_v52 = vld [vmem:[%s16564_s0 + $0x1b4] ss:$0 sps:$4 sm:$0x33]   ;;  %v1970_v7 = vshrl.u32 %v13231_v4, 16 }
  0xf9   :  { %12022 = vmatprep.mubr.msk.bf16.mxu1 %vm107_vm1, %v6674_v35  ;;  %13077 = vmatprep.subr.msk.bf16.mxu0 %vm144_vm0, %v14312_v37  ;;  %v1673_v35 = vsel %vm367_vm2, %v1670_v41, %v1672_v46  ;;  %v1674_v24 = vrot.slane %v13228_v52, 2  ;;  %v1978_v41 = vshrl.u32 %v13234_v51, 16  ;;  %v13240_v52 = vld [vmem:[%s16564_s0 + $0x10c] sm:$0xff]  }
  0xfa   :  { %13093 = vmatprep.subr.msk.bf16.mxu1 %vm144_vm0, %v14319_v55 }
  0xfb   :  { %v1675_v12 = vsel %vm367_vm2, %v1672_v46, %v1674_v24  ;;  %v13238_v46 = vld [vmem:[%s16564_s0 + $0x104] sm:$0xff]  }
  0xfe   :  { %11607 = vmatmul.mubr.msk.bf16.gmra.mrb[4].mxu0 %vm107_vm1, %v1659_v34  ;;  %v6690_v34 = vsel %vm367_vm2, %v6687_v43, %v6689_v15  ;;  %v1982_v43 = vshll.u32 %v13236_v23, 16 }
  0xff   :  { %12023 = vmatmul.mubr.msk.bf16.gmra.mrb[4].mxu1 %vm107_vm1, %v6676_v59  ;;  %11610 = vmatprep.mubr.msk.bf16.mxu0 %vm107_vm1, %v1661_v5  ;;  %v6975_v59 = vshrl.u32 %v13232_v60, 16  ;;  %v6979_v5 = vrot.slane %v6977_v45, 1  ;;  %v6998_v45 = vshll.u32 %v13237_v9, 16 }
 0x100   :  { %12026 = vmatprep.mubr.msk.bf16.mxu1 %vm107_vm1, %v6678_v28  ;;  %v6982_v28 = vshll.u32 %v13233_v2, 16  ;;  %v13239_v2 = vld [vmem:[%s16564_s0 + $0x2cc] sm:$0xff]   ;;  %v1984_v53 = vrot.slane %v1982_v43, 1 }
 0x101   :  { %v7006_v24 = vshll.u32 %v13239_v2, 16 }
 0x106   :  { %11611 = vmatmul.mubr.msk.bf16.gmra.mrb[8].mxu0 %vm107_vm1, %v1663_v36  ;;  %v1968_v36 = vrot.slane %v1966_v54, 1  ;;  %v7000_v54 = vrot.slane %v6998_v45, 1  ;;  %v13245_v45 = vld [vmem:[%s16564_s0 + $0x2e4] sm:$0xff]  }
 0x107   :  { %12027 = vmatmul.mubr.msk.bf16.gmra.mrb[8].mxu1 %vm107_vm1, %v6680_v27  ;;  %11614 = vmatprep.mubr.msk.bf16.mxu0 %vm107_vm1, %v1665_v61  ;;  %v13235_v27 = vld [vmem:[%s16564_s0 + $0x2bc] sm:$0xff]   ;;  %v6980_v61 = vor.u32 %v6979_v5, %v6975_v59  ;;  %v2409_v5 = vsel %vm144_vm0, %v14312_v37, 0  ;;  %v13242_v37 = vld [vmem:[%s16564_s0 + $0x114] sm:$0xff]  }
 0x108   :  { %12030 = vmatprep.mubr.msk.bf16.mxu1 %vm107_vm1, %v6682_v0  ;;  %v6984_v0 = vrot.slane %v6982_v28, 1  ;;  %v6994_v32 = vshrl.u32 %v13235_v27, 16  ;;  %v1972_v4 = vor.u32 %v1970_v7, %v1968_v36  ;;  %v1986_v28 = vshrl.u32 %v13236_v23, 16  ;;  %v14499_v23 = vld [vmem:[%s16563_s1 + $0x20] sm:$0xf] }
 0x10a   :  { %v6985_v60 = vsel %vm675_vm3, %v6980_v61, %v6984_v0 }
 0x10e   :  { %11615 = vmatmul.mubr.msk.bf16.gmra.mrb[12].mxu0 %vm107_vm1, %v1667_v56  ;;  %v1974_v56 = vshll.u32 %v13234_v51, 16 }
 0x10f   :  { %12031 = vmatmul.mubr.msk.bf16.gmra.mrb[12].mxu1 %vm107_vm1, %v6684_v33  ;;  %11618 = vmatprep.mubr.msk.bf16.mxu0 %vm107_vm1, %v1669_v57  ;;  %v6692_v33 = vsel %vm367_vm2, %v6689_v15, %v6691_v17  ;;  %v1969_v57 = vsel %vm675_vm3, %v1964_v42, %v1968_v36  ;;  %v7002_v17 = vshrl.u32 %v13237_v9, 16  ;;  %v1994_v42 = vshrl.u32 %v13238_v46, 16 }
 0x110   :  { %12034 = vmatprep.mubr.msk.bf16.mxu1 %vm107_vm1, %v6686_v22  ;;  %v6990_v22 = vshll.u32 %v13235_v27, 16  ;;  %v1976_v15 = vrot.slane %v1974_v56, 1  ;;  %v1998_v36 = vshll.u32 %v13240_v52, 16  ;;  %v7424_v27 = vsel %vm144_vm0, %v14319_v55, 0 }
 0x111   :  { %v1988_v55 = vor.u32 %v1986_v28, %v1984_v53  ;;  %v7008_v9 = vrot.slane %v7006_v24, 1  ;;  %v13246_v28 = vld [vmem:[%s16564_s0 + $0x124] sm:$0xff]  }
 0x112   :  { %v1977_v59 = vsel %vm675_vm3, %v1972_v4, %v1976_v15 }
 0x116   :  { %11619 = vmatmul.mubr.msk.bf16.gmra.mrb[16].mxu0 %vm107_vm1, %v1671_v62  ;;  %v6988_v62 = vor.u32 %v6986_v26, %v6984_v0  ;;  %v7010_v0 = vshrl.u32 %v13239_v2, 16  ;;  %v7004_v26 = vor.u32 %v7002_v17, %v7000_v54  ;;  %v7018_v2 = vshrl.u32 %v13241_v63, 16  ;;  %v14538_v17 = vld [vmem:[%s16564_s0 + $0x84] sm:$0xf] }
 0x117   :  { %12035 = vmatmul.mubr.msk.bf16.gmra.mrb[16].mxu1 %vm107_vm1, %v6688_v47  ;;  %11622 = vmatprep.mubr.msk.bf16.mxu0 %vm107_vm1, %v1673_v35  ;;  %v6992_v47 = vrot.slane %v6990_v22, 1  ;;  %v1980_v35 = vor.u32 %v1978_v41, %v1976_v15  ;;  %v13244_v41 = vld [vmem:[%s16564_s0 + $0x11c] sm:$0xff]   ;;  %v2002_v15 = vshrl.u32 %v13240_v52, 16  ;;  %16649 = vst [vmem:[#allocation2_spill] sm:$0xff] %v14538_v17 }
 0x118   :  { %12038 = vmatprep.mubr.msk.bf16.mxu1 %vm107_vm1, %v6690_v34  ;;  %v1990_v34 = vshll.u32 %v13238_v46, 16  ;;  %v7012_v43 = vor.u32 %v7010_v0, %v7008_v9  ;;  %v2006_v46 = vshll.u32 %v13242_v37, 16 }
 0x119   :  { %v6996_v50 = vor.u32 %v6994_v32, %v6992_v47  ;;  %v6993_v51 = vsel %vm675_vm3, %v6988_v62, %v6992_v47  ;;  %v1985_v61 = vsel %vm675_vm3, %v1980_v35, %v1984_v53  ;;  %v7009_v47 = vsel %vm675_vm3, %v7004_v26, %v7008_v9 }
 0x11a   :  { %v1992_v56 = vrot.slane %v1990_v34, 1  ;;  %v2010_v53 = vshrl.u32 %v13242_v37, 16  ;;  %v2018_v37 = vshrl.u32 %v13244_v41, 16  ;;  %v7034_v26 = vshrl.u32 %v13245_v45, 16 }
 0x11b   :  { %v7001_v7 = vsel %vm675_vm3, %v6996_v50, %v7000_v54  ;;  %v2014_v50 = vshll.u32 %v13244_v41, 16  ;;  %v2026_v41 = vshrl.u32 %v13246_v28, 16 }
 0x11c   :  { %v1996_v22 = vor.u32 %v1994_v42, %v1992_v56  ;;  %v1993_v4 = vsel %vm675_vm3, %v1988_v55, %v1992_v56  ;;  %v14543_v42 = vld [vmem:[%s16564_s0 + $0x88] sm:$0xf]  ;;  %v13249_v56 = vld [vmem:[%s16564_s0 + $0x2f4] sm:$0xff]   ;;  %v2022_v55 = vshll.u32 %v13246_v28, 16 }
 0x11d   :  { %16650 = vst [vmem:[#allocation3_spill] sm:$0xff] %v14543_v42 }
 0x11e   :  { %11623 = vmatmul.mubr.msk.bf16.gmra.mrb[20].mxu0 %vm107_vm1, %v1675_v12  ;;  %v7014_v12 = vshll.u32 %v13241_v63, 16 }
 0x11f   :  { %12039 = vmatmul.mubr.msk.bf16.gmra.mrb[20].mxu1 %vm107_vm1, %v6692_v33  ;;  %11628 = vmatprep.mubr.msk.bf16.mxu0 %vm107_vm1, %v1969_v57  ;;  %v13243_v33 = vld [vmem:[%s16564_s0 + $0x2dc] sm:$0xff]  }
 0x120   :  { %12044 = vmatprep.mubr.msk.bf16.mxu1 %vm107_vm1, %v6985_v60  ;;  %v14508_v57 = vld [vmem:[%s16563_s1 + $0x20] sm:$0xf]  ;;  %v2000_v60 = vrot.slane %v1998_v36, 1  ;;  %v7016_v32 = vrot.slane %v7014_v12, 1  ;;  %v7022_v62 = vshll.u32 %v13243_v33, 16  ;;  %v7026_v34 = vshrl.u32 %v13243_v33, 16 }
 0x122   :  { %v2001_v35 = vsel %vm675_vm3, %v1996_v22, %v2000_v60  ;;  %v7017_v54 = vsel %vm675_vm3, %v7012_v43, %v7016_v32  ;;  %v2004_v52 = vor.u32 %v2002_v15, %v2000_v60  ;;  %v7020_v63 = vor.u32 %v7018_v2, %v7016_v32  ;;  %v14559_v60 = vld [vmem:[%s16564_s0 + $0x24c] sm:$0xf]  ;;  %v14564_v43 = vld [vmem:[%s16564_s0 + $0x250] sm:$0xf] }
 0x123   :  { %v7024_v24 = vrot.slane %v7022_v62, 1  ;;  %16651 = vst [vmem:[#allocation4_spill] sm:$0xff] %v14559_v60  ;;  %16652 = vst [vmem:[#allocation5_spill] sm:$0xff] %v14564_v43  ;;  %v7046_v2 = vshll.u32 %v13249_v56, 16  ;;  %v13250_v62 = vld [vmem:[%s16564_s0 + $0x134] sm:$0xff]  }
 0x125   :  { %v7028_v12 = vor.u32 %v7026_v34, %v7024_v24  ;;  %v7025_v33 = vsel %vm675_vm3, %v7020_v63, %v7024_v24  ;;  %v13253_v34 = vld [vmem:[%s16564_s0 + $0x304] sm:$0xff]   ;;  %v7048_v63 = vrot.slane %v7046_v2, 1  ;;  %v2038_v24 = vshll.u32 %v13250_v62, 16 }
 0x126   :  { %11629 = vmatmul.mubr.msk.bf16.vlgmr.msra.gmra.mrb[0].mxu0 %vm107_vm1, %v1977_v59  ;;  %v7030_v59 = vshll.u32 %v13245_v45, 16 }
 0x127   :  { %12045 = vmatmul.mubr.msk.bf16.vlgmr.msra.gmra.mrb[0].mxu1 %vm107_vm1, %v6993_v51  ;;  %11653 = vmatpush3.bf16.msra.mxu0 %v2409_v5  ;;  %v2008_v5 = vrot.slane %v2006_v46, 1  ;;  %v13247_v51 = vld [vmem:[%s16564_s0 + $0x2ec] sm:$0xff]  }
 0x128   :  { %12069 = vmatpush3.bf16.msra.mxu1 %v7424_v27  ;;  %11632 = vmatprep.mubr.msk.bf16.mxu0 %vm107_vm1, %v1985_v61  ;;  %v2016_v27 = vrot.slane %v2014_v50, 1  ;;  %v13248_v61 = vld [vmem:[%s16564_s0 + $0x12c] sm:$0xff]   ;;  %v7038_v22 = vshll.u32 %v13247_v51, 16  ;;  %v7042_v15 = vshrl.u32 %v13247_v51, 16 }
 0x129   :  { %12048 = vmatprep.mubr.msk.bf16.mxu1 %vm107_vm1, %v7001_v7  ;;  %13078 = vmatprep.subr.msk.bf16.mxu0 %vm144_vm0, %v14499_v23  ;;  %v2012_v36 = vor.u32 %v2010_v53, %v2008_v5  ;;  %v7032_v7 = vrot.slane %v7030_v59, 1  ;;  %v2009_v9 = vsel %vm675_vm3, %v2004_v52, %v2008_v5  ;;  %v2030_v46 = vshll.u32 %v13248_v61, 16 }
 0x12a   :  { %13094 = vmatprep.subr.msk.bf16.mxu1 %vm144_vm0, %v14508_v57  ;;  %v2024_v53 = vrot.slane %v2022_v55, 1  ;;  %v7040_v50 = vrot.slane %v7038_v22, 1 }
 0x12b   :  { %v2017_v32 = vsel %vm675_vm3, %v2012_v36, %v2016_v27  ;;  %v7033_v45 = vsel %vm675_vm3, %v7028_v12, %v7032_v7  ;;  %v7036_v59 = vor.u32 %v7034_v26, %v7032_v7  ;;  %v2032_v28 = vrot.slane %v2030_v46, 1 }
 0x12c   :  { %v2028_v5 = vor.u32 %v2026_v41, %v2024_v53  ;;  %v7044_v52 = vor.u32 %v7042_v15, %v7040_v50  ;;  %v7050_v12 = vshrl.u32 %v13249_v56, 16  ;;  %v2040_v26 = vrot.slane %v2038_v24, 1 }
 0x12d   :  { %v7041_v22 = vsel %vm675_vm3, %v7036_v59, %v7040_v50  ;;  %v2265_v50 = vshrl.u32 %v14219_v13, 16  ;;  %v2268_v59 = vshll.u32 %v14219_v13, 16 }
 0x12e   :  { %11633 = vmatmul.mubr.msk.bf16.gmra.mrb[4].mxu0 %vm107_vm1, %v1993_v4  ;;  %v7049_v7 = vsel %vm675_vm3, %v7044_v52, %v7048_v63  ;;  %v7280_v52 = vshrl.u32 %v14224_v14, 16 }
 0x12f   :  { %12049 = vmatmul.mubr.msk.bf16.gmra.mrb[4].mxu1 %vm107_vm1, %v7009_v47  ;;  %11636 = vmatprep.mubr.msk.bf16.mxu0 %vm107_vm1, %v2001_v35  ;;  %v13251_v47 = vld [vmem:[%s16564_s0 + $0x2fc] sm:$0xff]   ;;  %v2020_v35 = vor.u32 %v2018_v37, %v2016_v27  ;;  %v2034_v27 = vshrl.u32 %v13248_v61, 16  ;;  %v2042_v37 = vshrl.u32 %v13250_v62, 16  ;;  %v13254_v61 = vld [vmem:[%s16564_s0 + $0x144] ss:$0 sps:$4 sm:$0x11]  }
 0x130   :  { %12052 = vmatprep.mubr.msk.bf16.mxu1 %vm107_vm1, %v7017_v54  ;;  %v13252_v54 = vld [vmem:[%s16564_s0 + $0x13c] sm:$0xff]   ;;  %v7054_v51 = vshll.u32 %v13251_v47, 16 }
 0x131   :  { %v2025_v36 = vsel %vm675_vm3, %v2020_v35, %v2024_v53  ;;  %v2046_v55 = vshll.u32 %v13252_v54, 16  ;;  %v2036_v46 = vor.u32 %v2034_v27, %v2032_v28  ;;  %v2044_v56 = vor.u32 %v2042_v37, %v2040_v26 }
 0x132   :  { %v7056_v41 = vrot.slane %v7054_v51, 1  ;;  %v2257_v35 = vshrl.u32 %v14229_v25, 16  ;;  %v2260_v53 = vshll.u32 %v14229_v25, 16  ;;  %v2050_v51 = vshrl.u32 %v13252_v54, 16 }
 0x133   :  { %v2048_v15 = vrot.slane %v2046_v55, 1  ;;  %v2041_v24 = vsel %vm675_vm3, %v2036_v46, %v2040_v26  ;;  %v7066_v27 = vshrl.u32 %v13253_v34, 16 }
 0x134   :  { %v2259_v55 = vrot.slane %v2257_v35, 2 }
 0x135   :  { %v2049_v25 = vsel %vm675_vm3, %v2044_v56, %v2048_v15  ;;  %v2052_v54 = vor.u32 %v2050_v51, %v2048_v15  ;;  %v7292_v56 = vshll.u32 %v14258_v3, 16  ;;  %v2283_v15 = vshrl.u32 %v14263_v31, 16 }
 0x136   :  { %11637 = vmatmul.mubr.msk.bf16.gmra.mrb[8].mxu0 %vm107_vm1, %v2009_v9  ;;  %v7058_v9 = vshrl.u32 %v13251_v47, 16  ;;  %v13255_v47 = vld [vmem:[%s16564_s0 + $0x30c] ss:$0 sps:$4 sm:$0x11]  }
 0x137   :  { %12053 = vmatmul.mubr.msk.bf16.gmra.mrb[8].mxu1 %vm107_vm1, %v7025_v33  ;;  %11640 = vmatprep.mubr.msk.bf16.mxu0 %vm107_vm1, %v2017_v32  ;;  %v7062_v33 = vshll.u32 %v13253_v34, 16  ;;  %v2033_v32 = vsel %vm675_vm3, %v2028_v5, %v2032_v28  ;;  %v7272_v5 = vshrl.u32 %v14234_v21, 16  ;;  %v7275_v28 = vshll.u32 %v14234_v21, 16 }
 0x138   :  { %12056 = vmatprep.mubr.msk.bf16.mxu1 %vm107_vm1, %v7033_v45  ;;  %v7052_v45 = vor.u32 %v7050_v12, %v7048_v63  ;;  %v7060_v2 = vor.u32 %v7058_v9, %v7056_v41  ;;  %v7283_v63 = vshll.u32 %v14224_v14, 16  ;;  %v7070_v13 = vshll.u32 %v13255_v47, 16 }
 0x139   :  { %v7064_v62 = vrot.slane %v7062_v33, 1  ;;  %v2262_v9 = vrot.slane %v2260_v53, 3  ;;  %v2267_v33 = vrot.slane %v2265_v50, 2  ;;  %v2270_v21 = vrot.slane %v2268_v59, 3 }
 0x13a   :  { %v7057_v12 = vsel %vm675_vm3, %v7052_v45, %v7056_v41  ;;  %v7285_v14 = vrot.slane %v7283_v63, 3  ;;  %v2274_v41 = vshrl.u32 %v14253_v30, 16  ;;  %v7072_v46 = vrot.slane %v7070_v13, 1 }
 0x13b   :  { %v7065_v37 = vsel %vm675_vm3, %v7060_v2, %v7064_v62  ;;  %v7068_v34 = vor.u32 %v7066_v27, %v7064_v62  ;;  %v2277_v45 = vshll.u32 %v14253_v30, 16  ;;  %v2263_v2 = vor.u32 %v2262_v9, %v2259_v55 }
 0x13c   :  { %v2271_v47 = vor.u32 %v2270_v21, %v2267_v33  ;;  %v2286_v62 = vshll.u32 %v14263_v31, 16  ;;  %v7298_v50 = vshrl.u32 %v14270_v48, 16  ;;  %v7301_v59 = vshll.u32 %v14270_v48, 16 }
 0x13d   :  { %v2292_v63 = vshrl.u32 %v14283_v8, 16  ;;  %v2295_v48 = vshll.u32 %v14283_v8, 16  ;;  %v7307_v9 = vshrl.u32 %v14288_v49, 16  ;;  %v7310_v21 = vshll.u32 %v14288_v49, 16 }
 0x13e   :  { %11641 = vmatmul.mubr.msk.bf16.gmra.mrb[12].mxu0 %vm107_vm1, %v2025_v36  ;;  %v2054_v36 = vshll.u32 %v13254_v61, 16  ;;  %v7289_v61 = vshrl.u32 %v14258_v3, 16  ;;  %v7294_v3 = vrot.slane %v7292_v56, 3  ;;  %v2272_v51 = vsel %vm974_vm4, %v2263_v2, %v2271_v47 }
 0x13f   :  { %12057 = vmatmul.mubr.msk.bf16.gmra.mrb[12].mxu1 %vm107_vm1, %v7041_v22  ;;  %11644 = vmatprep.mubr.msk.bf16.mxu0 %vm107_vm1, %v2033_v32  ;;  %v7274_v22 = vrot.slane %v7272_v5, 2  ;;  %v7277_v32 = vrot.slane %v7275_v28, 3  ;;  %v2276_v5 = vrot.slane %v2274_v41, 2  ;;  %v2279_v28 = vrot.slane %v2277_v45, 3 }
 0x140   :  { %12060 = vmatprep.mubr.msk.bf16.mxu1 %vm107_vm1, %v7049_v7  ;;  %v7282_v7 = vrot.slane %v7280_v52, 2  ;;  %v2056_v26 = vrot.slane %v2054_v36, 1  ;;  %v7291_v52 = vrot.slane %v7289_v61, 2  ;;  %v2285_v36 = vrot.slane %v2283_v15, 2 }
 0x141   :  { %v7278_v35 = vor.u32 %v7277_v32, %v7274_v22  ;;  %v2288_v31 = vrot.slane %v2286_v62, 3  ;;  %v2294_v55 = vrot.slane %v2292_v63, 2  ;;  %v2301_v22 = vshrl.u32 %v14296_v29, 16 }
 0x142   :  { %v7286_v53 = vor.u32 %v7285_v14, %v7282_v7  ;;  %v2057_v30 = vsel %vm675_vm3, %v2052_v54, %v2056_v26  ;;  %v7295_v13 = vor.u32 %v7294_v3, %v7291_v52  ;;  %v2304_v8 = vshll.u32 %v14296_v29, 16 }
 0x143   :  { %v2289_v33 = vor.u32 %v2288_v31, %v2285_v36  ;;  %v2297_v7 = vrot.slane %v2295_v48, 3  ;;  %v7316_v14 = vshrl.u32 %v14305_v10, 16  ;;  %v7319_v54 = vshll.u32 %v14305_v10, 16 }
 0x144   :  { %v7287_v27 = vsel %vm974_vm4, %v7278_v35, %v7286_v53  ;;  %v2808_v26 = vsel %vm144_vm0, %v14499_v23, 0  ;;  %v7296_v41 = vsel %vm974_vm4, %v7286_v53, %v7295_v13  ;;  %v7821_v49 = vsel %vm144_vm0, %v14508_v57, 0  ;;  %v14656_v53 = vld [vmem:[%s16563_s1 + $0x24] sm:$0xf] }
 0x145   :  { %v7312_v29 = vrot.slane %v7310_v21, 3  ;;  %v2303_v61 = vrot.slane %v2301_v22, 2  ;;  %v2306_v56 = vrot.slane %v2304_v8, 3  ;;  %v2298_v15 = vor.u32 %v2297_v7, %v2294_v55 }
 0x146   :  { %11645 = vmatmul.mubr.msk.bf16.gmra.mrb[16].mxu0 %vm107_vm1, %v2041_v24  ;;  %v7073_v24 = vsel %vm675_vm3, %v7068_v34, %v7072_v46  ;;  %v7309_v46 = vrot.slane %v7307_v9, 2  ;;  %v7318_v10 = vrot.slane %v7316_v14, 2  ;;  %v7321_v62 = vrot.slane %v7319_v54, 3 }
 0x147   :  { %12061 = vmatmul.mubr.msk.bf16.gmra.mrb[16].mxu1 %vm107_vm1, %v7057_v12  ;;  %11648 = vmatprep.mubr.msk.bf16.mxu0 %vm107_vm1, %v2049_v25  ;;  %v7300_v12 = vrot.slane %v7298_v50, 2  ;;  %v7303_v25 = vrot.slane %v7301_v59, 3  ;;  %v2310_v23 = vshrl.u32 %v14334_v6, 16  ;;  %v7325_v35 = vshrl.u32 %v14341_v16, 16 }
 0x148   :  { %12064 = vmatprep.mubr.msk.bf16.mxu1 %vm107_vm1, %v7065_v37  ;;  %v2280_v37 = vor.u32 %v2279_v28, %v2276_v5  ;;  %v7328_v57 = vshll.u32 %v14341_v16, 16  ;;  %v2319_v50 = vshrl.u32 %v14346_v58, 16  ;;  %v2322_v59 = vshll.u32 %v14346_v58, 16  ;;  %v14666_v16 = vld [vmem:[%s16563_s1 + $0x24] sm:$0xf] }
 0x149   :  { %v7304_v32 = vor.u32 %v7303_v25, %v7300_v12  ;;  %v7313_v5 = vor.u32 %v7312_v29, %v7309_v46  ;;  %v2307_v28 = vor.u32 %v2306_v56, %v2303_v61  ;;  %v2299_v52 = vsel %vm974_vm4, %v2289_v33, %v2298_v15 }
 0x14a   :  { %v2281_v34 = vsel %vm974_vm4, %v2271_v47, %v2280_v37  ;;  %v2290_v45 = vsel %vm974_vm4, %v2280_v37, %v2289_v33  ;;  %v2313_v47 = vshll.u32 %v14334_v6, 16  ;;  %v7337_v6 = vshll.u32 %v14352_v18, 16 }
 0x14b   :  { %v7305_v2 = vsel %vm974_vm4, %v7295_v13, %v7304_v32  ;;  %v7322_v3 = vor.u32 %v7321_v62, %v7318_v10  ;;  %v2312_v58 = vrot.slane %v2310_v23, 2  ;;  %v7327_v63 = vrot.slane %v7325_v35, 2 }
 0x14c   :  { %v2324_v36 = vrot.slane %v2322_v59, 3  ;;  %v7314_v12 = vsel %vm974_vm4, %v7304_v32, %v7313_v5  ;;  %v2308_v25 = vsel %vm974_vm4, %v2298_v15, %v2307_v28  ;;  %v2328_v55 = vshrl.u32 %v14366_v20, 16 }
 0x14d   :  { %v7323_v48 = vsel %vm974_vm4, %v7313_v5, %v7322_v3  ;;  %v2331_v9 = vshll.u32 %v14366_v20, 16  ;;  %v7343_v22 = vshrl.u32 %v14373_v39, 16  ;;  %v7346_v8 = vshll.u32 %v14373_v39, 16 }
 0x14e   :  { %11649 = vmatmul.mubr.msk.bf16.gmra.mrb[20].mxu0 %vm107_vm1, %v2057_v30  ;;  %v7334_v30 = vshrl.u32 %v14352_v18, 16  ;;  %v2315_v18 = vrot.slane %v2313_v47, 3  ;;  %v2337_v32 = vshrl.u32 %v14378_v19, 16  ;;  %v2340_v7 = vshll.u32 %v14378_v19, 16 }
 0x14f   :  { %12065 = vmatmul.mubr.msk.bf16.gmra.mrb[20].mxu1 %vm107_vm1, %v7073_v24  ;;  %11654 = vmatprep.mubr.msk.bf16.mxu0 %vm107_vm1, %v2272_v51  ;;  %v7330_v24 = vrot.slane %v7328_v57, 3  ;;  %v2321_v51 = vrot.slane %v2319_v50, 2  ;;  %v7352_v14 = vshrl.u32 %v14384_v1, 16  ;;  %v7355_v20 = vshll.u32 %v14384_v1, 16 }
 0x150   :  { %12070 = vmatprep.mubr.msk.bf16.mxu1 %vm107_vm1, %v7287_v27  ;;  %v7336_v31 = vrot.slane %v7334_v30, 2  ;;  %v7339_v27 = vrot.slane %v7337_v6, 3  ;;  %v2316_v37 = vor.u32 %v2315_v18, %v2312_v58  ;;  %v7345_v46 = vrot.slane %v7343_v22, 2  ;;  %v13256_v30 = vld [vmem:[%s16564_s0 + $0x1b4] ss:$0 sps:$4 sm:$0x77]  }
 0x151   :  { %v7331_v13 = vor.u32 %v7330_v24, %v7327_v63  ;;  %v2325_v33 = vor.u32 %v2324_v36, %v2321_v51  ;;  %v2339_v29 = vrot.slane %v2337_v32, 2  ;;  %v2342_v61 = vrot.slane %v2340_v7, 3  ;;  %v14715_v6 = vld [vmem:[%s16564_s0 + $0xc] sm:$0xf] }
 0x152   :  { %v7340_v21 = vor.u32 %v7339_v27, %v7336_v31  ;;  %v2317_v54 = vsel %vm974_vm4, %v2307_v28, %v2316_v37  ;;  %v2346_v19 = vshrl.u32 %v14398_v11, 16  ;;  %v2349_v56 = vshll.u32 %v14398_v11, 16  ;;  %v13257_v63 = vld [vmem:[%s16564_s0 + $0x37c] ss:$0 sps:$4 sm:$0x77]  }
 0x153   :  { %v7357_v1 = vrot.slane %v7355_v20, 3  ;;  %v7361_v15 = vshrl.u32 %v14403_v40, 16  ;;  %v7364_v10 = vshll.u32 %v14403_v40, 16  ;;  %v2355_v62 = vshrl.u32 %v14410_v44, 16 }
 0x154   :  { %v7341_v39 = vsel %vm974_vm4, %v7331_v13, %v7340_v21  ;;  %v2358_v23 = vshll.u32 %v14410_v44, 16  ;;  %v7370_v35 = vshrl.u32 %v14419_v38, 16  ;;  %v7373_v11 = vshll.u32 %v14419_v38, 16  ;;  %v2564_v44 = vld [vmem:[%s16564_s0 + $0x8] sm:$0xe] }
 0x155   :  { %v2343_v50 = vor.u32 %v2342_v61, %v2339_v29  ;;  %v2348_v40 = vrot.slane %v2346_v19, 2  ;;  %v2351_v59 = vrot.slane %v2349_v56, 3  ;;  %v7363_v5 = vrot.slane %v7361_v15, 2  ;;  %v14757_v29 = vld [vmem:[%s16564_s0 + $0x18] sm:$0xff]  }
 0x156   :  { %11655 = vmatmul.mubr.msk.bf16.vlgmr.msra.gmra.mrb[0].mxu0 %vm107_vm1, %v2281_v34  ;;  %v2330_v34 = vrot.slane %v2328_v55, 2  ;;  %v7366_v28 = vrot.slane %v7364_v10, 3  ;;  %v2357_v58 = vrot.slane %v2355_v62, 2  ;;  %v2360_v18 = vrot.slane %v2358_v23, 3 }
 0x157   :  { %12071 = vmatmul.mubr.msk.bf16.vlgmr.msra.gmra.mrb[0].mxu1 %vm107_vm1, %v7296_v41  ;;  %11679 = vmatpush3.bf16.msra.mxu0 %v2808_v26  ;;  %v7332_v26 = vsel %vm974_vm4, %v7322_v3, %v7331_v13  ;;  %v2333_v41 = vrot.slane %v2331_v9, 3  ;;  %v14723_v3 = vld [vmem:[%s16564_s0 + $0x1d4] sm:$0xf]  ;;  %v7372_v51 = vrot.slane %v7370_v35, 2  ;;  %v7375_v36 = vrot.slane %v7373_v11, 3  ;;  %v14742_v9 = vld [vmem:[%s16564_s0 + $0x1d8] sm:$0xff]  }
 0x158   :  { %12095 = vmatpush3.bf16.msra.mxu1 %v7821_v49  ;;  %11658 = vmatprep.mubr.msk.bf16.mxu0 %vm107_vm1, %v2290_v45  ;;  %v2326_v49 = vsel %vm974_vm4, %v2316_v37, %v2325_v33  ;;  %v7348_v45 = vrot.slane %v7346_v8, 3  ;;  %v10233_v31 = vcombine.low %v2564_v44, %v14715_v6  ;;  %v2352_v13 = vor.u32 %v2351_v59, %v2348_v40 }
 0x159   :  { %12074 = vmatprep.mubr.msk.bf16.mxu1 %vm107_vm1, %v7305_v2  ;;  %13079 = vmatprep.subr.msk.bf16.mxu0 %vm144_vm0, %v14656_v53  ;;  %v7354_v2 = vrot.slane %v7352_v14, 2  ;;  %v2334_v47 = vor.u32 %v2333_v41, %v2330_v34  ;;  %v7367_v55 = vor.u32 %v7366_v28, %v7363_v5  ;;  %v2367_v22 = vshll.u32 %v13256_v30, 16  ;;  %v14779_v28 = vld [vmem:[%s16564_s0 + $0x1e8] sm:$0xff]  }
 0x15a   :  { %13095 = vmatprep.subr.msk.bf16.mxu1 %vm144_vm0, %v14666_v16  ;;  %v7349_v57 = vor.u32 %v7348_v45, %v7345_v46  ;;  %v7379_v8 = vshrl.u32 %v13257_v63, 16  ;;  %v7376_v32 = vor.u32 %v7375_v36, %v7372_v51  ;;  %v7382_v7 = vshll.u32 %v13257_v63, 16 }
 0x15b   :  { %v7358_v38 = vor.u32 %v7357_v1, %v7354_v2  ;;  %v2335_v24 = vsel %vm974_vm4, %v2325_v33, %v2334_v47  ;;  %v2361_v33 = vor.u32 %v2360_v18, %v2357_v58  ;;  %v2656_v14 = vshrl.u32 %v10233_v31, 16  ;;  %v14763_v1 = vld [vmem:[%s16564_s0 + $0x1e0] sm:$0xff]  }
 0x15c   :  { %v7350_v27 = vsel %vm974_vm4, %v7340_v21, %v7349_v57  ;;  %v2364_v21 = vshrl.u32 %v13256_v30, 16  ;;  %v2659_v20 = vshll.u32 %v10233_v31, 16  ;;  %v7677_v46 = vshrl.u32 %v14742_v9, 16 }
 0x15d   :  { %v7359_v37 = vsel %vm974_vm4, %v7349_v57, %v7358_v38  ;;  %v7680_v45 = vshll.u32 %v14742_v9, 16  ;;  %v2362_v61 = vsel %vm974_vm4, %v2352_v13, %v2361_v33  ;;  %v2369_v56 = vrot.slane %v2367_v22, 3 }
 0x15e   :  { %11659 = vmatmul.mubr.msk.bf16.gmra.mrb[4].mxu0 %vm107_vm1, %v2299_v52  ;;  %v10746_v52 = vld [vmem:[%s16564_s0 + $0x1d0] sm:$0xe]  ;;  %v2366_v19 = vrot.slane %v2364_v21, 2  ;;  %v7381_v2 = vrot.slane %v7379_v8, 2  ;;  %v7377_v15 = vsel %vm974_vm4, %v7367_v55, %v7376_v32  ;;  %v7384_v10 = vrot.slane %v7382_v7, 3  ;;  %v14791_v21 = vld [vmem:[%s16564_s0 + $0x28] sm:$0xff]  }
 0x15f   :  { %12075 = vmatmul.mubr.msk.bf16.gmra.mrb[4].mxu1 %vm107_vm1, %v7314_v12  ;;  %11662 = vmatprep.mubr.msk.bf16.mxu0 %vm107_vm1, %v2308_v25  ;;  %v2344_v12 = vsel %vm974_vm4, %v2334_v47, %v2343_v50  ;;  %v14735_v25 = vld [vmem:[%s16564_s0 + $0x10] sm:$0xff]   ;;  %v2658_v62 = vrot.slane %v2656_v14, 1  ;;  %v2661_v23 = vrot.slane %v2659_v20, 2  ;;  %v14769_v47 = vld [vmem:[%s16564_s0 + $0x20] sm:$0xff]   ;;  %v7679_v40 = vrot.slane %v7677_v46, 1 }
 0x160   :  { %12078 = vmatprep.mubr.msk.bf16.mxu1 %vm107_vm1, %v7323_v48  ;;  %v10772_v48 = vcombine.low %v10746_v52, %v14723_v3  ;;  %v7682_v59 = vrot.slane %v7680_v45, 2  ;;  %v2673_v30 = vshrl.u32 %v14757_v29, 16  ;;  %v2676_v44 = vshll.u32 %v14757_v29, 16  ;;  %v14797_v14 = vld [vmem:[%s16564_s0 + $0x1f0] sm:$0xff]  }
 0x161   :  { %v7689_v5 = vshll.u32 %v14763_v1, 16  ;;  %v2370_v52 = vor.u32 %v2369_v56, %v2366_v19  ;;  %v2682_v58 = vshrl.u32 %v14769_v47, 16  ;;  %v2685_v18 = vshll.u32 %v14769_v47, 16 }
 0x162   :  { %v7669_v34 = vshrl.u32 %v10772_v48, 16  ;;  %v7672_v41 = vshll.u32 %v10772_v48, 16  ;;  %v7385_v63 = vor.u32 %v7384_v10, %v7381_v2  ;;  %v7683_v31 = vor.u32 %v7682_v59, %v7679_v40  ;;  %v14825_v10 = vld [vmem:[%s16564_s0 + $0x38] sm:$0xff]  }
 0x163   :  { %v2371_v22 = vsel %vm974_vm4, %v2361_v33, %v2370_v52  ;;  %v2684_v8 = vrot.slane %v2682_v58, 1  ;;  %v2687_v7 = vrot.slane %v2685_v18, 2  ;;  %v14810_v33 = vld [vmem:[%s16564_s0 + $0x1f8] sm:$0xff]   ;;  %v2691_v46 = vshrl.u32 %v14791_v21, 16  ;;  %v14849_v52 = vld [vmem:[%s16564_s0 + $0x208] sm:$0xff]  }
 0x164   :  { %v7671_v57 = vrot.slane %v7669_v34, 1  ;;  %v7386_v20 = vsel %vm974_vm4, %v7376_v32, %v7385_v63  ;;  %v7704_v19 = vshrl.u32 %v14797_v14, 16  ;;  %v7707_v56 = vshll.u32 %v14797_v14, 16 }
 0x165   :  { %v2688_v45 = vor.u32 %v2687_v7, %v2684_v8  ;;  %v2709_v63 = vshrl.u32 %v14825_v10, 16  ;;  %v7731_v8 = vshrl.u32 %v14849_v52, 16  ;;  %v7734_v7 = vshll.u32 %v14849_v52, 16 }
 0x166   :  { %11663 = vmatmul.mubr.msk.bf16.gmra.mrb[8].mxu0 %vm107_vm1, %v2317_v54  ;;  %v2664_v54 = vshrl.u32 %v14735_v25, 16 }
 0x167   :  { %12079 = vmatmul.mubr.msk.bf16.gmra.mrb[8].mxu1 %vm107_vm1, %v7332_v26  ;;  %11666 = vmatprep.mubr.msk.bf16.mxu0 %vm107_vm1, %v2326_v49  ;;  %v2667_v26 = vshll.u32 %v14735_v25, 16  ;;  %v2353_v49 = vsel %vm974_vm4, %v2343_v50, %v2352_v13  ;;  %v7674_v50 = vrot.slane %v7672_v41, 2  ;;  %v7695_v13 = vshrl.u32 %v14779_v28, 16 }
 0x168   :  { %12082 = vmatprep.mubr.msk.bf16.mxu1 %vm107_vm1, %v7341_v39  ;;  %v7368_v39 = vsel %vm974_vm4, %v7358_v38, %v7367_v55  ;;  %v2666_v35 = vrot.slane %v2664_v54, 1  ;;  %v7686_v38 = vshrl.u32 %v14763_v1, 16  ;;  %v7698_v55 = vshll.u32 %v14779_v28, 16 }
 0x169   :  { %v2669_v11 = vrot.slane %v2667_v26, 2  ;;  %v7675_v36 = vor.u32 %v7674_v50, %v7671_v57  ;;  %v14804_v26 = vld [vmem:[%s16564_s0 + $0x30] sm:$0xff]   ;;  %v14836_v57 = vld [vmem:[%s16564_s0 + $0x200] sm:$0xff]  }
 0x16a   :  { %v7688_v48 = vrot.slane %v7686_v38, 1  ;;  %v7700_v32 = vrot.slane %v7698_v55, 2  ;;  %v2700_v2 = vshrl.u32 %v14804_v26, 16  ;;  %v7706_v38 = vrot.slane %v7704_v19, 1  ;;  %v14867_v55 = vld [vmem:[%s16563_s1 + $0x28] sm:$0xf] }
 0x16b   :  { %v2670_v51 = vor.u32 %v2669_v11, %v2666_v35  ;;  %v7684_v34 = vsel %vm2654_vm5, %v7675_v36, %v7683_v31  ;;  %v7713_v35 = vshrl.u32 %v14810_v33, 16  ;;  %v7716_v11 = vshll.u32 %v14810_v33, 16  ;;  %v14887_v19 = vld [vmem:[%s16564_s0 + $0x50] sm:$0xff]  }
 0x16c   :  { %v2702_v58 = vrot.slane %v2700_v2, 1 }
 0x16d   :  { %v7718_v36 = vrot.slane %v7716_v11, 2  ;;  %v7736_v11 = vrot.slane %v7734_v7, 2 }
 0x16e   :  { %11667 = vmatmul.mubr.msk.bf16.gmra.mrb[12].mxu0 %vm107_vm1, %v2335_v24  ;;  %v2662_v24 = vor.u32 %v2661_v23, %v2658_v62  ;;  %v3207_v62 = vsel %vm144_vm0, %v14656_v53, 0  ;;  %v8218_v23 = vsel %vm144_vm0, %v14666_v16, 0  ;;  %v14843_v53 = vld [vmem:[%s16564_s0 + $0x40] sm:$0xff]  }
 0x16f   :  { %12083 = vmatmul.mubr.msk.bf16.gmra.mrb[12].mxu1 %vm107_vm1, %v7350_v27  ;;  %11670 = vmatprep.mubr.msk.bf16.mxu0 %vm107_vm1, %v2344_v12  ;;  %v2675_v27 = vrot.slane %v2673_v30, 1  ;;  %v2678_v12 = vrot.slane %v2676_v44, 2  ;;  %v2693_v30 = vrot.slane %v2691_v46, 1 }
 0x170   :  { %12086 = vmatprep.mubr.msk.bf16.mxu1 %vm107_vm1, %v7359_v37  ;;  %v7691_v37 = vrot.slane %v7689_v5, 2  ;;  %v2671_v54 = vsel %vm2654_vm5, %v2662_v24, %v2670_v51  ;;  %v7709_v5 = vrot.slane %v7707_v56, 2  ;;  %v2712_v24 = vshll.u32 %v14825_v10, 16 }
 0x171   :  { %v2679_v41 = vor.u32 %v2678_v12, %v2675_v27  ;;  %v7725_v27 = vshll.u32 %v14836_v57, 16 }
 0x173   :  { %v2680_v50 = vsel %vm2654_vm5, %v2670_v51, %v2679_v41  ;;  %v2689_v16 = vsel %vm2654_vm5, %v2679_v41, %v2688_v45  ;;  %v7715_v51 = vrot.slane %v7713_v35, 1  ;;  %v7733_v35 = vrot.slane %v7731_v8, 1 }
 0x176   :  { %11671 = vmatmul.mubr.msk.bf16.gmra.mrb[16].mxu0 %vm107_vm1, %v2353_v49  ;;  %v7692_v49 = vor.u32 %v7691_v37, %v7688_v48  ;;  %v2718_v48 = vshrl.u32 %v14843_v53, 16  ;;  %v2721_v37 = vshll.u32 %v14843_v53, 16 }
 0x177   :  { %12087 = vmatmul.mubr.msk.bf16.gmra.mrb[16].mxu1 %vm107_vm1, %v7368_v39  ;;  %11674 = vmatprep.mubr.msk.bf16.mxu0 %vm107_vm1, %v2362_v61  ;;  %v7697_v39 = vrot.slane %v7695_v13, 1  ;;  %v2694_v61 = vshll.u32 %v14791_v21, 16  ;;  %v14862_v13 = vld [vmem:[%s16564_s0 + $0x48] sm:$0xff]  }
 0x178   :  { %12090 = vmatprep.mubr.msk.bf16.mxu1 %vm107_vm1, %v7377_v15  ;;  %v2703_v15 = vshll.u32 %v14804_v26, 16  ;;  %v7693_v40 = vsel %vm2654_vm5, %v7683_v31, %v7692_v49  ;;  %v7722_v31 = vshrl.u32 %v14836_v57, 16  ;;  %v2720_v56 = vrot.slane %v2718_v48, 1 }
 0x179   :  { %v7701_v59 = vor.u32 %v7700_v32, %v7697_v39  ;;  %v2696_v44 = vrot.slane %v2694_v61, 2  ;;  %v7719_v39 = vor.u32 %v7718_v36, %v7715_v51  ;;  %v2714_v32 = vrot.slane %v2712_v24, 2 }
 0x17a   :  { %v2705_v18 = vrot.slane %v2703_v15, 2  ;;  %v7724_v46 = vrot.slane %v7722_v31, 1  ;;  %v7727_v61 = vrot.slane %v7725_v27, 2  ;;  %v2723_v2 = vrot.slane %v2721_v37, 2 }
 0x17b   :  { %v7702_v12 = vsel %vm2654_vm5, %v7692_v49, %v7701_v59  ;;  %v2711_v49 = vrot.slane %v2709_v63, 1  ;;  %v2727_v15 = vshrl.u32 %v14862_v13, 16  ;;  %v7737_v31 = vor.u32 %v7736_v11, %v7733_v35 }
 0x17c   :  { %v2706_v41 = vor.u32 %v2705_v18, %v2702_v58  ;;  %v2736_v18 = vshrl.u32 %v14887_v19, 16  ;;  %v7728_v63 = vor.u32 %v7727_v61, %v7724_v46  ;;  %v2724_v24 = vor.u32 %v2723_v2, %v2720_v56  ;;  %v14931_v46 = vld [vmem:[%s16564_s0 + $0x60] sm:$0xff]  }
 0x17d   :  { %v2715_v58 = vor.u32 %v2714_v32, %v2711_v49  ;;  %v2729_v51 = vrot.slane %v2727_v15, 1  ;;  %v14938_v15 = vld [vmem:[%s16564_s0 + $0x228] sm:$0xff]  }
 0x17e   :  { %11675 = vmatmul.mubr.msk.bf16.gmra.mrb[20].mxu0 %vm107_vm1, %v2371_v22  ;;  %v2697_v22 = vor.u32 %v2696_v44, %v2693_v30  ;;  %v7729_v56 = vsel %vm2654_vm5, %v7719_v39, %v7728_v63  ;;  %16653 = vst [vmem:[#allocation6_spill] sm:$0xff] %v14938_v15  ;;  %v7738_v35 = vsel %vm2654_vm5, %v7728_v63, %v7737_v31  ;;  %v7770_v63 = vshll.u32 %v14938_v15, 16 }
 0x17f   :  { %12091 = vmatmul.mubr.msk.bf16.gmra.mrb[20].mxu1 %vm107_vm1, %v7386_v20  ;;  %11680 = vmatprep.mubr.msk.bf16.mxu0 %vm107_vm1, %v2671_v54  ;;  %v14875_v20 = vld [vmem:[%s16564_s0 + $0x210] sm:$0xff]   ;;  %v14880_v54 = vld [vmem:[%s16563_s1 + $0x28] sm:$0xf]  ;;  %v2716_v61 = vsel %vm2654_vm5, %v2706_v41, %v2715_v58 }
 0x180   :  { %12096 = vmatprep.mubr.msk.bf16.mxu1 %vm107_vm1, %v7684_v34  ;;  %v7710_v34 = vor.u32 %v7709_v5, %v7706_v38  ;;  %v7743_v44 = vshll.u32 %v14875_v20, 16  ;;  %v14908_v38 = vld [vmem:[%s16564_s0 + $0x58] sm:$0xff]  }
 0x181   :  { %v2748_v8 = vshll.u32 %v14908_v38, 16 }
 0x182   :  { %v7711_v30 = vsel %vm2654_vm5, %v7701_v59, %v7710_v34  ;;  %v7720_v5 = vsel %vm2654_vm5, %v7710_v34, %v7719_v39  ;;  %v2739_v59 = vshll.u32 %v14887_v19, 16  ;;  %v7745_v37 = vrot.slane %v7743_v44, 2 }
 0x183   :  { %v2738_v34 = vrot.slane %v2736_v18, 1  ;;  %v2750_v39 = vrot.slane %v2748_v8, 2  ;;  %v2754_v18 = vshrl.u32 %v14931_v46, 16 }
 0x184   :  { %v2741_v49 = vrot.slane %v2739_v59, 2  ;;  %v2757_v59 = vshll.u32 %v14931_v46, 16 }
 0x186   :  { %11681 = vmatmul.mubr.msk.bf16.vlgmr.msra.gmra.mrb[0].mxu0 %vm107_vm1, %v2680_v50  ;;  %v7740_v50 = vshrl.u32 %v14875_v20, 16  ;;  %v2742_v44 = vor.u32 %v2741_v49, %v2738_v34  ;;  %v14982_v34 = vld [vmem:[%s16564_s0 + $0x244] sm:$0xf]  ;;  %v14987_v49 = vld [vmem:[%s16564_s0 + $0x248] sm:$0xf] }
 0x187   :  { %12097 = vmatmul.mubr.msk.bf16.vlgmr.msra.gmra.mrb[0].mxu1 %vm107_vm1, %v7693_v40  ;;  %11705 = vmatpush3.bf16.msra.mxu0 %v3207_v62  ;;  %v2730_v62 = vshll.u32 %v14862_v13, 16  ;;  %v14900_v40 = vld [vmem:[%s16564_s0 + $0x218] sm:$0xff]   ;;  %16657 = vst [vmem:[#allocation10_spill] sm:$0xff] %v14982_v34  ;;  %16658 = vst [vmem:[#allocation11_spill] sm:$0xff] %v14987_v49 }
 0x188   :  { %12121 = vmatpush3.bf16.msra.mxu1 %v8218_v23  ;;  %11684 = vmatprep.mubr.msk.bf16.mxu0 %vm107_vm1, %v2689_v16  ;;  %v2698_v23 = vsel %vm2654_vm5, %v2688_v45, %v2697_v22  ;;  %v2707_v16 = vsel %vm2654_vm5, %v2697_v22, %v2706_v41  ;;  %v14913_v45 = vld [vmem:[%s16564_s0 + $0x220] sm:$0xff]   ;;  %v7742_v27 = vrot.slane %v7740_v50, 1  ;;  %v7752_v48 = vshll.u32 %v14900_v40, 16 }
 0x189   :  { %12100 = vmatprep.mubr.msk.bf16.mxu1 %vm107_vm1, %v7702_v12  ;;  %13080 = vmatprep.subr.msk.bf16.mxu0 %vm144_vm0, %v14867_v55  ;;  %v2732_v36 = vrot.slane %v2730_v62, 2  ;;  %v7749_v12 = vshrl.u32 %v14900_v40, 16  ;;  %v2745_v22 = vshrl.u32 %v14908_v38, 16  ;;  %v7758_v7 = vshrl.u32 %v14913_v45, 16 }
 0x18a   :  { %13096 = vmatprep.subr.msk.bf16.mxu1 %vm144_vm0, %v14880_v54  ;;  %v7761_v32 = vshll.u32 %v14913_v45, 16  ;;  %v14943_v62 = vld [vmem:[%s16564_s0 + $0x68] ss:$0 sps:$4 sm:$0x33]   ;;  %v7754_v50 = vrot.slane %v7752_v48, 2  ;;  %v7746_v41 = vor.u32 %v7745_v37, %v7742_v27 }
 0x18b   :  { %v2733_v2 = vor.u32 %v2732_v36, %v2729_v51  ;;  %16654 = vst [vmem:[#allocation7_spill] sm:$0xff] %v14943_v62  ;;  %v7751_v11 = vrot.slane %v7749_v12, 1  ;;  %v14952_v51 = vld [vmem:[%s16564_s0 + $0x230] ss:$0 sps:$4 sm:$0x33]   ;;  %v2763_v36 = vshrl.u32 %v14943_v62, 16 }
 0x18c   :  { %v2766_v27 = vshll.u32 %v14943_v62, 16  ;;  %v2963_v48 = vld [vmem:[%s16564_s0 + $0x78] sm:$0x8]  ;;  %v14967_v37 = vld [vmem:[%s16564_s0 + $0x7c] sm:$0xf] }
 0x18d   :  { %v7755_v12 = vor.u32 %v7754_v50, %v7751_v11  ;;  %16655 = vst [vmem:[#allocation8_spill] sm:$0xff] %v14967_v37  ;;  %v2734_v8 = vsel %vm2654_vm5, %v2724_v24, %v2733_v2  ;;  %v14995_v11 = vld [vmem:[%s16564_s0 + $0x8c] sm:$0xf]  ;;  %v10259_v50 = vcombine.low %v2963_v48, %v14967_v37 }
 0x18e   :  { %11685 = vmatmul.mubr.msk.bf16.gmra.mrb[4].mxu0 %vm107_vm1, %v2698_v23  ;;  %v2725_v23 = vsel %vm2654_vm5, %v2715_v58, %v2724_v24  ;;  %v7767_v58 = vshrl.u32 %v14938_v15, 16  ;;  %v7776_v24 = vshrl.u32 %v14952_v51, 16  ;;  %16659 = vst [vmem:[#allocation12_spill] sm:$0xff] %v14995_v11  ;;  %v15006_v62 = vrot.slane %v2766_v27, 2 }
 0x18f   :  { %12101 = vmatmul.mubr.msk.bf16.gmra.mrb[4].mxu1 %vm107_vm1, %v7711_v30  ;;  %11688 = vmatprep.mubr.msk.bf16.mxu0 %vm107_vm1, %v2707_v16  ;;  %v2747_v30 = vrot.slane %v2745_v22, 1  ;;  %v7760_v16 = vrot.slane %v7758_v7, 1  ;;  %v14972_v22 = vld [vmem:[%s16564_s0 + $0x80] sm:$0xf]  ;;  %v7756_v0 = vsel %vm2654_vm5, %v7746_v41, %v7755_v12 }
 0x190   :  { %12104 = vmatprep.mubr.msk.bf16.mxu1 %vm107_vm1, %v7720_v5  ;;  %v7763_v5 = vrot.slane %v7761_v32, 2  ;;  %16656 = vst [vmem:[#allocation9_spill] sm:$0xff] %v14972_v22  ;;  %v10797_v7 = vld [vmem:[%s16564_s0 + $0x240] sm:$0x8]  ;;  %v7747_v32 = vsel %vm2654_vm5, %v7737_v31, %v7746_v41  ;;  %v10260_v4 = vcombine.low %v14972_v22, %v14538_v17  ;;  %v15010_v48 = vrot.slane %v7776_v24, 1 }
 0x191   :  { %v7779_v17 = vshll.u32 %v14952_v51, 16  ;;  %v10261_v41 = vcombine.low %v14543_v42, %v14995_v11 }
 0x192   :  { %v7764_v31 = vor.u32 %v7763_v5, %v7760_v16  ;;  %v3055_v16 = vshrl.u32 %v10259_v50, 16  ;;  %v3058_v5 = vshll.u32 %v10259_v50, 16  ;;  %v15044_v50 = vld [vmem:[%s16564_s0 + $0x25c] sm:$0xf] }
 0x193   :  { %16662 = vst [vmem:[#allocation15_spill] sm:$0xff] %v15044_v50 }
 0x194   :  { %v7765_v24 = vsel %vm2654_vm5, %v7755_v12, %v7764_v31  ;;  %v7781_v12 = vrot.slane %v7779_v17, 2  ;;  %v15062_v17 = vld [vmem:[%s16564_s0 + $0x9c] sm:$0xf] }
 0x195   :  { %16663 = vst [vmem:[#allocation16_spill] sm:$0xff] %v15062_v17 }
 0x196   :  { %11689 = vmatmul.mubr.msk.bf16.gmra.mrb[8].mxu0 %vm107_vm1, %v2716_v61  ;;  %v2756_v61 = vrot.slane %v2754_v18, 1  ;;  %v10823_v18 = vcombine.low %v10797_v7, %v14982_v34  ;;  %v3063_v7 = vshrl.u32 %v10260_v4, 16 }
 0x197   :  { %12105 = vmatmul.mubr.msk.bf16.gmra.mrb[8].mxu1 %vm107_vm1, %v7729_v56  ;;  %11692 = vmatprep.mubr.msk.bf16.mxu0 %vm107_vm1, %v2725_v23  ;;  %v2759_v56 = vrot.slane %v2757_v59, 2  ;;  %v2743_v23 = vsel %vm2654_vm5, %v2733_v2, %v2742_v44  ;;  %v10824_v59 = vcombine.low %v14987_v49, %v14559_v60  ;;  %v7769_v2 = vrot.slane %v7767_v58, 1 }
 0x198   :  { %12108 = vmatprep.mubr.msk.bf16.mxu1 %vm107_vm1, %v7738_v35  ;;  %v2751_v35 = vor.u32 %v2750_v39, %v2747_v30  ;;  %v7772_v30 = vrot.slane %v7770_v63, 2  ;;  %v15004_v39 = vrot.slane %v2763_v36, 1  ;;  %v3066_v58 = vshll.u32 %v10260_v4, 16  ;;  %v15019_v63 = vld [vmem:[%s16564_s0 + $0x254] sm:$0xf] }
 0x199   :  { %v15008_v15 = vor.u32 %v2759_v56, %v2756_v61  ;;  %16660 = vst [vmem:[#allocation13_spill] sm:$0xff] %v15019_v63  ;;  %v8066_v36 = vshrl.u32 %v10823_v18, 16  ;;  %v8069_v27 = vshll.u32 %v10823_v18, 16  ;;  %v8074_v61 = vshrl.u32 %v10824_v59, 16 }
 0x19a   :  { %v8077_v56 = vshll.u32 %v10824_v59, 16  ;;  %v2752_v4 = vsel %vm2654_vm5, %v2742_v44, %v2751_v35  ;;  %v7773_v44 = vor.u32 %v7772_v30, %v7769_v2  ;;  %v10825_v18 = vcombine.low %v14564_v43, %v15019_v63  ;;  %v15075_v43 = vld [vmem:[%s16564_s0 + $0x264] sm:$0xf] }
 0x19b   :  { %v3057_v59 = vrot.slane %v3055_v16, 3  ;;  %v3060_v60 = vrot.slane %v3058_v5, 4  ;;  %v3065_v42 = vrot.slane %v3063_v7, 3  ;;  %v3068_v11 = vrot.slane %v3066_v58, 4  ;;  %16664 = vst [vmem:[#allocation17_spill] sm:$0xff] %v15075_v43 }
 0x19c   :  { %v8068_v34 = vrot.slane %v8066_v36, 3  ;;  %v3072_v49 = vshrl.u32 %v10261_v41, 16  ;;  %v8071_v2 = vrot.slane %v8069_v27, 4  ;;  %v8076_v30 = vrot.slane %v8074_v61, 3 }
 0x19d   :  { %v8079_v16 = vrot.slane %v8077_v56, 4  ;;  %v3075_v5 = vshll.u32 %v10261_v41, 16  ;;  %v7774_v7 = vsel %vm2654_vm5, %v7764_v31, %v7773_v44  ;;  %v2769_v58 = vor.u32 %v15006_v62, %v15004_v39 }
 0x19e   :  { %11693 = vmatmul.mubr.msk.bf16.gmra.mrb[12].mxu0 %vm107_vm1, %v2734_v8  ;;  %v15026_v8 = vld [vmem:[%s16564_s0 + $0x90] sm:$0xf]  ;;  %v8083_v36 = vshrl.u32 %v10825_v18, 16  ;;  %v7782_v41 = vor.u32 %v7781_v12, %v15010_v48  ;;  %v3061_v31 = vor.u32 %v3060_v60, %v3057_v59  ;;  %v3074_v63 = vrot.slane %v3072_v49, 3 }
 0x19f   :  { %12109 = vmatmul.mubr.msk.bf16.gmra.mrb[12].mxu1 %vm107_vm1, %v7747_v32  ;;  %11696 = vmatprep.mubr.msk.bf16.mxu0 %vm107_vm1, %v2743_v23  ;;  %v15034_v32 = vld [vmem:[%s16564_s0 + $0x94] sm:$0xf]  ;;  %v15039_v23 = vld [vmem:[%s16564_s0 + $0x258] sm:$0xf]  ;;  %v8072_v60 = vor.u32 %v8071_v2, %v8068_v34  ;;  %v8080_v12 = vor.u32 %v8079_v16, %v8076_v30 }
 0x1a0   :  { %12112 = vmatprep.mubr.msk.bf16.mxu1 %vm107_vm1, %v7756_v0  ;;  %16661 = vst [vmem:[#allocation14_spill] sm:$0xff] %v15034_v32  ;;  %v2761_v0 = vsel %vm2654_vm5, %v2751_v35, %v15008_v15  ;;  %v10262_v37 = vcombine.low %v15026_v8, %v15034_v32  ;;  %v10826_v22 = vcombine.low %v15039_v23, %v15044_v50  ;;  %v15057_v35 = vld [vmem:[%s16564_s0 + $0x98] sm:$0xf]  ;;  %v8086_v50 = vshll.u32 %v10825_v18, 16  ;;  %v15070_v32 = vld [vmem:[%s16564_s0 + $0x260] sm:$0xf] }
 0x1a1   :  { %v10263_v62 = vcombine.low %v15057_v35, %v15062_v17  ;;  %v3069_v18 = vor.u32 %v3068_v11, %v3065_v42  ;;  %v10827_v48 = vcombine.low %v15070_v32, %v15075_v43  ;;  %v8085_v59 = vrot.slane %v8083_v36, 3  ;;  %v15102_v11 = vld [vmem:[%s16564_s0 + $0x268] sm:$0xf] }
 0x1a2   :  { %v3081_v39 = vshrl.u32 %v10262_v37, 16  ;;  %v3084_v27 = vshll.u32 %v10262_v37, 16  ;;  %v8092_v61 = vshrl.u32 %v10826_v22, 16  ;;  %v8095_v56 = vshll.u32 %v10826_v22, 16  ;;  %v15094_v37 = vld [vmem:[%s16564_s0 + $0xa4] sm:$0xf] }
 0x1a3   :  { %v8088_v17 = vrot.slane %v8086_v50, 4  ;;  %16665 = vst [vmem:[#allocation18_spill] sm:$0xff] %v15094_v37  ;;  %v2770_v42 = vsel %vm2654_vm5, %v15008_v15, %v2769_v58  ;;  %v7783_v22 = vsel %vm2654_vm5, %v7773_v44, %v7782_v41  ;;  %v3090_v49 = vshrl.u32 %v10263_v62, 16  ;;  %16666 = vst [vmem:[#allocation19_spill] sm:$0xff] %v15102_v11  ;;  %v15107_v50 = vld [vmem:[%s16564_s0 + $0x26c] sm:$0xf] }
 0x1a4   :  { %v3093_v34 = vshll.u32 %v10263_v62, 16  ;;  %16667 = vst [vmem:[#allocation20_spill] sm:$0xff] %v15107_v50  ;;  %v3086_v2 = vrot.slane %v3084_v27, 4  ;;  %v8094_v30 = vrot.slane %v8092_v61, 3  ;;  %v8097_v16 = vrot.slane %v8095_v56, 4 }
 0x1a5   :  { %v3070_v15 = vsel %vm3053_vm6, %v3061_v31, %v3069_v18  ;;  %v8104_v44 = vshll.u32 %v10827_v48, 16  ;;  %v8081_v58 = vsel %vm3053_vm6, %v8072_v60, %v8080_v12  ;;  %v10828_v36 = vcombine.low %v15102_v11, %v15107_v50  ;;  %v15119_v27 = vld [vmem:[%s16564_s0 + $0xa8] sm:$0xf] }
 0x1a6   :  { %11697 = vmatmul.mubr.msk.bf16.gmra.mrb[16].mxu0 %vm107_vm1, %v2752_v4  ;;  %v3077_v4 = vrot.slane %v3075_v5, 4  ;;  %v8101_v5 = vshrl.u32 %v10827_v48, 16  ;;  %v3092_v62 = vrot.slane %v3090_v49, 3  ;;  %16668 = vst [vmem:[#allocation21_spill] sm:$0xff] %v15119_v27  ;;  %v8089_v31 = vor.u32 %v8088_v17, %v8085_v59  ;;  %v15126_v48 = vld [vmem:[%s16564_s0 + $0xac] sm:$0xf] }
 0x1a7   :  { %12113 = vmatmul.mubr.msk.bf16.gmra.mrb[16].mxu1 %vm107_vm1, %v7765_v24  ;;  %11700 = vmatprep.mubr.msk.bf16.mxu0 %vm107_vm1, %v2761_v0  ;;  %v15089_v24 = vld [vmem:[%s16564_s0 + $0xa0] sm:$0xf]  ;;  %v3083_v0 = vrot.slane %v3081_v39, 3  ;;  %v3095_v39 = vrot.slane %v3093_v34, 4  ;;  %v8098_v56 = vor.u32 %v8097_v16, %v8094_v30  ;;  %16669 = vst [vmem:[#allocation22_spill] sm:$0xff] %v15126_v48  ;;  %v8106_v60 = vrot.slane %v8104_v44, 4 }
 0x1a8   :  { %12116 = vmatprep.mubr.msk.bf16.mxu1 %vm107_vm1, %v7774_v7  ;;  %v10264_v7 = vcombine.low %v15089_v24, %v15094_v37  ;;  %v3078_v41 = vor.u32 %v3077_v4, %v3074_v63  ;;  %v15131_v63 = vld [vmem:[%s16564_s0 + $0x270] sm:$0xf]  ;;  %v15136_v4 = vld [vmem:[%s16564_s0 + $0x274] sm:$0xf]  ;;  %v8103_v17 = vrot.slane %v8101_v5, 3  ;;  %v8113_v49 = vshll.u32 %v10828_v36, 16 }
 0x1a9   :  { %v3087_v61 = vor.u32 %v3086_v2, %v3083_v0  ;;  %16670 = vst [vmem:[#allocation23_spill] sm:$0xff] %v15131_v63  ;;  %16671 = vst [vmem:[#allocation24_spill] sm:$0xff] %v15136_v4  ;;  %v15142_v34 = vld [vmem:[%s16564_s0 + $0xb0] sm:$0xf]  ;;  %v15147_v0 = vld [vmem:[%s16564_s0 + $0xb4] sm:$0xf]  ;;  %v10265_v16 = vcombine.low %v15119_v27, %v15126_v48 }
 0x1aa   :  { %v3099_v59 = vshrl.u32 %v10264_v7, 16  ;;  %16672 = vst [vmem:[#allocation25_spill] sm:$0xff] %v15142_v34  ;;  %16673 = vst [vmem:[#allocation26_spill] sm:$0xff] %v15147_v0  ;;  %v3430_v2 = vsel %vm144_vm0, %v14867_v55, 0  ;;  %v8440_v30 = vsel %vm144_vm0, %v14880_v54, 0  ;;  %v3079_v55 = vsel %vm3053_vm6, %v3069_v18, %v3078_v41 }
 0x1ab   :  { %v15160_v5 = vld [vmem:[%s16564_s0 + $0x278] sm:$0xf]  ;;  %v15165_v44 = vld [vmem:[%s16564_s0 + $0x27c] sm:$0xf]  ;;  %v8090_v54 = vsel %vm3053_vm6, %v8080_v12, %v8089_v31  ;;  %v10266_v50 = vcombine.low %v15142_v34, %v15147_v0  ;;  %v8107_v12 = vor.u32 %v8106_v60, %v8103_v17  ;;  %v8115_v37 = vrot.slane %v8113_v49, 4 }
 0x1ac   :  { %16674 = vst [vmem:[#allocation27_spill] sm:$0xff] %v15160_v5  ;;  %16675 = vst [vmem:[#allocation28_spill] sm:$0xff] %v15165_v44  ;;  %v15181_v18 = vld [vmem:[%s16564_s0 + $0xbc] sm:$0xf]  ;;  %v15189_v0 = vld [vmem:[%s16563_s1 + $0x2c] sm:$0xf] }
 0x1ad   :  { %16677 = vst [vmem:[#allocation30_spill] sm:$0xff] %v15181_v18  ;;  %v15197_v60 = vld [vmem:[%s16564_s0 + $0x280] sm:$0xf]  ;;  %v15207_v49 = vld [vmem:[%s16563_s1 + $0x2c] sm:$0xf] }
 0x1ae   :  { %11701 = vmatmul.mubr.msk.bf16.gmra.mrb[20].mxu0 %vm107_vm1, %v2770_v42  ;;  %v3102_v42 = vshll.u32 %v10264_v7, 16  ;;  %v3088_v7 = vsel %vm3053_vm6, %v3078_v41, %v3087_v61  ;;  %16678 = vst [vmem:[#allocation31_spill] sm:$0xff] %v15197_v60 }
 0x1af   :  { %12117 = vmatmul.mubr.msk.bf16.gmra.mrb[20].mxu1 %vm107_vm1, %v7783_v22  ;;  %11706 = vmatprep.mubr.msk.bf16.mxu0 %vm107_vm1, %v3070_v15  ;;  %v8110_v22 = vshrl.u32 %v10828_v36, 16  ;;  %v10829_v15 = vcombine.low %v15131_v63, %v15136_v4  ;;  %v3096_v36 = vor.u32 %v3095_v39, %v3092_v62  ;;  %v3101_v4 = vrot.slane %v3099_v59, 3  ;;  %v15176_v63 = vld [vmem:[%s16564_s0 + $0xb8] sm:$0xf] }
 0x1b0   :  { %12122 = vmatprep.mubr.msk.bf16.mxu1 %vm107_vm1, %v8081_v58  ;;  %v8099_v58 = vsel %vm3053_vm6, %v8089_v31, %v8098_v56  ;;  %v3104_v48 = vrot.slane %v3102_v42, 4  ;;  %16676 = vst [vmem:[#allocation29_spill] sm:$0xff] %v15176_v63  ;;  %v10830_v62 = vcombine.low %v15160_v5, %v15165_v44  ;;  %v3108_v39 = vshrl.u32 %v10265_v16, 16 }
 0x1b1   :  { %v8112_v41 = vrot.slane %v8110_v22, 3  ;;  %v3111_v31 = vshll.u32 %v10265_v16, 16  ;;  %v8119_v59 = vshrl.u32 %v10829_v15, 16  ;;  %v8122_v42 = vshll.u32 %v10829_v15, 16  ;;  %v15202_v22 = vld [vmem:[%s16564_s0 + $0x284] sm:$0xf] }
 0x1b2   :  { %v10267_v17 = vcombine.low %v15176_v63, %v15181_v18  ;;  %16679 = vst [vmem:[#allocation32_spill] sm:$0xff] %v15202_v22  ;;  %v3117_v16 = vshrl.u32 %v10266_v50, 16  ;;  %v3120_v15 = vshll.u32 %v10266_v50, 16  ;;  %v8128_v18 = vshrl.u32 %v10830_v62, 16  ;;  %v15215_v63 = vld [vmem:[%s16564_s0 + $0xc0] sm:$0xf] }
 0x1b3   :  { %v8131_v44 = vshll.u32 %v10830_v62, 16  ;;  %16680 = vst [vmem:[#allocation33_spill] sm:$0xff] %v15215_v63  ;;  %v8108_v50 = vsel %vm3053_vm6, %v8098_v56, %v8107_v12  ;;  %v8124_v56 = vrot.slane %v8122_v42, 4 }
 0x1b4   :  { %v3129_v62 = vshll.u32 %v10267_v17, 16  ;;  %v8130_v34 = vrot.slane %v8128_v18, 3  ;;  %v15251_v18 = vld [vmem:[%s16564_s0 + $0xc8] sm:$0xf] }
 0x1b5   :  { %v8133_v27 = vrot.slane %v8131_v44, 4  ;;  %16684 = vst [vmem:[#allocation37_spill] sm:$0xff] %v15251_v18  ;;  %v15256_v44 = vld [vmem:[%s16564_s0 + $0xcc] sm:$0xf] }
 0x1b6   :  { %11707 = vmatmul.mubr.msk.bf16.vlgmr.msra.gmra.mrb[0].mxu0 %vm107_vm1, %v3079_v55  ;;  %v3097_v55 = vsel %vm3053_vm6, %v3087_v61, %v3096_v36  ;;  %v3113_v61 = vrot.slane %v3111_v31, 4  ;;  %v3119_v31 = vrot.slane %v3117_v16, 3  ;;  %16685 = vst [vmem:[#allocation38_spill] sm:$0xff] %v15256_v44 }
 0x1b7   :  { %12123 = vmatmul.mubr.msk.bf16.vlgmr.msra.gmra.mrb[0].mxu1 %vm107_vm1, %v8090_v54  ;;  %11731 = vmatpush3.bf16.msra.mxu0 %v3430_v2  ;;  %v3105_v2 = vor.u32 %v3104_v48, %v3101_v4  ;;  %v8116_v54 = vor.u32 %v8115_v37, %v8112_v41  ;;  %v3110_v48 = vrot.slane %v3108_v39, 3  ;;  %v10831_v37 = vcombine.low %v15197_v60, %v15202_v22  ;;  %v15230_v4 = vld [vmem:[%s16564_s0 + $0x288] sm:$0xf] }
 0x1b8   :  { %12147 = vmatpush3.bf16.msra.mxu1 %v8440_v30  ;;  %11710 = vmatprep.mubr.msk.bf16.mxu0 %vm107_vm1, %v3088_v7  ;;  %v15220_v30 = vld [vmem:[%s16564_s0 + $0xc4] sm:$0xf]  ;;  %16682 = vst [vmem:[#allocation35_spill] sm:$0xff] %v15230_v4  ;;  %v15235_v7 = vld [vmem:[%s16564_s0 + $0x28c] sm:$0xf]  ;;  %v3126_v41 = vshrl.u32 %v10267_v17, 16 }
 0x1b9   :  { %12126 = vmatprep.mubr.msk.bf16.mxu1 %vm107_vm1, %v8099_v58  ;;  %16681 = vst [vmem:[#allocation34_spill] sm:$0xff] %v15220_v30  ;;  %13081 = vmatprep.subr.msk.bf16.mxu0 %vm144_vm0, %v15189_v0  ;;  %16683 = vst [vmem:[#allocation36_spill] sm:$0xff] %v15235_v7  ;;  %v8121_v58 = vrot.slane %v8119_v59, 3  ;;  %v3106_v39 = vsel %vm3053_vm6, %v3096_v36, %v3105_v2  ;;  %v3122_v22 = vrot.slane %v3120_v15, 4  ;;  %v8137_v59 = vshrl.u32 %v10831_v37, 16 }
 0x1ba   :  { %13097 = vmatprep.subr.msk.bf16.mxu1 %vm144_vm0, %v15207_v49  ;;  %v10268_v60 = vcombine.low %v15215_v63, %v15220_v30  ;;  %v8117_v5 = vsel %vm3053_vm6, %v8107_v12, %v8116_v54  ;;  %v10832_v43 = vcombine.low %v15230_v4, %v15235_v7  ;;  %v8140_v42 = vshll.u32 %v10831_v37, 16 }
 0x1bb   :  { %v3114_v36 = vor.u32 %v3113_v61, %v3110_v48  ;;  %v8125_v17 = vor.u32 %v8124_v56, %v8121_v58  ;;  %v3128_v16 = vrot.slane %v3126_v41, 3  ;;  %v3131_v15 = vrot.slane %v3129_v62, 4  ;;  %v15262_v48 = vld [vmem:[%s16564_s0 + $0x290] sm:$0xf]  ;;  %v15267_v61 = vld [vmem:[%s16564_s0 + $0x294] sm:$0xf] }
 0x1bc   :  { %v3123_v12 = vor.u32 %v3122_v22, %v3119_v31  ;;  %v8134_v37 = vor.u32 %v8133_v27, %v8130_v34  ;;  %v8146_v58 = vshrl.u32 %v10832_v43, 16  ;;  %v8149_v56 = vshll.u32 %v10832_v43, 16  ;;  %v15284_v27 = vld [vmem:[%s16564_s0 + $0x298] sm:$0xf]  ;;  %v15289_v43 = vld [vmem:[%s16564_s0 + $0x29c] sm:$0xf] }
 0x1bd   :  { %v8139_v22 = vrot.slane %v8137_v59, 3  ;;  %v8142_v41 = vrot.slane %v8140_v42, 4  ;;  %v10269_v62 = vcombine.low %v15251_v18, %v15256_v44  ;;  %16687 = vst [vmem:[#allocation40_spill] sm:$0xff] %v15289_v43  ;;  %v3115_v34 = vsel %vm3053_vm6, %v3105_v2, %v3114_v36 }
 0x1be   :  { %11711 = vmatmul.mubr.msk.bf16.gmra.mrb[4].mxu0 %vm107_vm1, %v3097_v55  ;;  %v3135_v55 = vshrl.u32 %v10268_v60, 16  ;;  %v10833_v31 = vcombine.low %v15262_v48, %v15267_v61  ;;  %v3124_v59 = vsel %vm3053_vm6, %v3114_v36, %v3123_v12  ;;  %v8135_v30 = vsel %vm3053_vm6, %v8125_v17, %v8134_v37 }
 0x1bf   :  { %12127 = vmatmul.mubr.msk.bf16.gmra.mrb[4].mxu1 %vm107_vm1, %v8108_v50  ;;  %11714 = vmatprep.mubr.msk.bf16.mxu0 %vm107_vm1, %v3106_v39  ;;  %v3138_v50 = vshll.u32 %v10268_v60, 16  ;;  %v15277_v60 = vld [vmem:[%s16564_s0 + $0xd4] sm:$0xf]  ;;  %v8126_v39 = vsel %vm3053_vm6, %v8116_v54, %v8125_v17  ;;  %v8148_v18 = vrot.slane %v8146_v58, 3  ;;  %v8151_v4 = vrot.slane %v8149_v56, 4 }
 0x1c0   :  { %12130 = vmatprep.mubr.msk.bf16.mxu1 %vm107_vm1, %v8117_v5  ;;  %v15272_v5 = vld [vmem:[%s16564_s0 + $0xd0] sm:$0xf]  ;;  %16686 = vst [vmem:[#allocation39_spill] sm:$0xff] %v15277_v60  ;;  %v3137_v42 = vrot.slane %v3135_v55, 3  ;;  %v10834_v63 = vcombine.low %v15284_v27, %v15289_v43  ;;  %v3132_v2 = vor.u32 %v3131_v15, %v3128_v16  ;;  %v8143_v54 = vor.u32 %v8142_v41, %v8139_v22  ;;  %v15308_v43 = vld [vmem:[%s16564_s0 + $0xd8] sm:$0xf] }
 0x1c1   :  { %v3140_v44 = vrot.slane %v3138_v50, 4  ;;  %v10270_v7 = vcombine.low %v15272_v5, %v15277_v60  ;;  %v3144_v11 = vshrl.u32 %v10269_v62, 16  ;;  %v3147_v36 = vshll.u32 %v10269_v62, 16  ;;  %v15313_v41 = vld [vmem:[%s16564_s0 + $0x2a0] sm:$0xf] }
 0x1c2   :  { %v8155_v55 = vshrl.u32 %v10833_v31, 16  ;;  %v8158_v50 = vshll.u32 %v10833_v31, 16  ;;  %v8152_v16 = vor.u32 %v8151_v4, %v8148_v18  ;;  %v8164_v15 = vshrl.u32 %v10834_v63, 16 }
 0x1c3   :  { %v3141_v17 = vor.u32 %v3140_v44, %v3137_v42  ;;  %v3153_v58 = vshrl.u32 %v10270_v7, 16  ;;  %v3156_v56 = vshll.u32 %v10270_v7, 16  ;;  %v8167_v22 = vshll.u32 %v10834_v63, 16 }
 0x1c4   :  { %v3133_v62 = vsel %vm3053_vm6, %v3123_v12, %v3132_v2  ;;  %v3146_v44 = vrot.slane %v3144_v11, 3  ;;  %v8157_v7 = vrot.slane %v8155_v55, 3  ;;  %v10271_v31 = vcombine.low %v15308_v43, %v15308_v43 }
 0x1c5   :  { %v3142_v4 = vsel %vm3053_vm6, %v3132_v2, %v3141_v17  ;;  %v3155_v18 = vrot.slane %v3153_v58, 3  ;;  %v3158_v63 = vrot.slane %v3156_v56, 4  ;;  %v8153_v42 = vsel %vm3053_vm6, %v8143_v54, %v8152_v16 }
 0x1c6   :  { %11715 = vmatmul.mubr.msk.bf16.gmra.mrb[8].mxu0 %vm107_vm1, %v3115_v34  ;;  %v3149_v34 = vrot.slane %v3147_v36, 4  ;;  %v8166_v60 = vrot.slane %v8164_v15, 3  ;;  %v8169_v12 = vrot.slane %v8167_v22, 4  ;;  %v3162_v36 = vshrl.u32 %v10271_v31, 16  ;;  %v10848_v15 = vld [vmem:[%s16564_s0 + $0x1d0] sm:$0xc] }
 0x1c7   :  { %12131 = vmatmul.mubr.msk.bf16.gmra.mrb[8].mxu1 %vm107_vm1, %v8126_v39  ;;  %11718 = vmatprep.mubr.msk.bf16.mxu0 %vm107_vm1, %v3124_v59  ;;  %v8160_v39 = vrot.slane %v8158_v50, 4  ;;  %v10835_v59 = vcombine.low %v15313_v41, %v15313_v41  ;;  %v3165_v55 = vshll.u32 %v10271_v31, 16  ;;  %v3159_v2 = vor.u32 %v3158_v63, %v3155_v18 }
 0x1c8   :  { %12134 = vmatprep.mubr.msk.bf16.mxu1 %vm107_vm1, %v8135_v30  ;;  %v8144_v30 = vsel %vm3053_vm6, %v8134_v37, %v8143_v54  ;;  %v3150_v11 = vor.u32 %v3149_v34, %v3146_v44  ;;  %v8170_v56 = vor.u32 %v8169_v12, %v8166_v60  ;;  %v3362_v54 = vld [vmem:[%s16564_s0 + $0x8] sm:$0xc]  ;;  %v3369_v63 = vrot.slane %v14735_v25, 2 }
 0x1c9   :  { %v8161_v37 = vor.u32 %v8160_v39, %v8157_v7  ;;  %v8173_v50 = vshrl.u32 %v10835_v59, 16  ;;  %v8176_v58 = vshll.u32 %v10835_v59, 16  ;;  %v3167_v44 = vrot.slane %v3165_v55, 4 }
 0x1ca   :  { %v3151_v22 = vsel %vm3053_vm6, %v3141_v17, %v3150_v11  ;;  %v3160_v34 = vsel %vm3053_vm6, %v3150_v11, %v3159_v2  ;;  %v10285_v60 = vcombine.low %v3362_v54, %v14715_v6  ;;  %v8379_v6 = vrot.slane %v14742_v9, 2 }
 0x1cb   :  { %v8175_v7 = vrot.slane %v8173_v50, 3  ;;  %v8178_v39 = vrot.slane %v8176_v58, 4  ;;  %v8171_v31 = vsel %vm3053_vm6, %v8161_v37, %v8170_v56  ;;  %v8381_v25 = vrot.slane %v14763_v1, 2 }
 0x1cc   :  { %v3368_v18 = vrot.slane %v10285_v60, 2  ;;  %v3373_v9 = vrot.slane %v14769_v47, 2  ;;  %v3636_v50 = vsel %vm144_vm0, %v15189_v0, 0  ;;  %v8645_v58 = vsel %vm144_vm0, %v15207_v49, 0  ;;  %v15369_v47 = vld [vmem:[%s16563_s1 + $0x30] sm:$0xf] }
 0x1cd   :  { %v15376_v0 = vld [vmem:[%s16563_s1 + $0x30] sm:$0xf]  ;;  %v8385_v49 = vrot.slane %v14797_v14, 2  ;;  %v8387_v54 = vrot.slane %v14810_v33, 2  ;;  %v15398_v33 = vld [vmem:[%s16564_s0 + $0x168] sm:$0xf] }
 0x1ce   :  { %11719 = vmatmul.mubr.msk.bf16.gmra.mrb[12].mxu0 %vm107_vm1, %v3133_v62  ;;  %v8162_v62 = vsel %vm3053_vm6, %v8152_v16, %v8161_v37  ;;  %v8179_v16 = vor.u32 %v8178_v39, %v8175_v7  ;;  %v3370_v12 = vsel %vm367_vm2, %v3368_v18, %v3369_v63  ;;  %v3371_v37 = vrot.slane %v14757_v29, 2  ;;  %16688 = vst [vmem:[#allocation41_spill] sm:$0xff] %v15398_v33  ;;  %v15415_v39 = vld [vmem:[%s16564_s0 + $0x330] sm:$0xf]  ;;  %v15420_v60 = vld [vmem:[%s16564_s0 + $0x334] sm:$0xf] }
 0x1cf   :  { %12135 = vmatmul.mubr.msk.bf16.gmra.mrb[12].mxu1 %vm107_vm1, %v8144_v30  ;;  %11722 = vmatprep.mubr.msk.bf16.mxu0 %vm107_vm1, %v3142_v4  ;;  %v3164_v30 = vrot.slane %v3162_v36, 3  ;;  %v10850_v4 = vcombine.low %v10848_v15, %v14723_v3  ;;  %v8383_v36 = vrot.slane %v14779_v28, 2  ;;  %v3375_v28 = vrot.slane %v14791_v21, 2  ;;  %16690 = vst [vmem:[#allocation43_spill] sm:$0xff] %v15415_v39  ;;  %16691 = vst [vmem:[#allocation44_spill] sm:$0xff] %v15420_v60 }
 0x1d0   :  { %12138 = vmatprep.mubr.msk.bf16.mxu1 %vm107_vm1, %v8153_v42  ;;  %v8180_v3 = vsel %vm3053_vm6, %v8170_v56, %v8179_v16  ;;  %v3372_v55 = vsel %vm367_vm2, %v3369_v63, %v3371_v37  ;;  %v3374_v29 = vsel %vm367_vm2, %v3371_v37, %v3373_v9  ;;  %v3377_v56 = vrot.slane %v14804_v26, 2 }
 0x1d1   :  { %v3168_v17 = vor.u32 %v3167_v44, %v3164_v30  ;;  %v8378_v59 = vrot.slane %v10850_v4, 2  ;;  %v8384_v1 = vsel %vm367_vm2, %v8381_v25, %v8383_v36  ;;  %v3376_v21 = vsel %vm367_vm2, %v3373_v9, %v3375_v28 }
 0x1d2   :  { %v8386_v15 = vsel %vm367_vm2, %v8383_v36, %v8385_v49  ;;  %v8388_v14 = vsel %vm367_vm2, %v8385_v49, %v8387_v54  ;;  %v3379_v26 = vrot.slane %v14825_v10, 2  ;;  %v8389_v30 = vrot.slane %v14836_v57, 2  ;;  %v16694_v36 = vld [vmem:[#allocation9_spill] sm:$0xff] }
 0x1d3   :  { %v3169_v42 = vsel %vm3053_vm6, %v3159_v2, %v3168_v17  ;;  %v8380_v11 = vsel %vm367_vm2, %v8378_v59, %v8379_v6  ;;  %v8382_v2 = vsel %vm367_vm2, %v8379_v6, %v8381_v25  ;;  %v3381_v44 = vrot.slane %v14843_v53, 2 }
 0x1d4   :  { %v8391_v10 = vrot.slane %v14849_v52, 2  ;;  %v3380_v7 = vsel %vm367_vm2, %v3377_v56, %v3379_v26  ;;  %v8390_v57 = vsel %vm367_vm2, %v8387_v54, %v8389_v30  ;;  %v3383_v4 = vrot.slane %v14862_v13, 2  ;;  %v16699_v54 = vld [vmem:[#allocation13_spill] sm:$0xff] }
 0x1d5   :  { %v3382_v53 = vsel %vm367_vm2, %v3379_v26, %v3381_v44  ;;  %v8393_v17 = vrot.slane %v14875_v20, 2  ;;  %v3385_v16 = vrot.slane %v14887_v19, 2  ;;  %v8395_v18 = vrot.slane %v14900_v40, 2  ;;  %v16692_v40 = vld [vmem:[#allocation6_spill] sm:$0xff]  ;;  %v15482_v26 = vld [vmem:[%s16563_s1 + $0x34] sm:$0xf] }
 0x1d6   :  { %11723 = vmatmul.mubr.msk.bf16.gmra.mrb[16].mxu0 %vm107_vm1, %v3151_v22  ;;  %v3378_v22 = vsel %vm367_vm2, %v3375_v28, %v3377_v56  ;;  %v8392_v52 = vsel %vm367_vm2, %v8389_v30, %v8391_v10  ;;  %v3384_v63 = vsel %vm367_vm2, %v3381_v44, %v3383_v4  ;;  %v3387_v13 = vrot.slane %v14908_v38, 2  ;;  %v16693_v38 = vld [vmem:[#allocation7_spill] sm:$0xff]  ;;  %v16698_v28 = vld [vmem:[#allocation12_spill] sm:$0xff]  ;;  %v16704_v30 = vld [vmem:[#allocation5_spill] sm:$0xff] }
 0x1d7   :  { %12139 = vmatmul.mubr.msk.bf16.gmra.mrb[16].mxu1 %vm107_vm1, %v8162_v62  ;;  %11726 = vmatprep.mubr.msk.bf16.mxu0 %vm107_vm1, %v3160_v34  ;;  %v15403_v62 = vld [vmem:[%s16564_s0 + $0x16c] sm:$0xf]  ;;  %v8394_v59 = vsel %vm367_vm2, %v8391_v10, %v8393_v17  ;;  %v3386_v6 = vsel %vm367_vm2, %v3383_v4, %v3385_v16  ;;  %v8397_v20 = vrot.slane %v14913_v45, 2  ;;  %v3389_v19 = vrot.slane %v14931_v46, 2  ;;  %v16710_v4 = vld [vmem:[#allocation17_spill] sm:$0xff] }
 0x1d8   :  { %12142 = vmatprep.mubr.msk.bf16.mxu1 %vm107_vm1, %v8171_v31  ;;  %16689 = vst [vmem:[#allocation42_spill] sm:$0xff] %v15403_v62  ;;  %v3391_v45 = vrot.slane %v16693_v38, 2  ;;  %v8401_v46 = vrot.slane %v14952_v51, 2  ;;  %v4034_v51 = vsel %vm144_vm0, %v15369_v47, 0  ;;  %v10301_v49 = vcombine.low %v16698_v28, %v15026_v8  ;;  %v15491_v8 = vld [vmem:[%s16563_s1 + $0x34] sm:$0xf] }
 0x1d9   :  { %v3390_v37 = vsel %vm367_vm2, %v3387_v13, %v3389_v19  ;;  %v9042_v56 = vsel %vm144_vm0, %v15376_v0, 0  ;;  %v16707_v10 = vld [vmem:[#allocation15_spill] sm:$0xff]  ;;  %v15539_v38 = vld [vmem:[%s16564_s0 + $0x2b8] sm:$0xf] }
 0x1da   :  { %v3392_v9 = vsel %vm367_vm2, %v3389_v19, %v3391_v45  ;;  %v16721_v45 = vld [vmem:[#allocation31_spill] sm:$0xff] }
 0x1de   :  { %11727 = vmatmul.mubr.msk.bf16.gmra.mrb[20].mxu0 %vm107_vm1, %v3169_v42  ;;  %v8396_v42 = vsel %vm367_vm2, %v8393_v17, %v8395_v18 }
 0x1df   :  { %12143 = vmatmul.mubr.msk.bf16.gmra.mrb[20].mxu1 %vm107_vm1, %v8180_v3  ;;  %11732 = vmatprep.mubr.msk.bf16.mxu0 %vm107_vm1, %v3370_v12  ;;  %v8399_v3 = vrot.slane %v16692_v40, 2  ;;  %v3388_v12 = vsel %vm367_vm2, %v3385_v16, %v3387_v13  ;;  %v16712_v16 = vld [vmem:[#allocation18_spill] sm:$0xff]  ;;  %v16717_v13 = vld [vmem:[#allocation27_spill] sm:$0xff] }
 0x1e0   :  { %12148 = vmatprep.mubr.msk.bf16.mxu1 %vm107_vm1, %v8380_v11  ;;  %v8398_v11 = vsel %vm367_vm2, %v8395_v18, %v8397_v20  ;;  %v3791_v40 = vld [vmem:[%s16564_s0 + $0xec] sm:$0xe] }
 0x1e1   :  { %v8400_v25 = vsel %vm367_vm2, %v8397_v20, %v8399_v3  ;;  %v16718_v20 = vld [vmem:[#allocation24_spill] sm:$0xff] }
 0x1e2   :  { %v10870_v19 = vcombine.low %v16718_v20, %v16717_v13 }
 0x1e6   :  { %11733 = vmatmul.mubr.msk.bf16.vlgmr.msra.gmra.mrb[0].mxu0 %vm107_vm1, %v3372_v55  ;;  %v16695_v55 = vld [vmem:[#allocation8_spill] sm:$0xff] }
 0x1e7   :  { %12149 = vmatmul.mubr.msk.bf16.vlgmr.msra.gmra.mrb[0].mxu1 %vm107_vm1, %v8382_v2  ;;  %11757 = vmatpush3.bf16.msra.mxu0 %v3636_v50  ;;  %v10299_v2 = vcombine.low %v16695_v55, %v16694_v36  ;;  %v8402_v50 = vsel %vm367_vm2, %v8399_v3, %v8401_v46  ;;  %v15529_v3 = vld [vmem:[%s16564_s0 + $0xf0] sm:$0xf]  ;;  %v16723_v36 = vld [vmem:[#allocation33_spill] sm:$0xff]  ;;  %v16724_v55 = vld [vmem:[#allocation30_spill] sm:$0xff] }
 0x1e8   :  { %12173 = vmatpush3.bf16.msra.mxu1 %v8645_v58  ;;  %11736 = vmatprep.mubr.msk.bf16.mxu0 %vm107_vm1, %v3374_v29  ;;  %v16696_v58 = vld [vmem:[#allocation11_spill] sm:$0xff]  ;;  %v16697_v29 = vld [vmem:[#allocation10_spill] sm:$0xff]  ;;  %v16722_v46 = vld [vmem:[#allocation28_spill] sm:$0xff] }
 0x1e9   :  { %12152 = vmatprep.mubr.msk.bf16.mxu1 %vm107_vm1, %v8384_v1  ;;  %13082 = vmatprep.subr.msk.bf16.mxu0 %vm144_vm0, %v15369_v47  ;;  %v10864_v1 = vcombine.low %v16697_v29, %v16696_v58  ;;  %v16703_v47 = vld [vmem:[#allocation4_spill] sm:$0xff] }
 0x1ea   :  { %13098 = vmatprep.subr.msk.bf16.mxu1 %vm144_vm0, %v15376_v0  ;;  %v16705_v44 = vcombine.low %v16703_v47, %v16704_v30  ;;  %v16726_v58 = vld [vmem:[#allocation32_spill] sm:$0xff] }
 0x1ee   :  { %11737 = vmatmul.mubr.msk.bf16.gmra.mrb[4].mxu0 %vm107_vm1, %v3376_v21  ;;  %v10866_v21 = vcombine.low %v16699_v54, %v15039_v23  ;;  %v16706_v23 = vld [vmem:[#allocation14_spill] sm:$0xff] }
 0x1ef   :  { %12153 = vmatmul.mubr.msk.bf16.gmra.mrb[4].mxu1 %vm107_vm1, %v8386_v15  ;;  %11740 = vmatprep.mubr.msk.bf16.mxu0 %vm107_vm1, %v3378_v22  ;;  %v16700_v15 = vld [vmem:[#allocation2_spill] sm:$0xff]  ;;  %v16701_v22 = vld [vmem:[#allocation3_spill] sm:$0xff]  ;;  %v10302_v0 = vcombine.low %v16706_v23, %v15057_v35  ;;  %v16711_v35 = vld [vmem:[#allocation21_spill] sm:$0xff] }
 0x1f0   :  { %12156 = vmatprep.mubr.msk.bf16.mxu1 %vm107_vm1, %v8388_v14  ;;  %v16702_v14 = vcombine.low %v16700_v15, %v16701_v22  ;;  %v10304_v18 = vcombine.low %v16712_v16, %v16711_v35  ;;  %v16728_v23 = vld [vmem:[#allocation34_spill] sm:$0xff] }
 0x1f1   :  { %v15588_v35 = vld [vmem:[%s16564_s0 + $0x104] sm:$0xff]  }
 0x1f2   :  { %v3908_v20 = vshrl.u32 %v15588_v35, 16 }
 0x1f6   :  { %11741 = vmatmul.mubr.msk.bf16.gmra.mrb[8].mxu0 %vm107_vm1, %v3380_v7  ;;  %v10867_v7 = vcombine.low %v16707_v10, %v15070_v32  ;;  %v15572_v10 = vld [vmem:[%s16564_s0 + $0xfc] sm:$0xff]  }
 0x1f7   :  { %12157 = vmatmul.mubr.msk.bf16.gmra.mrb[8].mxu1 %vm107_vm1, %v8390_v57  ;;  %11744 = vmatprep.mubr.msk.bf16.mxu0 %vm107_vm1, %v3382_v53  ;;  %v16708_v57 = vld [vmem:[#allocation16_spill] sm:$0xff] }
 0x1f8   :  { %12160 = vmatprep.mubr.msk.bf16.mxu1 %vm107_vm1, %v8392_v52  ;;  %v10303_v53 = vcombine.low %v16708_v57, %v15089_v24  ;;  %v16709_v52 = vld [vmem:[#allocation19_spill] sm:$0xff] }
 0x1f9   :  { %v10868_v17 = vcombine.low %v16710_v4, %v16709_v52  ;;  %v10874_v4 = vcombine.low %v15267_v61, %v15284_v27  ;;  %v3899_v61 = vshrl.u32 %v15572_v10, 16  ;;  %v3902_v27 = vshll.u32 %v15572_v10, 16 }
 0x1fe   :  { %11745 = vmatmul.mubr.msk.bf16.gmra.mrb[12].mxu0 %vm107_vm1, %v3384_v63  ;;  %v16713_v63 = vld [vmem:[#allocation23_spill] sm:$0xff] }
 0x1ff   :  { %12161 = vmatmul.mubr.msk.bf16.gmra.mrb[12].mxu1 %vm107_vm1, %v8394_v59  ;;  %11748 = vmatprep.mubr.msk.bf16.mxu0 %vm107_vm1, %v3386_v6  ;;  %v16714_v59 = vld [vmem:[#allocation20_spill] sm:$0xff]  ;;  %v16715_v6 = vld [vmem:[#allocation25_spill] sm:$0xff] }
 0x200   :  { %12164 = vmatprep.mubr.msk.bf16.mxu1 %vm107_vm1, %v8396_v42  ;;  %v10869_v32 = vcombine.low %v16714_v59, %v16713_v63  ;;  %v16716_v42 = vld [vmem:[#allocation22_spill] sm:$0xff] }
 0x201   :  { %v10305_v24 = vcombine.low %v16716_v42, %v16715_v6  ;;  %v15596_v42 = vld [vmem:[%s16564_s0 + $0x2cc] sm:$0xff]  }
 0x206   :  { %11749 = vmatmul.mubr.msk.bf16.gmra.mrb[16].mxu0 %vm107_vm1, %v3388_v12  ;;  %v16719_v12 = vld [vmem:[#allocation29_spill] sm:$0xff] }
 0x207   :  { %12165 = vmatmul.mubr.msk.bf16.gmra.mrb[16].mxu1 %vm107_vm1, %v8398_v11  ;;  %11752 = vmatprep.mubr.msk.bf16.mxu0 %vm107_vm1, %v3390_v37  ;;  %v16720_v11 = vld [vmem:[#allocation26_spill] sm:$0xff] }
 0x208   :  { %12168 = vmatprep.mubr.msk.bf16.mxu1 %vm107_vm1, %v8400_v25  ;;  %v10306_v37 = vcombine.low %v16720_v11, %v16719_v12  ;;  %v10888_v25 = vld [vmem:[%s16564_s0 + $0x2b4] sm:$0xe]  ;;  %v15608_v11 = vld [vmem:[%s16564_s0 + $0x10c] sm:$0xff]  }
 0x209   :  { %v10914_v28 = vcombine.low %v10888_v25, %v15539_v38 }
 0x20b   :  { %v8890_v22 = vshrl.u32 %v10914_v28, 16 }
 0x20d   :  { %v8892_v59 = vrot.slane %v8890_v22, 1 }
 0x20e   :  { %11753 = vmatmul.mubr.msk.bf16.gmra.mrb[20].mxu0 %vm107_vm1, %v3392_v9  ;;  %v10871_v9 = vcombine.low %v16722_v46, %v16721_v45  ;;  %v16732_v45 = vld [vmem:[#allocation40_spill] sm:$0xff] }
 0x20f   :  { %12169 = vmatmul.mubr.msk.bf16.gmra.mrb[20].mxu1 %vm107_vm1, %v8402_v50  ;;  %11758 = vmatprep.mubr.msk.bf16.mxu0 %vm107_vm1, %v10299_v2  ;;  %v10307_v2 = vcombine.low %v16724_v55, %v16723_v36  ;;  %v16725_v50 = vld [vmem:[#allocation35_spill] sm:$0xff]  ;;  %v10875_v46 = vcombine.low %v16732_v45, %v15313_v41  ;;  %v3901_v55 = vrot.slane %v3899_v61, 1  ;;  %v3917_v41 = vshrl.u32 %v15608_v11, 16 }
 0x210   :  { %12174 = vmatprep.mubr.msk.bf16.mxu1 %vm107_vm1, %v10864_v1  ;;  %v10872_v29 = vcombine.low %v16726_v58, %v16725_v50  ;;  %v10324_v1 = vcombine.low %v3791_v40, %v15529_v3  ;;  %v8916_v50 = vshrl.u32 %v15596_v42, 16  ;;  %v8919_v58 = vshll.u32 %v15596_v42, 16 }
 0x212   :  { %v3885_v54 = vshll.u32 %v10324_v1, 16 }
 0x216   :  { %11759 = vmatmul.mubr.msk.bf16.vlgmr.msra.gmra.mrb[0].mxu0 %vm107_vm1, %v16702_v14  ;;  %v8893_v14 = vshll.u32 %v10914_v28, 16  ;;  %v3910_v28 = vrot.slane %v3908_v20, 1 }
 0x217   :  { %12175 = vmatmul.mubr.msk.bf16.vlgmr.msra.gmra.mrb[0].mxu1 %vm107_vm1, %v16705_v44  ;;  %11783 = vmatpush3.bf16.msra.mxu0 %v4034_v51  ;;  %v15551_v51 = vld [vmem:[%s16564_s0 + $0xf4] sm:$0xff]  }
 0x218   :  { %12199 = vmatpush3.bf16.msra.mxu1 %v9042_v56  ;;  %11762 = vmatprep.mubr.msk.bf16.mxu0 %vm107_vm1, %v10301_v49  ;;  %v15557_v49 = vld [vmem:[%s16564_s0 + $0x2bc] sm:$0xff]   ;;  %v3882_v56 = vshrl.u32 %v10324_v1, 16  ;;  %v3893_v15 = vshll.u32 %v15551_v51, 16 }
 0x219   :  { %12178 = vmatprep.mubr.msk.bf16.mxu1 %vm107_vm1, %v10866_v21  ;;  %13083 = vmatprep.subr.msk.bf16.mxu0 %vm144_vm0, %v15482_v26  ;;  %v3890_v21 = vshrl.u32 %v15551_v51, 16  ;;  %v8898_v47 = vshrl.u32 %v15557_v49, 16  ;;  %v8901_v30 = vshll.u32 %v15557_v49, 16  ;;  %v16727_v44 = vld [vmem:[#allocation37_spill] sm:$0xff] }
 0x21a   :  { %13099 = vmatprep.subr.msk.bf16.mxu1 %vm144_vm0, %v15491_v8  ;;  %v3884_v16 = vrot.slane %v3882_v56, 1 }
 0x21b   :  { %v3892_v63 = vrot.slane %v3890_v21, 1  ;;  %v8903_v6 = vrot.slane %v8901_v30, 2  ;;  %v3920_v21 = vshll.u32 %v15608_v11, 16  ;;  %v8918_v30 = vrot.slane %v8916_v50, 1  ;;  %v15686_v50 = vld [vmem:[%s16564_s0 + $0x2f4] sm:$0xff]  }
 0x21e   :  { %11763 = vmatmul.mubr.msk.bf16.gmra.mrb[4].mxu0 %vm107_vm1, %v10302_v0  ;;  %v10308_v0 = vcombine.low %v16728_v23, %v16727_v44  ;;  %v8921_v44 = vrot.slane %v8919_v58, 2  ;;  %v15691_v58 = vld [vmem:[%s16563_s1 + $0x38] sm:$0xf] }
 0x21f   :  { %12179 = vmatmul.mubr.msk.bf16.gmra.mrb[4].mxu1 %vm107_vm1, %v10867_v7  ;;  %11766 = vmatprep.mubr.msk.bf16.mxu0 %vm107_vm1, %v10303_v53  ;;  %v16729_v7 = vld [vmem:[#allocation36_spill] sm:$0xff]  ;;  %v16730_v53 = vld [vmem:[#allocation38_spill] sm:$0xff] }
 0x220   :  { %12182 = vmatprep.mubr.msk.bf16.mxu1 %vm107_vm1, %v10868_v17  ;;  %v10873_v57 = vcombine.low %v16729_v7, %v15262_v48  ;;  %v10309_v52 = vcombine.low %v16730_v53, %v15272_v5  ;;  %v15583_v17 = vld [vmem:[%s16564_s0 + $0x2c4] sm:$0xff]   ;;  %v3895_v48 = vrot.slane %v3893_v15, 2  ;;  %v8900_v5 = vrot.slane %v8898_v47, 1  ;;  %v15627_v15 = vld [vmem:[%s16564_s0 + $0x114] sm:$0xff]  }
 0x221   :  { %v8910_v13 = vshll.u32 %v15583_v17, 16  ;;  %v3919_v53 = vrot.slane %v3917_v41, 1  ;;  %v8922_v61 = vor.u32 %v8921_v44, %v8918_v30 }
 0x222   :  { %v3896_v12 = vor.u32 %v3895_v48, %v3892_v63  ;;  %v8904_v36 = vor.u32 %v8903_v6, %v8900_v5  ;;  %v4432_v5 = vsel %vm144_vm0, %v15482_v26, 0  ;;  %v9439_v6 = vsel %vm144_vm0, %v15491_v8, 0 }
 0x223   :  { %v8912_v1 = vrot.slane %v8910_v13, 2 }
 0x226   :  { %11767 = vmatmul.mubr.msk.bf16.gmra.mrb[8].mxu0 %vm107_vm1, %v10304_v18  ;;  %v3887_v18 = vrot.slane %v3885_v54, 2  ;;  %v15619_v54 = vld [vmem:[%s16564_s0 + $0x2d4] sm:$0xff]  }
 0x227   :  { %12183 = vmatmul.mubr.msk.bf16.gmra.mrb[8].mxu1 %vm107_vm1, %v10869_v32  ;;  %11770 = vmatprep.mubr.msk.bf16.mxu0 %vm107_vm1, %v10305_v24  ;;  %v8895_v32 = vrot.slane %v8893_v14, 2  ;;  %v8907_v24 = vshrl.u32 %v15583_v17, 16  ;;  %v15633_v14 = vld [vmem:[%s16564_s0 + $0x2dc] sm:$0xff]   ;;  %v8925_v7 = vshrl.u32 %v15619_v54, 16 }
 0x228   :  { %12186 = vmatprep.mubr.msk.bf16.mxu1 %vm107_vm1, %v10870_v19  ;;  %v3911_v19 = vshll.u32 %v15588_v35, 16  ;;  %v3888_v40 = vor.u32 %v3887_v18, %v3884_v16  ;;  %v3929_v16 = vshll.u32 %v15627_v15, 16  ;;  %v15646_v18 = vld [vmem:[%s16564_s0 + $0x11c] sm:$0xff]   ;;  %v8934_v63 = vshrl.u32 %v15633_v14, 16 }
 0x229   :  { %v8937_v48 = vshll.u32 %v15633_v14, 16  ;;  %v8927_v13 = vrot.slane %v8925_v7, 1  ;;  %v15709_v7 = vld [vmem:[%s16564_s0 + $0x134] sm:$0xff]  }
 0x22a   :  { %v3913_v56 = vrot.slane %v3911_v19, 2  ;;  %v15665_v19 = vld [vmem:[%s16564_s0 + $0x124] sm:$0xff]   ;;  %v3931_v8 = vrot.slane %v3929_v16, 2 }
 0x22b   :  { %v8939_v45 = vrot.slane %v8937_v48, 2 }
 0x22e   :  { %11771 = vmatmul.mubr.msk.bf16.gmra.mrb[12].mxu0 %vm107_vm1, %v10306_v37  ;;  %v16731_v37 = vld [vmem:[#allocation39_spill] sm:$0xff] }
 0x22f   :  { %12187 = vmatmul.mubr.msk.bf16.gmra.mrb[12].mxu1 %vm107_vm1, %v10871_v9  ;;  %11774 = vmatprep.mubr.msk.bf16.mxu0 %vm107_vm1, %v10307_v2  ;;  %v10310_v25 = vcombine.low %v16731_v37, %v15308_v43  ;;  %v8896_v9 = vor.u32 %v8895_v32, %v8892_v59  ;;  %v3904_v2 = vrot.slane %v3902_v27, 2  ;;  %v3897_v43 = vsel %vm2654_vm5, %v3888_v40, %v3896_v12  ;;  %v15653_v59 = vld [vmem:[%s16564_s0 + $0x2e4] sm:$0xff]   ;;  %v15670_v40 = vld [vmem:[%s16564_s0 + $0x2ec] sm:$0xff]  }
 0x230   :  { %12190 = vmatprep.mubr.msk.bf16.mxu1 %vm107_vm1, %v10872_v29  ;;  %v8909_v29 = vrot.slane %v8907_v24, 1  ;;  %v3935_v37 = vshrl.u32 %v15646_v18, 16 }
 0x231   :  { %v8905_v22 = vsel %vm2654_vm5, %v8896_v9, %v8904_v36  ;;  %v3905_v47 = vor.u32 %v3904_v2, %v3901_v55  ;;  %v8943_v9 = vshrl.u32 %v15653_v59, 16  ;;  %v8946_v55 = vshll.u32 %v15653_v59, 16  ;;  %v15681_v2 = vld [vmem:[%s16564_s0 + $0x12c] sm:$0xff]  }
 0x232   :  { %v8913_v23 = vor.u32 %v8912_v1, %v8909_v29  ;;  %v3944_v29 = vshrl.u32 %v15665_v19, 16  ;;  %v3947_v1 = vshll.u32 %v15665_v19, 16  ;;  %v3937_v30 = vrot.slane %v3935_v37, 1 }
 0x233   :  { %v3906_v32 = vsel %vm2654_vm5, %v3896_v12, %v3905_v47 }
 0x234   :  { %v8914_v27 = vsel %vm2654_vm5, %v8904_v36, %v8913_v23  ;;  %v8923_v36 = vsel %vm2654_vm5, %v8913_v23, %v8922_v61  ;;  %v8945_v23 = vrot.slane %v8943_v9, 1  ;;  %v3949_v16 = vrot.slane %v3947_v1, 2 }
 0x236   :  { %11775 = vmatmul.mubr.msk.bf16.gmra.mrb[16].mxu0 %vm107_vm1, %v10308_v0  ;;  %v3914_v0 = vor.u32 %v3913_v56, %v3910_v28  ;;  %v8952_v28 = vshrl.u32 %v15670_v40, 16  ;;  %v8955_v56 = vshll.u32 %v15670_v40, 16 }
 0x237   :  { %12191 = vmatmul.mubr.msk.bf16.gmra.mrb[16].mxu1 %vm107_vm1, %v10873_v57  ;;  %11778 = vmatprep.mubr.msk.bf16.mxu0 %vm107_vm1, %v10309_v52  ;;  %v8928_v57 = vshll.u32 %v15619_v54, 16  ;;  %v3922_v52 = vrot.slane %v3920_v21, 2 }
 0x238   :  { %12194 = vmatprep.mubr.msk.bf16.mxu1 %vm107_vm1, %v10874_v4  ;;  %v3926_v4 = vshrl.u32 %v15627_v15, 16  ;;  %v3915_v24 = vsel %vm2654_vm5, %v3905_v47, %v3914_v0  ;;  %v8957_v48 = vrot.slane %v8955_v56, 2 }
 0x239   :  { %v8930_v20 = vrot.slane %v8928_v57, 2  ;;  %v3923_v26 = vor.u32 %v3922_v52, %v3919_v53  ;;  %v8948_v57 = vrot.slane %v8946_v55, 2  ;;  %v3953_v53 = vshrl.u32 %v15681_v2, 16 }
 0x23a   :  { %v3928_v12 = vrot.slane %v3926_v4, 1  ;;  %v8961_v52 = vshrl.u32 %v15686_v50, 16  ;;  %v3946_v4 = vrot.slane %v3944_v29, 1 }
 0x23b   :  { %v3924_v41 = vsel %vm2654_vm5, %v3914_v0, %v3923_v26  ;;  %v8931_v21 = vor.u32 %v8930_v20, %v8927_v13  ;;  %v3956_v0 = vshll.u32 %v15681_v2, 16  ;;  %v15734_v13 = vld [vmem:[%s16564_s0 + $0x304] sm:$0xff]   ;;  %v3955_v37 = vrot.slane %v3953_v53, 1 }
 0x23c   :  { %v8979_v56 = vshrl.u32 %v15734_v13, 16 }
 0x23e   :  { %11779 = vmatmul.mubr.msk.bf16.gmra.mrb[20].mxu0 %vm107_vm1, %v10310_v25  ;;  %v8936_v25 = vrot.slane %v8934_v63, 1  ;;  %v8954_v63 = vrot.slane %v8952_v28, 1 }
 0x23f   :  { %12195 = vmatmul.mubr.msk.bf16.gmra.mrb[20].mxu1 %vm107_vm1, %v10875_v46  ;;  %11784 = vmatprep.mubr.msk.bf16.mxu0 %vm107_vm1, %v3897_v43  ;;  %v3938_v46 = vshll.u32 %v15646_v18, 16  ;;  %v15701_v43 = vld [vmem:[%s16563_s1 + $0x38] sm:$0xf] }
 0x240   :  { %12200 = vmatprep.mubr.msk.bf16.mxu1 %vm107_vm1, %v8905_v22  ;;  %v3932_v22 = vor.u32 %v3931_v8, %v3928_v12  ;;  %v8940_v47 = vor.u32 %v8939_v45, %v8936_v25  ;;  %v3962_v8 = vshrl.u32 %v15709_v7, 16  ;;  %v3958_v25 = vrot.slane %v3956_v0, 2  ;;  %v15759_v0 = vld [vmem:[%s16564_s0 + $0x30c] sm:$0xff]  }
 0x241   :  { %v3940_v44 = vrot.slane %v3938_v46, 2  ;;  %v8963_v45 = vrot.slane %v8961_v52, 1  ;;  %v3950_v46 = vor.u32 %v3949_v16, %v3946_v4  ;;  %v8958_v9 = vor.u32 %v8957_v48, %v8954_v63  ;;  %16733 = vst [vmem:[#allocation6_spill] sm:$0xff] %v15759_v0  ;;  %v15764_v52 = vld [vmem:[%s16564_s0 + $0x14c] ss:$0 sps:$4 sm:$0x33]  }
 0x242   :  { %v8941_v20 = vsel %vm2654_vm5, %v8931_v21, %v8940_v47  ;;  %v3959_v53 = vor.u32 %v3958_v25, %v3955_v37  ;;  %16734 = vst [vmem:[#allocation7_spill] sm:$0xff] %v15764_v52  ;;  %v15773_v37 = vld [vmem:[%s16564_s0 + $0x314] ss:$0 sps:$4 sm:$0x33]   ;;  %v3989_v25 = vshrl.u32 %v15764_v52, 16 }
 0x243   :  { %v3941_v12 = vor.u32 %v3940_v44, %v3937_v30  ;;  %v8982_v30 = vshll.u32 %v15734_v13, 16  ;;  %v15752_v44 = vld [vmem:[%s16564_s0 + $0x144] sm:$0xff]  }
 0x245   :  { %v3951_v4 = vsel %vm2654_vm5, %v3941_v12, %v3950_v46 }
 0x246   :  { %11785 = vmatmul.mubr.msk.bf16.vlgmr.msra.gmra.mrb[0].mxu0 %vm107_vm1, %v3906_v32  ;;  %v15721_v32 = vld [vmem:[%s16564_s0 + $0x2fc] sm:$0xff]  }
 0x247   :  { %12201 = vmatmul.mubr.msk.bf16.vlgmr.msra.gmra.mrb[0].mxu1 %vm107_vm1, %v8914_v27  ;;  %11809 = vmatpush3.bf16.msra.mxu0 %v4432_v5  ;;  %v8932_v5 = vsel %vm2654_vm5, %v8922_v61, %v8931_v21  ;;  %v8964_v27 = vshll.u32 %v15686_v50, 16  ;;  %v3965_v61 = vshll.u32 %v15709_v7, 16  ;;  %v8973_v55 = vshll.u32 %v15721_v32, 16 }
 0x248   :  { %12225 = vmatpush3.bf16.msra.mxu1 %v9439_v6  ;;  %11788 = vmatprep.mubr.msk.bf16.mxu0 %vm107_vm1, %v3915_v24  ;;  %v3933_v6 = vsel %vm2654_vm5, %v3923_v26, %v3932_v22  ;;  %v15729_v24 = vld [vmem:[%s16564_s0 + $0x13c] sm:$0xff]   ;;  %v8949_v26 = vor.u32 %v8948_v57, %v8945_v23  ;;  %v3942_v23 = vsel %vm2654_vm5, %v3932_v22, %v3941_v12  ;;  %v8988_v12 = vshrl.u32 %v15759_v0, 16 }
 0x249   :  { %12204 = vmatprep.mubr.msk.bf16.mxu1 %vm107_vm1, %v8923_v36  ;;  %13084 = vmatprep.subr.msk.bf16.mxu0 %vm144_vm0, %v15691_v58  ;;  %v8970_v36 = vshrl.u32 %v15721_v32, 16  ;;  %v8966_v29 = vrot.slane %v8964_v27, 2  ;;  %v3971_v1 = vshrl.u32 %v15729_v24, 16  ;;  %v3974_v28 = vshll.u32 %v15729_v24, 16 }
 0x24a   :  { %13100 = vmatprep.subr.msk.bf16.mxu1 %vm144_vm0, %v15701_v43  ;;  %v3967_v21 = vrot.slane %v3965_v61, 2  ;;  %v8950_v57 = vsel %vm2654_vm5, %v8940_v47, %v8949_v26  ;;  %v8959_v16 = vsel %vm2654_vm5, %v8949_v26, %v8958_v9  ;;  %v8975_v48 = vrot.slane %v8973_v55, 2  ;;  %v4189_v55 = vld [vmem:[%s16564_s0 + $0x15c] sm:$0x8] }
 0x24b   :  { %v8972_v63 = vrot.slane %v8970_v36, 1  ;;  %v8967_v22 = vor.u32 %v8966_v29, %v8963_v45  ;;  %v3976_v47 = vrot.slane %v3974_v28, 2  ;;  %v3983_v61 = vshll.u32 %v15752_v44, 16  ;;  %v15788_v29 = vld [vmem:[%s16564_s0 + $0x160] sm:$0xf] }
 0x24c   :  { %v8991_v26 = vshll.u32 %v15759_v0, 16  ;;  %v3992_v45 = vshll.u32 %v15764_v52, 16  ;;  %16735 = vst [vmem:[#allocation9_spill] sm:$0xff] %v15788_v29  ;;  %v3960_v28 = vsel %vm2654_vm5, %v3950_v46, %v3959_v53  ;;  %v8997_v46 = vshrl.u32 %v15773_v37, 16 }
 0x24d   :  { %v8976_v36 = vor.u32 %v8975_v48, %v8972_v63  ;;  %v15816_v63 = vld [vmem:[%s16564_s0 + $0x170] sm:$0xf]  ;;  %v10350_v48 = vcombine.low %v4189_v55, %v15788_v29 }
 0x24e   :  { %11789 = vmatmul.mubr.msk.bf16.gmra.mrb[4].mxu0 %vm107_vm1, %v3924_v41  ;;  %v3964_v41 = vrot.slane %v3962_v8, 1  ;;  %v3980_v8 = vshrl.u32 %v15752_v44, 16  ;;  %16739 = vst [vmem:[#allocation12_spill] sm:$0xff] %v15816_v63  ;;  %v15827_v52 = vrot.slane %v3992_v45, 2  ;;  %v15831_v55 = vrot.slane %v8997_v46, 1 }
 0x24f   :  { %12205 = vmatmul.mubr.msk.bf16.gmra.mrb[4].mxu1 %vm107_vm1, %v8932_v5  ;;  %11792 = vmatprep.mubr.msk.bf16.mxu0 %vm107_vm1, %v3933_v6  ;;  %v3973_v5 = vrot.slane %v3971_v1, 1  ;;  %v8981_v6 = vrot.slane %v8979_v56, 1  ;;  %v15793_v1 = vld [vmem:[%s16564_s0 + $0x164] sm:$0xf]  ;;  %v8977_v34 = vsel %vm2654_vm5, %v8967_v22, %v8976_v36 }
 0x250   :  { %12208 = vmatprep.mubr.msk.bf16.mxu1 %vm107_vm1, %v8941_v20  ;;  %v3968_v27 = vor.u32 %v3967_v21, %v3964_v41  ;;  %v8984_v20 = vrot.slane %v8982_v30, 2  ;;  %16736 = vst [vmem:[#allocation8_spill] sm:$0xff] %v15793_v1  ;;  %v10939_v56 = vld [vmem:[%s16564_s0 + $0x324] sm:$0x8]  ;;  %v15803_v41 = vld [vmem:[%s16564_s0 + $0x328] sm:$0xf]  ;;  %v8968_v30 = vsel %vm2654_vm5, %v8958_v9, %v8967_v22  ;;  %v10351_v31 = vcombine.low %v15793_v1, %v15398_v33 }
 0x251   :  { %16737 = vst [vmem:[#allocation11_spill] sm:$0xff] %v15803_v41  ;;  %v15808_v21 = vld [vmem:[%s16564_s0 + $0x32c] sm:$0xf]  ;;  %v9000_v33 = vshll.u32 %v15773_v37, 16  ;;  %v10352_v22 = vcombine.low %v15403_v62, %v15816_v63 }
 0x252   :  { %16738 = vst [vmem:[#allocation10_spill] sm:$0xff] %v15808_v21  ;;  %v8985_v9 = vor.u32 %v8984_v20, %v8981_v6  ;;  %v4280_v6 = vshrl.u32 %v10350_v48, 16  ;;  %v4283_v20 = vshll.u32 %v10350_v48, 16  ;;  %v15865_v48 = vld [vmem:[%s16564_s0 + $0x340] sm:$0xf] }
 0x253   :  { %16744 = vst [vmem:[#allocation5_spill] sm:$0xff] %v15865_v48 }
 0x254   :  { %v8986_v46 = vsel %vm2654_vm5, %v8976_v36, %v8985_v9  ;;  %v9002_v36 = vrot.slane %v9000_v33, 2  ;;  %v15883_v33 = vld [vmem:[%s16564_s0 + $0x180] sm:$0xf] }
 0x256   :  { %11793 = vmatmul.mubr.msk.bf16.gmra.mrb[8].mxu0 %vm107_vm1, %v3942_v23  ;;  %v3982_v23 = vrot.slane %v3980_v8, 1  ;;  %v10965_v8 = vcombine.low %v10939_v56, %v15803_v41  ;;  %v4288_v56 = vshrl.u32 %v10351_v31, 16 }
 0x257   :  { %12209 = vmatmul.mubr.msk.bf16.gmra.mrb[8].mxu1 %vm107_vm1, %v8950_v57  ;;  %11796 = vmatprep.mubr.msk.bf16.mxu0 %vm107_vm1, %v3951_v4  ;;  %v3985_v57 = vrot.slane %v3983_v61, 2  ;;  %v3969_v4 = vsel %vm2654_vm5, %v3959_v53, %v3968_v27  ;;  %v10966_v61 = vcombine.low %v15808_v21, %v15415_v39  ;;  %v8990_v53 = vrot.slane %v8988_v12, 1 }
 0x258   :  { %12212 = vmatprep.mubr.msk.bf16.mxu1 %vm107_vm1, %v8959_v16  ;;  %v3977_v16 = vor.u32 %v3976_v47, %v3973_v5  ;;  %v8993_v5 = vrot.slane %v8991_v26, 2  ;;  %v15825_v47 = vrot.slane %v3989_v25, 1  ;;  %v4291_v12 = vshll.u32 %v10351_v31, 16  ;;  %v15840_v26 = vld [vmem:[%s16564_s0 + $0x338] sm:$0xf] }
 0x259   :  { %v15829_v0 = vor.u32 %v3985_v57, %v3982_v23  ;;  %16740 = vst [vmem:[#allocation13_spill] sm:$0xff] %v15840_v26  ;;  %v9287_v25 = vshrl.u32 %v10965_v8, 16  ;;  %v9290_v45 = vshll.u32 %v10965_v8, 16  ;;  %v9295_v23 = vshrl.u32 %v10966_v61, 16 }
 0x25a   :  { %v9298_v57 = vshll.u32 %v10966_v61, 16  ;;  %v3978_v31 = vsel %vm2654_vm5, %v3968_v27, %v3977_v16  ;;  %v8994_v27 = vor.u32 %v8993_v5, %v8990_v53  ;;  %v10967_v8 = vcombine.low %v15420_v60, %v15840_v26 }
 0x25b   :  { %v4282_v61 = vrot.slane %v4280_v6, 3  ;;  %v4285_v39 = vrot.slane %v4283_v20, 4  ;;  %v4290_v62 = vrot.slane %v4288_v56, 3  ;;  %v4293_v63 = vrot.slane %v4291_v12, 4 }
 0x25c   :  { %v9289_v41 = vrot.slane %v9287_v25, 3  ;;  %v4297_v21 = vshrl.u32 %v10352_v22, 16  ;;  %v9292_v53 = vrot.slane %v9290_v45, 4  ;;  %v9297_v5 = vrot.slane %v9295_v23, 3 }
 0x25d   :  { %v9300_v6 = vrot.slane %v9298_v57, 4  ;;  %v4300_v20 = vshll.u32 %v10352_v22, 16  ;;  %v8995_v56 = vsel %vm2654_vm5, %v8985_v9, %v8994_v27  ;;  %v9304_v12 = vshrl.u32 %v10967_v8, 16 }
 0x25e   :  { %11797 = vmatmul.mubr.msk.bf16.gmra.mrb[12].mxu0 %vm107_vm1, %v3960_v28  ;;  %v15847_v28 = vld [vmem:[%s16564_s0 + $0x174] sm:$0xf]  ;;  %v9307_v25 = vshll.u32 %v10967_v8, 16  ;;  %v3995_v45 = vor.u32 %v15827_v52, %v15825_v47  ;;  %v9003_v22 = vor.u32 %v9002_v36, %v15831_v55  ;;  %v4286_v9 = vor.u32 %v4285_v39, %v4282_v61 }
 0x25f   :  { %12213 = vmatmul.mubr.msk.bf16.gmra.mrb[12].mxu1 %vm107_vm1, %v8968_v30  ;;  %11800 = vmatprep.mubr.msk.bf16.mxu0 %vm107_vm1, %v3969_v4  ;;  %16741 = vst [vmem:[#allocation2_spill] sm:$0xff] %v15847_v28  ;;  %v15855_v30 = vld [vmem:[%s16564_s0 + $0x178] sm:$0xf]  ;;  %v15860_v4 = vld [vmem:[%s16564_s0 + $0x33c] sm:$0xf]  ;;  %v9293_v39 = vor.u32 %v9292_v53, %v9289_v41  ;;  %v9301_v47 = vor.u32 %v9300_v6, %v9297_v5  ;;  %v9306_v55 = vrot.slane %v9304_v12, 3 }
 0x260   :  { %12216 = vmatprep.mubr.msk.bf16.mxu1 %vm107_vm1, %v8977_v34  ;;  %16742 = vst [vmem:[#allocation3_spill] sm:$0xff] %v15855_v30  ;;  %16743 = vst [vmem:[#allocation4_spill] sm:$0xff] %v15860_v4  ;;  %v3987_v34 = vsel %vm2654_vm5, %v3977_v16, %v15829_v0  ;;  %v10353_v29 = vcombine.low %v15847_v28, %v15855_v30  ;;  %v10968_v1 = vcombine.low %v15860_v4, %v15865_v48  ;;  %v15878_v16 = vld [vmem:[%s16564_s0 + $0x17c] sm:$0xf]  ;;  %v15889_v48 = vld [vmem:[%s16564_s0 + $0x344] sm:$0xf] }
 0x261   :  { %v15894_v30 = vld [vmem:[%s16564_s0 + $0x348] sm:$0xf]  ;;  %v10354_v23 = vcombine.low %v15878_v16, %v15883_v33  ;;  %v4299_v4 = vrot.slane %v4297_v21, 3  ;;  %v4302_v28 = vrot.slane %v4300_v20, 4  ;;  %v9309_v36 = vrot.slane %v9307_v25, 4 }
 0x262   :  { %16745 = vst [vmem:[#allocation14_spill] sm:$0xff] %v15894_v30  ;;  %v4306_v57 = vshrl.u32 %v10353_v29, 16  ;;  %v4309_v8 = vshll.u32 %v10353_v29, 16  ;;  %v9313_v60 = vshrl.u32 %v10968_v1, 16  ;;  %v9316_v26 = vshll.u32 %v10968_v1, 16 }
 0x263   :  { %v10969_v52 = vcombine.low %v15889_v48, %v15894_v30  ;;  %v15915_v29 = vld [vmem:[%s16564_s0 + $0x188] sm:$0xf]  ;;  %v9004_v1 = vsel %vm2654_vm5, %v8994_v27, %v9003_v22  ;;  %v4315_v21 = vshrl.u32 %v10354_v23, 16  ;;  %v4318_v41 = vshll.u32 %v10354_v23, 16 }
 0x264   :  { %16746 = vst [vmem:[#allocation15_spill] sm:$0xff] %v15915_v29  ;;  %v4308_v61 = vrot.slane %v4306_v57, 3  ;;  %v4311_v53 = vrot.slane %v4309_v8, 4  ;;  %v9315_v5 = vrot.slane %v9313_v60, 3  ;;  %v9318_v6 = vrot.slane %v9316_v26, 4 }
 0x265   :  { %v9322_v20 = vshrl.u32 %v10969_v52, 16  ;;  %v9325_v27 = vshll.u32 %v10969_v52, 16  ;;  %v9302_v12 = vsel %vm3053_vm6, %v9293_v39, %v9301_v47  ;;  %v4317_v22 = vrot.slane %v4315_v21, 3  ;;  %v15940_v60 = vld [vmem:[%s16564_s0 + $0x18c] sm:$0xf] }
 0x266   :  { %11801 = vmatmul.mubr.msk.bf16.gmra.mrb[16].mxu0 %vm107_vm1, %v3978_v31  ;;  %v4294_v31 = vor.u32 %v4293_v63, %v4290_v62  ;;  %v3996_v62 = vsel %vm2654_vm5, %v15829_v0, %v3995_v45  ;;  %v15923_v63 = vld [vmem:[%s16564_s0 + $0x34c] sm:$0xf]  ;;  %v4303_v45 = vor.u32 %v4302_v28, %v4299_v4  ;;  %v4320_v23 = vrot.slane %v4318_v41, 4  ;;  %16748 = vst [vmem:[#allocation19_spill] sm:$0xff] %v15940_v60  ;;  %v15947_v8 = vld [vmem:[%s16564_s0 + $0x190] sm:$0xf] }
 0x267   :  { %12217 = vmatmul.mubr.msk.bf16.gmra.mrb[16].mxu1 %vm107_vm1, %v8986_v46  ;;  %11804 = vmatprep.mubr.msk.bf16.mxu0 %vm107_vm1, %v3987_v34  ;;  %v15910_v46 = vld [vmem:[%s16564_s0 + $0x184] sm:$0xf]  ;;  %v15928_v34 = vld [vmem:[%s16564_s0 + $0x350] sm:$0xf]  ;;  %v9310_v26 = vor.u32 %v9309_v36, %v9306_v55  ;;  %v9319_v57 = vor.u32 %v9318_v6, %v9315_v5  ;;  %16749 = vst [vmem:[#allocation17_spill] sm:$0xff] %v15947_v8  ;;  %v9324_v52 = vrot.slane %v9322_v20, 3 }
 0x268   :  { %12220 = vmatprep.mubr.msk.bf16.mxu1 %vm107_vm1, %v8995_v56  ;;  %16747 = vst [vmem:[#allocation16_spill] sm:$0xff] %v15928_v34  ;;  %v4295_v0 = vsel %vm3053_vm6, %v4286_v9, %v4294_v31  ;;  %v10355_v56 = vcombine.low %v15910_v46, %v15915_v29  ;;  %v10970_v25 = vcombine.low %v15923_v63, %v15928_v34  ;;  %v15952_v28 = vld [vmem:[%s16564_s0 + $0x354] sm:$0xf]  ;;  %v15957_v4 = vld [vmem:[%s16564_s0 + $0x358] sm:$0xf]  ;;  %v9327_v39 = vrot.slane %v9325_v27, 4 }
 0x269   :  { %v4312_v9 = vor.u32 %v4311_v53, %v4308_v61  ;;  %16750 = vst [vmem:[#allocation21_spill] sm:$0xff] %v15952_v28  ;;  %16751 = vst [vmem:[#allocation18_spill] sm:$0xff] %v15957_v4  ;;  %v15963_v21 = vld [vmem:[%s16564_s0 + $0x194] sm:$0xf]  ;;  %v15968_v41 = vld [vmem:[%s16564_s0 + $0x198] sm:$0xf]  ;;  %v10356_v5 = vcombine.low %v15940_v60, %v15947_v8  ;;  %v10971_v6 = vcombine.low %v15952_v28, %v15957_v4 }
 0x26a   :  { %v4324_v55 = vshrl.u32 %v10355_v56, 16  ;;  %v4327_v36 = vshll.u32 %v10355_v56, 16  ;;  %16752 = vst [vmem:[#allocation23_spill] sm:$0xff] %v15963_v21  ;;  %16753 = vst [vmem:[#allocation20_spill] sm:$0xff] %v15968_v41  ;;  %v4655_v61 = vsel %vm144_vm0, %v15691_v58, 0  ;;  %v9661_v53 = vsel %vm144_vm0, %v15701_v43, 0 }
 0x26b   :  { %v15986_v20 = vld [vmem:[%s16564_s0 + $0x360] sm:$0xf]  ;;  %v4304_v58 = vsel %vm3053_vm6, %v4294_v31, %v4303_v45  ;;  %v9311_v43 = vsel %vm3053_vm6, %v9301_v47, %v9310_v26  ;;  %v4313_v27 = vsel %vm3053_vm6, %v4303_v45, %v4312_v9  ;;  %v9320_v56 = vsel %vm3053_vm6, %v9310_v26, %v9319_v57  ;;  %v15997_v34 = vld [vmem:[%s16564_s0 + $0x19c] sm:$0xf] }
 0x26c   :  { %16755 = vst [vmem:[#allocation22_spill] sm:$0xff] %v15986_v20  ;;  %v4329_v4 = vrot.slane %v4327_v36, 4  ;;  %v10357_v8 = vcombine.low %v15963_v21, %v15968_v41  ;;  %16756 = vst [vmem:[#allocation27_spill] sm:$0xff] %v15997_v34  ;;  %v16002_v31 = vld [vmem:[%s16564_s0 + $0x1a0] sm:$0xf]  ;;  %v9328_v47 = vor.u32 %v9327_v39, %v9324_v52  ;;  %v4336_v26 = vshll.u32 %v10356_v5, 16 }
 0x26d   :  { %16757 = vst [vmem:[#allocation24_spill] sm:$0xff] %v16002_v31  ;;  %v9343_v36 = vshll.u32 %v10971_v6, 16  ;;  %v16010_v41 = vld [vmem:[%s16563_s1 + $0x3c] sm:$0xf]  ;;  %v10358_v52 = vcombine.low %v15997_v34, %v16002_v31  ;;  %v16018_v39 = vld [vmem:[%s16564_s0 + $0x364] sm:$0xf] }
 0x26e   :  { %11805 = vmatmul.mubr.msk.bf16.gmra.mrb[20].mxu0 %vm107_vm1, %v3996_v62  ;;  %v9331_v62 = vshrl.u32 %v10970_v25, 16  ;;  %16758 = vst [vmem:[#allocation29_spill] sm:$0xff] %v16018_v39  ;;  %v16036_v34 = vld [vmem:[%s16564_s0 + $0x1a4] sm:$0xf] }
 0x26f   :  { %12221 = vmatmul.mubr.msk.bf16.gmra.mrb[20].mxu1 %vm107_vm1, %v9004_v1  ;;  %11810 = vmatprep.mubr.msk.bf16.mxu0 %vm107_vm1, %v4295_v0  ;;  %v9334_v1 = vshll.u32 %v10970_v25, 16  ;;  %v15981_v0 = vld [vmem:[%s16564_s0 + $0x35c] sm:$0xf]  ;;  %v4326_v25 = vrot.slane %v4324_v55, 3  ;;  %v9340_v55 = vshrl.u32 %v10971_v6, 16  ;;  %v4345_v6 = vshll.u32 %v10357_v8, 16 }
 0x270   :  { %12226 = vmatprep.mubr.msk.bf16.mxu1 %vm107_vm1, %v9302_v12  ;;  %16754 = vst [vmem:[#allocation25_spill] sm:$0xff] %v15981_v0  ;;  %v4321_v12 = vor.u32 %v4320_v23, %v4317_v22  ;;  %v9333_v45 = vrot.slane %v9331_v62, 3  ;;  %v10972_v22 = vcombine.low %v15981_v0, %v15986_v20  ;;  %v4333_v23 = vshrl.u32 %v10356_v5, 16  ;;  %v16023_v62 = vld [vmem:[%s16564_s0 + $0x368] sm:$0xf]  ;;  %16760 = vst [vmem:[#allocation31_spill] sm:$0xff] %v16036_v34 }
 0x271   :  { %v9336_v28 = vrot.slane %v9334_v1, 4  ;;  %16759 = vst [vmem:[#allocation26_spill] sm:$0xff] %v16023_v62  ;;  %v16028_v1 = vld [vmem:[%s16563_s1 + $0x3c] sm:$0xf]  ;;  %v4342_v5 = vshrl.u32 %v10357_v8, 16  ;;  %v9329_v8 = vsel %vm3053_vm6, %v9319_v57, %v9328_v47  ;;  %v9345_v57 = vrot.slane %v9343_v36, 4 }
 0x272   :  { %v9349_v31 = vshrl.u32 %v10972_v22, 16  ;;  %v9352_v20 = vshll.u32 %v10972_v22, 16  ;;  %v4354_v22 = vshll.u32 %v10358_v52, 16 }
 0x274   :  { %v9351_v21 = vrot.slane %v9349_v31, 3  ;;  %v9354_v29 = vrot.slane %v9352_v20, 4  ;;  %v16072_v31 = vld [vmem:[%s16564_s0 + $0x1ac] sm:$0xf]  ;;  %v16077_v20 = vld [vmem:[%s16564_s0 + $0x1b0] sm:$0xf] }
 0x275   :  { %16764 = vst [vmem:[#allocation35_spill] sm:$0xff] %v16072_v31  ;;  %16765 = vst [vmem:[#allocation32_spill] sm:$0xff] %v16077_v20 }
 0x276   :  { %11811 = vmatmul.mubr.msk.bf16.vlgmr.msra.gmra.mrb[0].mxu0 %vm107_vm1, %v4304_v58  ;;  %v4322_v58 = vsel %vm3053_vm6, %v4312_v9, %v4321_v12  ;;  %v4338_v9 = vrot.slane %v4336_v26, 4  ;;  %v4344_v26 = vrot.slane %v4342_v5, 3 }
 0x277   :  { %12227 = vmatmul.mubr.msk.bf16.vlgmr.msra.gmra.mrb[0].mxu1 %vm107_vm1, %v9311_v43  ;;  %11835 = vmatpush3.bf16.msra.mxu0 %v4655_v61  ;;  %v4330_v61 = vor.u32 %v4329_v4, %v4326_v25  ;;  %v9337_v43 = vor.u32 %v9336_v28, %v9333_v45  ;;  %v4335_v4 = vrot.slane %v4333_v23, 3  ;;  %v10973_v28 = vcombine.low %v16018_v39, %v16023_v62 }
 0x278   :  { %12251 = vmatpush3.bf16.msra.mxu1 %v9661_v53  ;;  %11814 = vmatprep.mubr.msk.bf16.mxu0 %vm107_vm1, %v4313_v27  ;;  %v16041_v53 = vld [vmem:[%s16564_s0 + $0x1a8] sm:$0xf]  ;;  %v16051_v27 = vld [vmem:[%s16564_s0 + $0x36c] sm:$0xf]  ;;  %v9342_v25 = vrot.slane %v9340_v55, 3  ;;  %v4351_v45 = vshrl.u32 %v10358_v52, 16 }
 0x279   :  { %12230 = vmatprep.mubr.msk.bf16.mxu1 %vm107_vm1, %v9320_v56  ;;  %16761 = vst [vmem:[#allocation28_spill] sm:$0xff] %v16041_v53  ;;  %13085 = vmatprep.subr.msk.bf16.mxu0 %vm144_vm0, %v16010_v41  ;;  %16762 = vst [vmem:[#allocation33_spill] sm:$0xff] %v16051_v27  ;;  %v16056_v56 = vld [vmem:[%s16564_s0 + $0x370] sm:$0xf]  ;;  %v4331_v23 = vsel %vm3053_vm6, %v4321_v12, %v4330_v61  ;;  %v4347_v62 = vrot.slane %v4345_v6, 4  ;;  %v10359_v39 = vcombine.low %v16036_v34, %v16041_v53 }
 0x27a   :  { %16763 = vst [vmem:[#allocation30_spill] sm:$0xff] %v16056_v56  ;;  %13101 = vmatprep.subr.msk.bf16.mxu1 %vm144_vm0, %v16028_v1  ;;  %v9338_v0 = vsel %vm3053_vm6, %v9328_v47, %v9337_v43  ;;  %v10974_v60 = vcombine.low %v16051_v27, %v16056_v56  ;;  %v9358_v55 = vshrl.u32 %v10973_v28, 16  ;;  %v9361_v36 = vshll.u32 %v10973_v28, 16 }
 0x27b   :  { %v4339_v12 = vor.u32 %v4338_v9, %v4335_v4  ;;  %v9346_v52 = vor.u32 %v9345_v57, %v9342_v25  ;;  %v4353_v5 = vrot.slane %v4351_v45, 3  ;;  %v4356_v6 = vrot.slane %v4354_v22, 4  ;;  %v16083_v4 = vld [vmem:[%s16564_s0 + $0x374] sm:$0xf]  ;;  %v16088_v9 = vld [vmem:[%s16564_s0 + $0x378] sm:$0xf] }
 0x27c   :  { %v4348_v47 = vor.u32 %v4347_v62, %v4344_v26  ;;  %v9355_v28 = vor.u32 %v9354_v29, %v9351_v21  ;;  %v9367_v25 = vshrl.u32 %v10974_v60, 16  ;;  %v9370_v57 = vshll.u32 %v10974_v60, 16  ;;  %v16105_v29 = vld [vmem:[%s16564_s0 + $0x37c] sm:$0xf]  ;;  %v16110_v60 = vld [vmem:[%s16564_s0 + $0x380] sm:$0xf] }
 0x27d   :  { %v9360_v62 = vrot.slane %v9358_v55, 3  ;;  %v9363_v45 = vrot.slane %v9361_v36, 4  ;;  %v10360_v22 = vcombine.low %v16072_v31, %v16077_v20  ;;  %16767 = vst [vmem:[#allocation34_spill] sm:$0xff] %v16110_v60  ;;  %v4340_v21 = vsel %vm3053_vm6, %v4330_v61, %v4339_v12 }
 0x27e   :  { %11815 = vmatmul.mubr.msk.bf16.gmra.mrb[4].mxu0 %vm107_vm1, %v4322_v58  ;;  %v4360_v58 = vshrl.u32 %v10359_v39, 16  ;;  %v10975_v26 = vcombine.low %v16083_v4, %v16088_v9  ;;  %v4349_v55 = vsel %vm3053_vm6, %v4339_v12, %v4348_v47  ;;  %v9356_v53 = vsel %vm3053_vm6, %v9346_v52, %v9355_v28 }
 0x27f   :  { %12231 = vmatmul.mubr.msk.bf16.gmra.mrb[4].mxu1 %vm107_vm1, %v9329_v8  ;;  %11818 = vmatprep.mubr.msk.bf16.mxu0 %vm107_vm1, %v4331_v23  ;;  %v4363_v8 = vshll.u32 %v10359_v39, 16  ;;  %v16098_v39 = vld [vmem:[%s16564_s0 + $0x1b8] sm:$0xf]  ;;  %v9347_v23 = vsel %vm3053_vm6, %v9337_v43, %v9346_v52  ;;  %v9369_v31 = vrot.slane %v9367_v25, 3  ;;  %v9372_v27 = vrot.slane %v9370_v57, 4 }
 0x280   :  { %12234 = vmatprep.mubr.msk.bf16.mxu1 %vm107_vm1, %v9338_v0  ;;  %v16093_v0 = vld [vmem:[%s16564_s0 + $0x1b4] sm:$0xf]  ;;  %16766 = vst [vmem:[#allocation37_spill] sm:$0xff] %v16098_v39  ;;  %v4362_v36 = vrot.slane %v4360_v58, 3  ;;  %v10976_v34 = vcombine.low %v16105_v29, %v16110_v60  ;;  %v4357_v61 = vor.u32 %v4356_v6, %v4353_v5  ;;  %v9364_v43 = vor.u32 %v9363_v45, %v9360_v62  ;;  %v16129_v60 = vld [vmem:[%s16564_s0 + $0x1bc] sm:$0xf] }
 0x281   :  { %v4365_v20 = vrot.slane %v4363_v8, 4  ;;  %v10361_v56 = vcombine.low %v16093_v0, %v16098_v39  ;;  %v4369_v30 = vshrl.u32 %v10360_v22, 16  ;;  %v4372_v12 = vshll.u32 %v10360_v22, 16  ;;  %v16134_v45 = vld [vmem:[%s16564_s0 + $0x384] sm:$0xf] }
 0x282   :  { %v9376_v58 = vshrl.u32 %v10975_v26, 16  ;;  %v9379_v8 = vshll.u32 %v10975_v26, 16  ;;  %v9373_v5 = vor.u32 %v9372_v27, %v9369_v31  ;;  %v9385_v6 = vshrl.u32 %v10976_v34, 16 }
 0x283   :  { %v4366_v52 = vor.u32 %v4365_v20, %v4362_v36  ;;  %v4378_v25 = vshrl.u32 %v10361_v56, 16  ;;  %v4381_v57 = vshll.u32 %v10361_v56, 16  ;;  %v9388_v62 = vshll.u32 %v10976_v34, 16 }
 0x284   :  { %v4358_v22 = vsel %vm3053_vm6, %v4348_v47, %v4357_v61  ;;  %v4371_v20 = vrot.slane %v4369_v30, 3  ;;  %v9378_v56 = vrot.slane %v9376_v58, 3  ;;  %v10362_v26 = vcombine.low %v16129_v60, %v16129_v60 }
 0x285   :  { %v4367_v27 = vsel %vm3053_vm6, %v4357_v61, %v4366_v52  ;;  %v4380_v31 = vrot.slane %v4378_v25, 3  ;;  %v4383_v34 = vrot.slane %v4381_v57, 4  ;;  %v9374_v36 = vsel %vm3053_vm6, %v9364_v43, %v9373_v5 }
 0x286   :  { %11819 = vmatmul.mubr.msk.bf16.gmra.mrb[8].mxu0 %vm107_vm1, %v4340_v21  ;;  %v4374_v21 = vrot.slane %v4372_v12, 4  ;;  %v9387_v39 = vrot.slane %v9385_v6, 3  ;;  %v9390_v47 = vrot.slane %v9388_v62, 4  ;;  %v4387_v12 = vshrl.u32 %v10362_v26, 16  ;;  %v10990_v6 = vld [vmem:[%s16564_s0 + $0x2b4] sm:$0xc] }
 0x287   :  { %12235 = vmatmul.mubr.msk.bf16.gmra.mrb[8].mxu1 %vm107_vm1, %v9347_v23  ;;  %11822 = vmatprep.mubr.msk.bf16.mxu0 %vm107_vm1, %v4349_v55  ;;  %v9381_v23 = vrot.slane %v9379_v8, 4  ;;  %v10977_v55 = vcombine.low %v16134_v45, %v16134_v45  ;;  %v4390_v58 = vshll.u32 %v10362_v26, 16  ;;  %v4384_v61 = vor.u32 %v4383_v34, %v4380_v31 }
 0x288   :  { %12238 = vmatprep.mubr.msk.bf16.mxu1 %vm107_vm1, %v9356_v53  ;;  %v9365_v53 = vsel %vm3053_vm6, %v9355_v28, %v9364_v43  ;;  %v4375_v30 = vor.u32 %v4374_v21, %v4371_v20  ;;  %v9391_v57 = vor.u32 %v9390_v47, %v9387_v39  ;;  %v4587_v43 = vld [vmem:[%s16564_s0 + $0xec] sm:$0xc]  ;;  %v4594_v34 = vrot.slane %v15551_v51, 2 }
 0x289   :  { %v9382_v28 = vor.u32 %v9381_v23, %v9378_v56  ;;  %v9394_v8 = vshrl.u32 %v10977_v55, 16  ;;  %v9397_v25 = vshll.u32 %v10977_v55, 16  ;;  %v4392_v20 = vrot.slane %v4390_v58, 4 }
 0x28a   :  { %v4376_v62 = vsel %vm3053_vm6, %v4366_v52, %v4375_v30  ;;  %v4385_v21 = vsel %vm3053_vm6, %v4375_v30, %v4384_v61  ;;  %v10376_v39 = vcombine.low %v4587_v43, %v15529_v3  ;;  %v9600_v3 = vrot.slane %v15557_v49, 2 }
 0x28b   :  { %v9396_v56 = vrot.slane %v9394_v8, 3  ;;  %v9399_v23 = vrot.slane %v9397_v25, 4  ;;  %v9392_v26 = vsel %vm3053_vm6, %v9382_v28, %v9391_v57  ;;  %v9602_v51 = vrot.slane %v15583_v17, 2 }
 0x28c   :  { %v4593_v31 = vrot.slane %v10376_v39, 2  ;;  %v4598_v49 = vrot.slane %v15588_v35, 2  ;;  %v4861_v8 = vsel %vm144_vm0, %v16010_v41, 0  ;;  %v9866_v25 = vsel %vm144_vm0, %v16028_v1, 0 }
 0x28d   :  { %v4600_v35 = vrot.slane %v15608_v11, 2  ;;  %v4602_v41 = vrot.slane %v15627_v15, 2  ;;  %v9608_v1 = vrot.slane %v15633_v14, 2  ;;  %v4604_v11 = vrot.slane %v15646_v18, 2 }
 0x28e   :  { %11823 = vmatmul.mubr.msk.bf16.gmra.mrb[12].mxu0 %vm107_vm1, %v4358_v22  ;;  %v9383_v22 = vsel %vm3053_vm6, %v9373_v5, %v9382_v28  ;;  %v9400_v5 = vor.u32 %v9399_v23, %v9396_v56  ;;  %v4595_v47 = vsel %vm367_vm2, %v4593_v31, %v4594_v34  ;;  %v4596_v28 = vrot.slane %v15572_v10, 2 }
 0x28f   :  { %12239 = vmatmul.mubr.msk.bf16.gmra.mrb[12].mxu1 %vm107_vm1, %v9365_v53  ;;  %11826 = vmatprep.mubr.msk.bf16.mxu0 %vm107_vm1, %v4367_v27  ;;  %v4389_v53 = vrot.slane %v4387_v12, 3  ;;  %v10992_v27 = vcombine.low %v10990_v6, %v15539_v38  ;;  %v9604_v12 = vrot.slane %v15596_v42, 2  ;;  %v9606_v42 = vrot.slane %v15619_v54, 2 }
 0x290   :  { %12242 = vmatprep.mubr.msk.bf16.mxu1 %vm107_vm1, %v9374_v36  ;;  %v9401_v38 = vsel %vm3053_vm6, %v9391_v57, %v9400_v5  ;;  %v4597_v58 = vsel %vm367_vm2, %v4594_v34, %v4596_v28  ;;  %v4599_v10 = vsel %vm367_vm2, %v4596_v28, %v4598_v49  ;;  %v4601_v57 = vsel %vm367_vm2, %v4598_v49, %v4600_v35  ;;  %v16773_v28 = vld [vmem:[#allocation11_spill] sm:$0xff]  ;;  %v16774_v49 = vld [vmem:[#allocation2_spill] sm:$0xff] }
 0x291   :  { %v4393_v52 = vor.u32 %v4392_v20, %v4389_v53  ;;  %v9599_v55 = vrot.slane %v10992_v27, 2  ;;  %v9605_v17 = vsel %vm367_vm2, %v9602_v51, %v9604_v12  ;;  %v9607_v43 = vsel %vm367_vm2, %v9604_v12, %v9606_v42 }
 0x292   :  { %v4603_v6 = vsel %vm367_vm2, %v4600_v35, %v4602_v41  ;;  %v9610_v54 = vrot.slane %v15653_v59, 2  ;;  %v4606_v15 = vrot.slane %v15665_v19, 2  ;;  %v9612_v14 = vrot.slane %v15670_v40, 2  ;;  %v16781_v35 = vld [vmem:[#allocation43_spill] sm:$0xff] }
 0x293   :  { %v4394_v36 = vsel %vm3053_vm6, %v4384_v61, %v4393_v52  ;;  %v9601_v30 = vsel %vm367_vm2, %v9599_v55, %v9600_v3  ;;  %v9603_v61 = vsel %vm367_vm2, %v9600_v3, %v9602_v51  ;;  %v4608_v18 = vrot.slane %v15681_v2, 2  ;;  %v16770_v3 = vld [vmem:[#allocation8_spill] sm:$0xff] }
 0x294   :  { %v9611_v53 = vsel %vm367_vm2, %v9608_v1, %v9610_v54  ;;  %v4607_v20 = vsel %vm367_vm2, %v4604_v11, %v4606_v15  ;;  %v9614_v59 = vrot.slane %v15686_v50, 2  ;;  %v4610_v19 = vrot.slane %v15709_v7, 2 }
 0x295   :  { %v9616_v40 = vrot.slane %v15721_v32, 2  ;;  %v4609_v56 = vsel %vm367_vm2, %v4606_v15, %v4608_v18  ;;  %v4612_v2 = vrot.slane %v15729_v24, 2  ;;  %v9618_v50 = vrot.slane %v15734_v13, 2  ;;  %v16768_v32 = vld [vmem:[#allocation6_spill] sm:$0xff]  ;;  %v16769_v24 = vld [vmem:[#allocation7_spill] sm:$0xff] }
 0x296   :  { %11827 = vmatmul.mubr.msk.bf16.gmra.mrb[16].mxu0 %vm107_vm1, %v4376_v62  ;;  %v9609_v62 = vsel %vm367_vm2, %v9606_v42, %v9608_v1  ;;  %v9615_v23 = vsel %vm367_vm2, %v9612_v14, %v9614_v59  ;;  %v4611_v39 = vsel %vm367_vm2, %v4608_v18, %v4610_v19  ;;  %v4614_v7 = vrot.slane %v15752_v44, 2  ;;  %v16782_v42 = vld [vmem:[#allocation44_spill] sm:$0xff]  ;;  %v16784_v1 = vld [vmem:[#allocation3_spill] sm:$0xff]  ;;  %v16794_v18 = vld [vmem:[#allocation18_spill] sm:$0xff] }
 0x297   :  { %12243 = vmatmul.mubr.msk.bf16.gmra.mrb[16].mxu1 %vm107_vm1, %v9383_v22  ;;  %11830 = vmatprep.mubr.msk.bf16.mxu0 %vm107_vm1, %v4385_v21  ;;  %v4605_v22 = vsel %vm367_vm2, %v4602_v41, %v4604_v11  ;;  %v9613_v21 = vsel %vm367_vm2, %v9610_v54, %v9612_v14  ;;  %v9620_v27 = vrot.slane %v16768_v32, 2  ;;  %v4613_v52 = vsel %vm367_vm2, %v4610_v19, %v4612_v2  ;;  %v16786_v11 = vld [vmem:[#allocation14_spill] sm:$0xff]  ;;  %v16787_v15 = vld [vmem:[#allocation19_spill] sm:$0xff]  ;;  %v16796_v19 = vld [vmem:[#allocation20_spill] sm:$0xff] }
 0x298   :  { %12246 = vmatprep.mubr.msk.bf16.mxu1 %vm107_vm1, %v9392_v26  ;;  %v9617_v26 = vsel %vm367_vm2, %v9614_v59, %v9616_v40  ;;  %v9619_v5 = vsel %vm367_vm2, %v9616_v40, %v9618_v50  ;;  %v4615_v31 = vsel %vm367_vm2, %v4612_v2, %v4614_v7  ;;  %v4616_v13 = vrot.slane %v16769_v24, 2  ;;  %v16788_v14 = vld [vmem:[#allocation15_spill] sm:$0xff]  ;;  %v16800_v2 = vld [vmem:[#allocation24_spill] sm:$0xff]  ;;  %v16802_v32 = vld [vmem:[#allocation26_spill] sm:$0xff] }
 0x299   :  { %v9621_v34 = vsel %vm367_vm2, %v9618_v50, %v9620_v27  ;;  %v9622_v44 = vrot.slane %v15773_v37, 2  ;;  %v16775_v37 = vld [vmem:[#allocation12_spill] sm:$0xff]  ;;  %v16783_v41 = vcombine.low %v16781_v35, %v16782_v42  ;;  %v11010_v54 = vcombine.low %v16786_v11, %v15923_v63  ;;  %v16795_v59 = vld [vmem:[#allocation27_spill] sm:$0xff] }
 0x29a   :  { %v4617_v55 = vsel %vm367_vm2, %v4614_v7, %v4616_v13  ;;  %v10392_v12 = vcombine.low %v16775_v37, %v16774_v49  ;;  %v10397_v40 = vcombine.low %v16796_v19, %v16795_v59  ;;  %v16801_v7 = vld [vmem:[#allocation33_spill] sm:$0xff]  ;;  %v16806_v13 = vld [vmem:[#allocation32_spill] sm:$0xff] }
 0x29e   :  { %11831 = vmatmul.mubr.msk.bf16.gmra.mrb[20].mxu0 %vm107_vm1, %v4394_v36  ;;  %v16771_v36 = vld [vmem:[#allocation9_spill] sm:$0xff] }
 0x29f   :  { %12247 = vmatmul.mubr.msk.bf16.gmra.mrb[20].mxu1 %vm107_vm1, %v9401_v38  ;;  %11836 = vmatprep.mubr.msk.bf16.mxu0 %vm107_vm1, %v4595_v47  ;;  %v10390_v38 = vcombine.low %v16771_v36, %v16770_v3  ;;  %v9623_v47 = vsel %vm367_vm2, %v9620_v27, %v9622_v44  ;;  %v11014_v27 = vcombine.low %v16802_v32, %v16801_v7  ;;  %v16807_v3 = vld [vmem:[#allocation37_spill] sm:$0xff] }
 0x2a0   :  { %12252 = vmatprep.mubr.msk.bf16.mxu1 %vm107_vm1, %v9601_v30  ;;  %v16772_v30 = vld [vmem:[#allocation10_spill] sm:$0xff]  ;;  %v10400_v44 = vcombine.low %v16806_v13, %v16093_v0  ;;  %v10401_v36 = vcombine.low %v16807_v3, %v16129_v60 }
 0x2a1   :  { %v11006_v51 = vcombine.low %v16773_v28, %v16772_v30 }
 0x2a6   :  { %11837 = vmatmul.mubr.msk.bf16.vlgmr.msra.gmra.mrb[0].mxu0 %vm107_vm1, %v4597_v58  ;;  %v16776_v58 = vld [vmem:[#allocation4_spill] sm:$0xff] }
 0x2a7   :  { %12253 = vmatmul.mubr.msk.bf16.vlgmr.msra.gmra.mrb[0].mxu1 %vm107_vm1, %v9603_v61  ;;  %11861 = vmatpush3.bf16.msra.mxu0 %v4861_v8  ;;  %v16777_v61 = vld [vmem:[#allocation13_spill] sm:$0xff] }
 0x2a8   :  { %12277 = vmatpush3.bf16.msra.mxu1 %v9866_v25  ;;  %11840 = vmatprep.mubr.msk.bf16.mxu0 %vm107_vm1, %v4599_v10  ;;  %v11008_v8 = vcombine.low %v16777_v61, %v16776_v58  ;;  %v16778_v25 = vld [vmem:[#allocation41_spill] sm:$0xff]  ;;  %v16779_v10 = vld [vmem:[#allocation42_spill] sm:$0xff] }
 0x2a9   :  { %12256 = vmatprep.mubr.msk.bf16.mxu1 %vm107_vm1, %v9605_v17  ;;  %v16780_v17 = vcombine.low %v16778_v25, %v16779_v10 }
 0x2ae   :  { %11841 = vmatmul.mubr.msk.bf16.gmra.mrb[4].mxu0 %vm107_vm1, %v4601_v57  ;;  %v10393_v57 = vcombine.low %v16784_v1, %v15878_v16  ;;  %v10395_v16 = vcombine.low %v16788_v14, %v16787_v15 }
 0x2af   :  { %12257 = vmatmul.mubr.msk.bf16.gmra.mrb[4].mxu1 %vm107_vm1, %v9607_v43  ;;  %11844 = vmatprep.mubr.msk.bf16.mxu0 %vm107_vm1, %v4603_v6  ;;  %v16785_v43 = vld [vmem:[#allocation5_spill] sm:$0xff] }
 0x2b0   :  { %12260 = vmatprep.mubr.msk.bf16.mxu1 %vm107_vm1, %v9609_v62  ;;  %v11009_v6 = vcombine.low %v16785_v43, %v15889_v48  ;;  %v10394_v62 = vcombine.low %v15883_v33, %v15910_v46  ;;  %v16793_v46 = vld [vmem:[#allocation25_spill] sm:$0xff] }
 0x2b1   :  { %v11012_v63 = vcombine.low %v16794_v18, %v16793_v46 }
 0x2b6   :  { %11845 = vmatmul.mubr.msk.bf16.gmra.mrb[8].mxu0 %vm107_vm1, %v4605_v22  ;;  %v16789_v22 = vld [vmem:[#allocation21_spill] sm:$0xff] }
 0x2b7   :  { %12261 = vmatmul.mubr.msk.bf16.gmra.mrb[8].mxu1 %vm107_vm1, %v9611_v53  ;;  %11848 = vmatprep.mubr.msk.bf16.mxu0 %vm107_vm1, %v4607_v20  ;;  %v16790_v53 = vld [vmem:[#allocation16_spill] sm:$0xff]  ;;  %v16791_v20 = vld [vmem:[#allocation23_spill] sm:$0xff] }
 0x2b8   :  { %12264 = vmatprep.mubr.msk.bf16.mxu1 %vm107_vm1, %v9613_v21  ;;  %v11011_v48 = vcombine.low %v16790_v53, %v16789_v22  ;;  %v16792_v21 = vld [vmem:[#allocation17_spill] sm:$0xff] }
 0x2b9   :  { %v10396_v33 = vcombine.low %v16792_v21, %v16791_v20 }
 0x2be   :  { %11849 = vmatmul.mubr.msk.bf16.gmra.mrb[12].mxu0 %vm107_vm1, %v4609_v56  ;;  %v16797_v56 = vld [vmem:[#allocation29_spill] sm:$0xff] }
 0x2bf   :  { %12265 = vmatmul.mubr.msk.bf16.gmra.mrb[12].mxu1 %vm107_vm1, %v9615_v23  ;;  %11852 = vmatprep.mubr.msk.bf16.mxu0 %vm107_vm1, %v4611_v39  ;;  %v16798_v23 = vld [vmem:[#allocation22_spill] sm:$0xff] }
 0x2c0   :  { %12268 = vmatprep.mubr.msk.bf16.mxu1 %vm107_vm1, %v9617_v26  ;;  %v11013_v39 = vcombine.low %v16798_v23, %v16797_v56  ;;  %v16799_v26 = vld [vmem:[#allocation31_spill] sm:$0xff] }
 0x2c1   :  { %v10398_v50 = vcombine.low %v16800_v2, %v16799_v26 }
 0x2c6   :  { %11853 = vmatmul.mubr.msk.bf16.gmra.mrb[16].mxu0 %vm107_vm1, %v4613_v52  ;;  %v16803_v52 = vld [vmem:[#allocation35_spill] sm:$0xff] }
 0x2c7   :  { %12269 = vmatmul.mubr.msk.bf16.gmra.mrb[16].mxu1 %vm107_vm1, %v9619_v5  ;;  %11856 = vmatprep.mubr.msk.bf16.mxu0 %vm107_vm1, %v4615_v31  ;;  %v16804_v5 = vld [vmem:[#allocation28_spill] sm:$0xff] }
 0x2c8   :  { %12272 = vmatprep.mubr.msk.bf16.mxu1 %vm107_vm1, %v9621_v34  ;;  %v10399_v31 = vcombine.low %v16804_v5, %v16803_v52  ;;  %v16805_v34 = vld [vmem:[#allocation30_spill] sm:$0xff] }
 0x2c9   :  { %v11015_v24 = vcombine.low %v16805_v34, %v16083_v4 }
 0x2ce   :  { %11857 = vmatmul.mubr.msk.bf16.gmra.mrb[20].mxu0 %vm107_vm1, %v4617_v55  ;;  %v11016_v55 = vcombine.low %v16088_v9, %v16105_v29  ;;  %v16321_v9 = vld [vmem:[%s16565_s2] ss:$0 sm:$0xff] }
 0x2cf   :  { %12273 = vmatmul.mubr.msk.bf16.gmra.mrb[20].mxu1 %vm107_vm1, %v9623_v47  ;;  %11862 = vmatprep.mubr.msk.bf16.mxu0 %vm107_vm1, %v10390_v38  ;;  %v16808_v38 = vld [vmem:[#allocation34_spill] sm:$0xff] }
 0x2d0   :  { %12278 = vmatprep.mubr.msk.bf16.mxu1 %vm107_vm1, %v11006_v51  ;;  %v11017_v4 = vcombine.low %v16808_v38, %v16134_v45 }
 0x2d6   :  { %11863 = vmatmul.mubr.msk.bf16.vlgmr.msra.gmra.mrb[0].mxu0 %vm107_vm1, %v16780_v17 }
 0x2d7   :  { %12279 = vmatmul.mubr.msk.bf16.vlgmr.msra.gmra.mrb[0].mxu1 %vm107_vm1, %v16783_v41  ;;  %11866 = vmatprep.mubr.msk.bf16.mxu0 %vm107_vm1, %v10392_v12 }
 0x2d8   :  { %12282 = vmatprep.mubr.msk.bf16.mxu1 %vm107_vm1, %v11008_v8 }
 0x2de   :  { %11867 = vmatmul.mubr.msk.bf16.gmra.mrb[4].mxu0 %vm107_vm1, %v10393_v57 }
 0x2df   :  { %12283 = vmatmul.mubr.msk.bf16.gmra.mrb[4].mxu1 %vm107_vm1, %v11009_v6  ;;  %11870 = vmatprep.mubr.msk.bf16.mxu0 %vm107_vm1, %v10394_v62 }
 0x2e0   :  { %12286 = vmatprep.mubr.msk.bf16.mxu1 %vm107_vm1, %v11010_v54 }
 0x2e6   :  { %11871 = vmatmul.mubr.msk.bf16.gmra.mrb[8].mxu0 %vm107_vm1, %v10395_v16 }
 0x2e7   :  { %12287 = vmatmul.mubr.msk.bf16.gmra.mrb[8].mxu1 %vm107_vm1, %v11011_v48  ;;  %11874 = vmatprep.mubr.msk.bf16.mxu0 %vm107_vm1, %v10396_v33 }
 0x2e8   :  { %12290 = vmatprep.mubr.msk.bf16.mxu1 %vm107_vm1, %v11012_v63 }
 0x2ee   :  { %11875 = vmatmul.mubr.msk.bf16.gmra.mrb[12].mxu0 %vm107_vm1, %v10397_v40 }
 0x2ef   :  { %12291 = vmatmul.mubr.msk.bf16.gmra.mrb[12].mxu1 %vm107_vm1, %v11013_v39  ;;  %11878 = vmatprep.mubr.msk.bf16.mxu0 %vm107_vm1, %v10398_v50 }
 0x2f0   :  { %12294 = vmatprep.mubr.msk.bf16.mxu1 %vm107_vm1, %v11014_v27 }
 0x2f6   :  { %11879 = vmatmul.mubr.msk.bf16.gmra.mrb[16].mxu0 %vm107_vm1, %v10399_v31 }
 0x2f7   :  { %12295 = vmatmul.mubr.msk.bf16.gmra.mrb[16].mxu1 %vm107_vm1, %v11015_v24  ;;  %11882 = vmatprep.mubr.msk.bf16.mxu0 %vm107_vm1, %v10400_v44 }
 0x2f8   :  { %12298 = vmatprep.mubr.msk.bf16.mxu1 %vm107_vm1, %v11016_v55 }
 0x2fe   :  { %11883 = vmatmul.mubr.msk.bf16.gmra.mrb[20].mxu0 %vm107_vm1, %v10401_v36 }
 0x2ff   :  { %12299 = vmatmul.mubr.msk.bf16.gmra.mrb[20].mxu1 %vm107_vm1, %v11017_v4 }
 0x3a9   :  { %v11864_v0 = vpop.f32.mrb[0].mxu0 }
 0x3aa   :  { %v12302_v29 = vadd.f32 %v11864_v0, %v16321_v9  ;;  %v12280_v47 = vpop.f32.mrb[0].mxu1  ;;  %v4897_v30 = vpop.f32.mrb[1].mxu0 }
 0x3ab   :  { %v12326_v60 = vadd.f32 %v12280_v47, %v16321_v9  ;;  %v12303_v28 = vadd.f32 %v16321_v9, %v4897_v30  ;;  %v9902_v45 = vpop.f32.mrb[1].mxu1  ;;  %v11865_v51 = vpop.f32.mrb[2].mxu0 }
 0x3ac   :  { %5019 = vst.msk [vmem:[%s16566_s3 + $0x10] sm:$0xff] %vm5016_vm7, %v12302_v29  ;;  %v12327_v49 = vadd.f32 %v16321_v9, %v9902_v45  ;;  %v12304_v37 = vadd.f32 %v11865_v51, %v16321_v9  ;;  %v12281_v12 = vpop.f32.mrb[2].mxu1  ;;  %v4900_v58 = vpop.f32.mrb[3].mxu0 }
 0x3ad   :  { %11032 = vst.msk [vmem:[%s16566_s3 + $0xd0] sm:$0xff] %vm5016_vm7, %v12326_v60  ;;  %5017 = vst.msk [vmem:[%s16566_s3] sm:$0xff] %vm5016_vm7, %v12303_v28  ;;  %v12328_v61 = vadd.f32 %v12281_v12, %v16321_v9  ;;  %v12305_v8 = vadd.f32 %v16321_v9, %v4900_v58  ;;  %v9905_v25 = vpop.f32.mrb[3].mxu1 }
 0x3ae   :  { %11030 = vst.msk [vmem:[%s16566_s3 + $0xc0] sm:$0xff] %vm5016_vm7, %v12327_v49  ;;  %5020 = vst.msk [vmem:[%s16566_s3 + $0x18] sm:$0xff] %vm5016_vm7, %v12304_v37  ;;  %v12329_v10 = vadd.f32 %v16321_v9, %v9905_v25 }
 0x3af   :  { %11033 = vst.msk [vmem:[%s16566_s3 + $0xd8] sm:$0xff] %vm5016_vm7, %v12328_v61  ;;  %5018 = vst.msk [vmem:[%s16566_s3 + $0x8] sm:$0xff] %vm5016_vm7, %v12305_v8 }
 0x3b0   :  { %11031 = vst.msk [vmem:[%s16566_s3 + $0xc8] sm:$0xff] %vm5016_vm7, %v12329_v10 }
 0x3b1   :  { %v11868_v17 = vpop.f32.mrb[4].mxu0 }
 0x3b2   :  { %v12306_v35 = vadd.f32 %v11868_v17, %v16321_v9  ;;  %v12284_v42 = vpop.f32.mrb[4].mxu1  ;;  %v4913_v41 = vpop.f32.mrb[5].mxu0 }
 0x3b3   :  { %v12330_v1 = vadd.f32 %v12284_v42, %v16321_v9  ;;  %v12307_v57 = vadd.f32 %v16321_v9, %v4913_v41  ;;  %v9918_v43 = vpop.f32.mrb[5].mxu1  ;;  %v11869_v6 = vpop.f32.mrb[6].mxu0 }
 0x3b4   :  { %5023 = vst.msk [vmem:[%s16566_s3 + $0x30] sm:$0xff] %vm5016_vm7, %v12306_v35  ;;  %v12331_v62 = vadd.f32 %v16321_v9, %v9918_v43  ;;  %v12308_v11 = vadd.f32 %v11869_v6, %v16321_v9  ;;  %v12285_v54 = vpop.f32.mrb[6].mxu1  ;;  %v4916_v15 = vpop.f32.mrb[7].mxu0 }
 0x3b5   :  { %11036 = vst.msk [vmem:[%s16566_s3 + $0xf0] sm:$0xff] %vm5016_vm7, %v12330_v1  ;;  %5021 = vst.msk [vmem:[%s16566_s3 + $0x20] sm:$0xff] %vm5016_vm7, %v12307_v57  ;;  %v12332_v14 = vadd.f32 %v12285_v54, %v16321_v9  ;;  %v12309_v16 = vadd.f32 %v16321_v9, %v4916_v15  ;;  %v9921_v22 = vpop.f32.mrb[7].mxu1 }
 0x3b6   :  { %11034 = vst.msk [vmem:[%s16566_s3 + $0xe0] sm:$0xff] %vm5016_vm7, %v12331_v62  ;;  %5024 = vst.msk [vmem:[%s16566_s3 + $0x38] sm:$0xff] %vm5016_vm7, %v12308_v11  ;;  %v12333_v53 = vadd.f32 %v16321_v9, %v9921_v22 }
 0x3b7   :  { %11037 = vst.msk [vmem:[%s16566_s3 + $0xf8] sm:$0xff] %vm5016_vm7, %v12332_v14  ;;  %5022 = vst.msk [vmem:[%s16566_s3 + $0x28] sm:$0xff] %vm5016_vm7, %v12309_v16 }
 0x3b8   :  { %11035 = vst.msk [vmem:[%s16566_s3 + $0xe8] sm:$0xff] %vm5016_vm7, %v12333_v53 }
 0x3b9   :  { %v11872_v48 = vpop.f32.mrb[8].mxu0 }
 0x3ba   :  { %v12310_v20 = vadd.f32 %v11872_v48, %v16321_v9  ;;  %v12288_v21 = vpop.f32.mrb[8].mxu1  ;;  %v4929_v33 = vpop.f32.mrb[9].mxu0 }
 0x3bb   :  { %v12334_v46 = vadd.f32 %v12288_v21, %v16321_v9  ;;  %v12311_v18 = vadd.f32 %v16321_v9, %v4929_v33  ;;  %v9934_v63 = vpop.f32.mrb[9].mxu1  ;;  %v11873_v59 = vpop.f32.mrb[10].mxu0 }
 0x3bc   :  { %5027 = vst.msk [vmem:[%s16566_s3 + $0x50] sm:$0xff] %vm5016_vm7, %v12310_v20  ;;  %v12335_v19 = vadd.f32 %v16321_v9, %v9934_v63  ;;  %v12312_v40 = vadd.f32 %v11873_v59, %v16321_v9  ;;  %v12289_v56 = vpop.f32.mrb[10].mxu1  ;;  %v4932_v23 = vpop.f32.mrb[11].mxu0 }
 0x3bd   :  { %11040 = vst.msk [vmem:[%s16566_s3 + $0x110] sm:$0xff] %vm5016_vm7, %v12334_v46  ;;  %5025 = vst.msk [vmem:[%s16566_s3 + $0x40] sm:$0xff] %vm5016_vm7, %v12311_v18  ;;  %v12336_v39 = vadd.f32 %v12289_v56, %v16321_v9  ;;  %v12313_v26 = vadd.f32 %v16321_v9, %v4932_v23  ;;  %v9937_v2 = vpop.f32.mrb[11].mxu1 }
 0x3be   :  { %11038 = vst.msk [vmem:[%s16566_s3 + $0x100] sm:$0xff] %vm5016_vm7, %v12335_v19  ;;  %5028 = vst.msk [vmem:[%s16566_s3 + $0x58] sm:$0xff] %vm5016_vm7, %v12312_v40  ;;  %v12337_v50 = vadd.f32 %v16321_v9, %v9937_v2 }
 0x3bf   :  { %11041 = vst.msk [vmem:[%s16566_s3 + $0x118] sm:$0xff] %vm5016_vm7, %v12336_v39  ;;  %5026 = vst.msk [vmem:[%s16566_s3 + $0x48] sm:$0xff] %vm5016_vm7, %v12313_v26 }
 0x3c0   :  { %11039 = vst.msk [vmem:[%s16566_s3 + $0x108] sm:$0xff] %vm5016_vm7, %v12337_v50 }
 0x3c1   :  { %v11876_v7 = vpop.f32.mrb[12].mxu0 }
 0x3c2   :  { %v12314_v32 = vadd.f32 %v11876_v7, %v16321_v9  ;;  %v12292_v27 = vpop.f32.mrb[12].mxu1  ;;  %v4945_v52 = vpop.f32.mrb[13].mxu0 }
 0x3c3   :  { %v12338_v5 = vadd.f32 %v12292_v27, %v16321_v9  ;;  %v12315_v31 = vadd.f32 %v16321_v9, %v4945_v52  ;;  %v9950_v34 = vpop.f32.mrb[13].mxu1  ;;  %v11877_v24 = vpop.f32.mrb[14].mxu0 }
 0x3c4   :  { %5031 = vst.msk [vmem:[%s16566_s3 + $0x70] sm:$0xff] %vm5016_vm7, %v12314_v32  ;;  %v12339_v13 = vadd.f32 %v16321_v9, %v9950_v34  ;;  %v12316_v44 = vadd.f32 %v11877_v24, %v16321_v9  ;;  %v12293_v55 = vpop.f32.mrb[14].mxu1  ;;  %v4948_v3 = vpop.f32.mrb[15].mxu0 }
 0x3c5   :  { %11044 = vst.msk [vmem:[%s16566_s3 + $0x130] sm:$0xff] %vm5016_vm7, %v12338_v5  ;;  %5029 = vst.msk [vmem:[%s16566_s3 + $0x60] sm:$0xff] %vm5016_vm7, %v12315_v31  ;;  %v12340_v36 = vadd.f32 %v12293_v55, %v16321_v9  ;;  %v12317_v38 = vadd.f32 %v16321_v9, %v4948_v3  ;;  %v9953_v4 = vpop.f32.mrb[15].mxu1 }
 0x3c6   :  { %11042 = vst.msk [vmem:[%s16566_s3 + $0x120] sm:$0xff] %vm5016_vm7, %v12339_v13  ;;  %5032 = vst.msk [vmem:[%s16566_s3 + $0x78] sm:$0xff] %vm5016_vm7, %v12316_v44  ;;  %v12341_v0 = vadd.f32 %v16321_v9, %v9953_v4 }
 0x3c7   :  { %11045 = vst.msk [vmem:[%s16566_s3 + $0x138] sm:$0xff] %vm5016_vm7, %v12340_v36  ;;  %5030 = vst.msk [vmem:[%s16566_s3 + $0x68] sm:$0xff] %vm5016_vm7, %v12317_v38 }
 0x3c8   :  { %11043 = vst.msk [vmem:[%s16566_s3 + $0x128] sm:$0xff] %vm5016_vm7, %v12341_v0 }
 0x3c9   :  { %v11880_v29 = vpop.f32.mrb[16].mxu0 }
 0x3ca   :  { %v12318_v47 = vadd.f32 %v11880_v29, %v16321_v9  ;;  %v12296_v30 = vpop.f32.mrb[16].mxu1  ;;  %v4961_v60 = vpop.f32.mrb[17].mxu0 }
 0x3cb   :  { %v12342_v28 = vadd.f32 %v12296_v30, %v16321_v9  ;;  %v12319_v45 = vadd.f32 %v16321_v9, %v4961_v60  ;;  %v9966_v51 = vpop.f32.mrb[17].mxu1  ;;  %v11881_v49 = vpop.f32.mrb[18].mxu0 }
 0x3cc   :  { %5035 = vst.msk [vmem:[%s16566_s3 + $0x90] sm:$0xff] %vm5016_vm7, %v12318_v47  ;;  %v12343_v37 = vadd.f32 %v16321_v9, %v9966_v51  ;;  %v12320_v12 = vadd.f32 %v11881_v49, %v16321_v9  ;;  %v12297_v58 = vpop.f32.mrb[18].mxu1  ;;  %v4964_v61 = vpop.f32.mrb[19].mxu0 }
 0x3cd   :  { %11048 = vst.msk [vmem:[%s16566_s3 + $0x150] sm:$0xff] %vm5016_vm7, %v12342_v28  ;;  %5033 = vst.msk [vmem:[%s16566_s3 + $0x80] sm:$0xff] %vm5016_vm7, %v12319_v45  ;;  %v12344_v8 = vadd.f32 %v12297_v58, %v16321_v9  ;;  %v12321_v25 = vadd.f32 %v16321_v9, %v4964_v61  ;;  %v9969_v10 = vpop.f32.mrb[19].mxu1 }
 0x3ce   :  { %11046 = vst.msk [vmem:[%s16566_s3 + $0x140] sm:$0xff] %vm5016_vm7, %v12343_v37  ;;  %5036 = vst.msk [vmem:[%s16566_s3 + $0x98] sm:$0xff] %vm5016_vm7, %v12320_v12  ;;  %v12345_v17 = vadd.f32 %v16321_v9, %v9969_v10 }
 0x3cf   :  { %11049 = vst.msk [vmem:[%s16566_s3 + $0x158] sm:$0xff] %vm5016_vm7, %v12344_v8  ;;  %5034 = vst.msk [vmem:[%s16566_s3 + $0x88] sm:$0xff] %vm5016_vm7, %v12321_v25 }
 0x3d0   :  { %11047 = vst.msk [vmem:[%s16566_s3 + $0x148] sm:$0xff] %vm5016_vm7, %v12345_v17 }
 0x3d1   :  { %v11884_v35 = vpop.f32.mrb[20].mxu0 }
 0x3d2   :  { %v12322_v42 = vadd.f32 %v11884_v35, %v16321_v9  ;;  %v12300_v41 = vpop.f32.mrb[20].mxu1  ;;  %v4977_v1 = vpop.f32.mrb[21].mxu0 }
 0x3d3   :  { %v12346_v57 = vadd.f32 %v12300_v41, %v16321_v9  ;;  %v12323_v43 = vadd.f32 %v16321_v9, %v4977_v1  ;;  %v9982_v6 = vpop.f32.mrb[21].mxu1  ;;  %v11885_v62 = vpop.f32.mrb[22].mxu0 }
 0x3d4   :  { %5039 = vst.msk [vmem:[%s16566_s3 + $0xb0] sm:$0xff] %vm5016_vm7, %v12322_v42  ;;  %v12347_v11 = vadd.f32 %v16321_v9, %v9982_v6  ;;  %v12324_v54 = vadd.f32 %v11885_v62, %v16321_v9  ;;  %v12301_v15 = vpop.f32.mrb[22].mxu1  ;;  %v4980_v14 = vpop.f32.mrb[23].mxu0 }
 0x3d5   :  { %11052 = vst.msk [vmem:[%s16566_s3 + $0x170] sm:$0xff] %vm5016_vm7, %v12346_v57  ;;  %5037 = vst.msk [vmem:[%s16566_s3 + $0xa0] sm:$0xff] %vm5016_vm7, %v12323_v43  ;;  %v12348_v16 = vadd.f32 %v12301_v15, %v16321_v9  ;;  %v12325_v22 = vadd.f32 %v16321_v9, %v4980_v14  ;;  %v9985_v53 = vpop.f32.mrb[23].mxu1 }
 0x3d6   :  { %11050 = vst.msk [vmem:[%s16566_s3 + $0x160] sm:$0xff] %vm5016_vm7, %v12347_v11  ;;  %5040 = vst.msk [vmem:[%s16566_s3 + $0xb8] sm:$0xff] %vm5016_vm7, %v12324_v54  ;;  %v12349_v48 = vadd.f32 %v16321_v9, %v9985_v53 }
 0x3d7   :  { %11053 = vst.msk [vmem:[%s16566_s3 + $0x178] sm:$0xff] %vm5016_vm7, %v12348_v16  ;;  %5038 = vst.msk [vmem:[%s16566_s3 + $0xa8] sm:$0xff] %vm5016_vm7, %v12325_v22 }
 0x3d8   :  { %11051 = vst.msk [vmem:[%s16566_s3 + $0x168] sm:$0xff] %vm5016_vm7, %v12349_v48 }

</bundles_post_ra>
